<compile_context>
chip_gen: v7x
topology: tpu7x:2x2x1
jax: 0.10.0
libtpu: 0.0.40
codegen_flags: <defaults>
</compile_context>

<pallas_src>
import math
import functools

import numpy as np
import jax
import jax.numpy as jnp
from jax import lax
from jax.experimental import pallas as pl
from jax.experimental.pallas import tpu as pltpu

# ----------------------------- small config ---------------------------------
B = 2                 # batch
C = 3                 # image channels
IMG = 16              # image spatial size
PATCH = 8             # patch size
GRID = IMG // PATCH
NUM_PATCHES = GRID * GRID            # 4
SEQ_ENC = NUM_PATCHES + 1            # 5 (CLS + patches)
HIDDEN = 32           # hidden_size (shared by ViT encoder and GRU, as in the module)
NUM_HEADS = 4
HEAD_DIM = HIDDEN // NUM_HEADS
MLP_DIM = 4 * HIDDEN
NUM_ENC_LAYERS = 2    # scaled-down ViT encoder depth
VOCAB = 40            # VOCAB_SIZE = n_tokens + 3 (synthetic)
PAD_TOKEN = 0
T_DEC = 8             # decoder sequence length
LN_EPS = 1e-12        # HF ViT layer_norm_eps
GATE_PAD = 128        # 3*HIDDEN = 96 zero-padded to a lane-dense 128
VOCAB_PAD = 128       # VOCAB = 40 zero-padded to a lane-dense 128

_VMEM = pl.BlockSpec(memory_space=pltpu.MemorySpace.VMEM)


# ----------------------------- helpers ---------------------------------------
def _layernorm(x, g, b):
    mu = jnp.mean(x, axis=-1, keepdims=True)
    var = jnp.mean(jnp.square(x - mu), axis=-1, keepdims=True)
    return (x - mu) * lax.rsqrt(var + LN_EPS) * g + b


# ----------------------------- fused forward kernel --------------------------
def _fused_kernel(patches_ref, pw_ref, pb_ref, cls_ref, pos_ref,
                  ln1g_ref, ln1b_ref, wqkv_ref, bqkv_ref, wo_ref, bo_ref,
                  ln2g_ref, ln2b_ref, w1_ref, b1_ref, w2_ref, b2_ref,
                  lnfg_ref, lnfb_ref, bias_ref, pool_ref,
                  dec_ref, wi_ref, bi_ref, wh_ref, bh_ref, wout_ref, bout_ref,
                  out_ref):
    """Whole ViTGRUSeq2Seq forward in one invocation (no grid, everything in VMEM)."""
    f32 = jnp.float32
    scale = 1.0 / math.sqrt(HEAD_DIM)

    # --- ViT embeddings: patch linear + CLS + positional, built as one value ---
    pe = jnp.dot(patches_ref[...], pw_ref[...],
                 preferred_element_type=f32) + pb_ref[...]        # (B*NP, H)
    cls_row = cls_ref[...] + pos_ref[0:1, :]                      # (1, H)
    rows = []
    for b in range(B):
        rows.append(cls_row)
        rows.append(pe[b * NUM_PATCHES:(b + 1) * NUM_PATCHES, :]
                    + pos_ref[1:SEQ_ENC, :])
    x = jnp.concatenate(rows, axis=0)                             # (B*S, H)

    bias = bias_ref[...]      # (B*S, B*S) additive: 0 same-batch, -1e30 cross-batch

    # --- pre-LN ViT transformer layers, fully unrolled in Python -------------
    for l in range(NUM_ENC_LAYERS):
        hn = _layernorm(x, ln1g_ref[l], ln1b_ref[l])
        qkv = jnp.dot(hn, wqkv_ref[l], preferred_element_type=f32) + bqkv_ref[l]

        heads = []
        for hd in range(NUM_HEADS):
            c = hd * HEAD_DIM
            q = qkv[:, c:c + HEAD_DIM]                            # (B*S, Dh)
            k = qkv[:, HIDDEN + c:HIDDEN + c + HEAD_DIM]
            v = qkv[:, 2 * HIDDEN + c:2 * HIDDEN + c + HEAD_DIM]
            # one matmul per head covering both batches; cross-batch entries
            # killed by the additive block-diagonal bias before softmax.
            s = lax.dot_general(q, k, (((1,), (1,)), ((), ())),
                                preferred_element_type=f32) * scale + bias
            p = jnp.exp(s - jnp.max(s, axis=-1, keepdims=True))
            p = p / jnp.sum(p, axis=-1, keepdims=True)
            heads.append(jnp.dot(p, v, preferred_element_type=f32))
        attn = jnp.concatenate(heads, axis=-1)                    # (B*S, H), no scratch
        x = x + jnp.dot(attn, wo_ref[l], preferred_element_type=f32) + bo_ref[l]

        h2 = _layernorm(x, ln2g_ref[l], ln2b_ref[l])
        m = jnp.dot(h2, w1_ref[l], preferred_element_type=f32) + b1_ref[l]
        # TODO(synk): HF ViT uses exact erf GELU; tanh approximation kept for
        # guaranteed Mosaic lowering (small numeric divergence from PyTorch).
        m = jax.nn.gelu(m, approximate=True)
        x = x + jnp.dot(m, w2_ref[l], preferred_element_type=f32) + b2_ref[l]

    # --- final LN + mean over tokens -> h0 (B, H) ----------------------------
    xn = _layernorm(x, lnfg_ref[...], lnfb_ref[...])
    h = jnp.dot(pool_ref[...], xn, preferred_element_type=f32)    # (B, H) == h0

    # --- GRU decoder: input-side gates hoisted, recurrence unrolled ----------
    gi_all = jnp.dot(dec_ref[...], wi_ref[...],
                     preferred_element_type=f32) + bi_ref[...]    # (T*B, GATE_PAD)
    hs = []
    for t in range(T_DEC):
        gi = gi_all[t * B:(t + 1) * B, :]                         # (B, GATE_PAD)
        gh = jnp.dot(h, wh_ref[...], preferred_element_type=f32) + bh_ref[...]
        r = jax.nn.sigmoid(gi[:, 0:HIDDEN] + gh[:, 0:HIDDEN])
        z = jax.nn.sigmoid(gi[:, HIDDEN:2 * HIDDEN] + gh[:, HIDDEN:2 * HIDDEN])
        n = jnp.tanh(gi[:, 2 * HIDDEN:3 * HIDDEN] + r * gh[:, 2 * HIDDEN:3 * HIDDEN])
        h = (1.0 - z) * n + z * h                                 # PyTorch nn.GRU update
        hs.append(h)
    h_all = jnp.concatenate(hs, axis=0)                           # (T*B, H), time-major

    # fc_out hoisted: one (T*B, H) @ (H, 128) matmul, single lane-dense store
    out_ref[...] = (jnp.dot(h_all, wout_ref[...], preferred_element_type=f32)
                    + bout_ref[...]).astype(out_ref.dtype)


def fused_forward(params, patches, dec_emb_flat):
    args = [
        patches, params["patch_w"], params["patch_b"], params["cls"], params["pos"],
        params["ln1_g"], params["ln1_b"], params["wqkv"], params["bqkv"],
        params["wo"], params["bo"], params["ln2_g"], params["ln2_b"],
        params["w1"], params["b1"], params["w2"], params["b2"],
        params["ln_f_g"], params["ln_f_b"], params["attn_bias"], params["pool_mat"],
        dec_emb_flat, params["gru_wi"], params["gru_bi"],
        params["gru_wh"], params["gru_bh"], params["out_w"], params["out_b"],
    ]
    cost = pl.CostEstimate(flops=1_200_000, transcendentals=8_000,
                           bytes_accessed=450_000)
    return pl.pallas_call(
        _fused_kernel,
        out_shape=jax.ShapeDtypeStruct((T_DEC * B, VOCAB_PAD), jnp.float32),
        in_specs=[_VMEM] * len(args),
        out_specs=_VMEM,
        cost_estimate=cost,
    )(*args)


# ----------------------------- parameters ------------------------------------
def init_params(key):
    def nrm(k, shape, scale=0.02):
        return scale * jax.random.normal(k, shape, dtype=jnp.float32)

    keys = iter(jax.random.split(key, 64))
    zeros = lambda *s: jnp.zeros(s, jnp.float32)
    ones = lambda *s: jnp.ones(s, jnp.float32)

    def stack(make):
        return jnp.stack([make() for _ in range(NUM_ENC_LAYERS)], axis=0)

    p = {
        # ViT patch embedding (Conv2d k=s=PATCH as a matmul on flattened patches)
        "patch_w": nrm(next(keys), (C * PATCH * PATCH, HIDDEN)),
        "patch_b": zeros(1, HIDDEN),
        "cls": nrm(next(keys), (1, HIDDEN)),
        "pos": nrm(next(keys), (SEQ_ENC, HIDDEN)),
        # per-layer encoder params stacked on a leading layer axis (indexed
        # with static Python ints inside the fully unrolled kernel)
        "ln1_g": ones(NUM_ENC_LAYERS, 1, HIDDEN),
        "ln1_b": zeros(NUM_ENC_LAYERS, 1, HIDDEN),
        "wqkv": stack(lambda: nrm(next(keys), (HIDDEN, 3 * HIDDEN))),   # fused Q|K|V
        "bqkv": zeros(NUM_ENC_LAYERS, 1, 3 * HIDDEN),
        "wo": stack(lambda: nrm(next(keys), (HIDDEN, HIDDEN))),
        "bo": zeros(NUM_ENC_LAYERS, 1, HIDDEN),
        "ln2_g": ones(NUM_ENC_LAYERS, 1, HIDDEN),
        "ln2_b": zeros(NUM_ENC_LAYERS, 1, HIDDEN),
        "w1": stack(lambda: nrm(next(keys), (HIDDEN, MLP_DIM))),
        "b1": zeros(NUM_ENC_LAYERS, 1, MLP_DIM),
        "w2": stack(lambda: nrm(next(keys), (MLP_DIM, HIDDEN))),
        "b2": zeros(NUM_ENC_LAYERS, 1, HIDDEN),
        "ln_f_g": ones(1, HIDDEN),
        "ln_f_b": zeros(1, HIDDEN),
        # decoder embedding (padding_idx row zeroed, as nn.Embedding(padding_idx=...))
        "embed": nrm(next(keys), (VOCAB, HIDDEN)).at[PAD_TOKEN].set(0.0),
    }

    # GRU weights fused per side in gate order [r | z | n], pre-transposed so the
    # kernel computes x @ W, and zero-padded to lane-dense 128 columns.
    pad_cols = lambda a, n: jnp.pad(a, ((0, 0), (0, n - a.shape[1])))
    p["gru_wi"] = pad_cols(nrm(next(keys), (HIDDEN, 3 * HIDDEN)), GATE_PAD)
    p["gru_bi"] = pad_cols(zeros(1, 3 * HIDDEN), GATE_PAD)
    p["gru_wh"] = pad_cols(nrm(next(keys), (HIDDEN, 3 * HIDDEN)), GATE_PAD)
    p["gru_bh"] = pad_cols(zeros(1, 3 * HIDDEN), GATE_PAD)
    p["out_w"] = pad_cols(nrm(next(keys), (HIDDEN, VOCAB)), VOCAB_PAD)
    p["out_b"] = pad_cols(zeros(1, VOCAB), VOCAB_PAD)

    # constant additive attention bias (block-diagonal over batch) and
    # token-mean pooling matrix; passed as inputs so the kernel needs no iota.
    blk = np.arange(B * SEQ_ENC) // SEQ_ENC
    bias = np.where(blk[:, None] == blk[None, :], 0.0, -1e30).astype(np.float32)
    p["attn_bias"] = jnp.asarray(bias)
    pool = np.zeros((B, B * SEQ_ENC), np.float32)
    for b in range(B):
        pool[b, b * SEQ_ENC:(b + 1) * SEQ_ENC] = 1.0 / SEQ_ENC
    p["pool_mat"] = jnp.asarray(pool)
    return p


# ----------------------------- forward pass -----------------------------------
def vit_gru_seq2seq(params, pixel_values, decoder_input_ids):
    Bp = pixel_values.shape[0]

    # NCHW -> patch-major matmul view (B*num_patches, C*P*P)  (ViT patchify Conv2d)
    patches = pixel_values.reshape(Bp, C, GRID, PATCH, GRID, PATCH)
    patches = patches.transpose(0, 2, 4, 1, 3, 5).reshape(Bp * NUM_PATCHES,
                                                          C * PATCH * PATCH)

    # TODO(synk): nn.Embedding lookup stays as an XLA gather in the wrapper
    # (data-dependent gather; cheap at this size).
    dec_emb = params["embed"][decoder_input_ids]                     # (B, T, H)
    dec_flat = dec_emb.transpose(1, 0, 2).reshape(Bp * T_DEC, HIDDEN)  # time-major

    logits_pad = fused_forward(params, patches, dec_flat)            # (T*B, 128)
    return logits_pad.reshape(T_DEC, Bp, VOCAB_PAD).transpose(1, 0, 2)[:, :, :VOCAB]


# ----------------------------- main --------------------------------------------
if __name__ == "__main__":
    key = jax.random.PRNGKey(0)
    k_params, k_px, k_ids = jax.random.split(key, 3)

    params = init_params(k_params)
    pixel_values = jax.random.normal(k_px, (B, C, IMG, IMG), dtype=jnp.float32)
    decoder_input_ids = jax.random.randint(k_ids, (B, T_DEC), 0, VOCAB, dtype=jnp.int32)

    fwd = jax.jit(functools.partial(vit_gru_seq2seq, params))
    logits = fwd(pixel_values, decoder_input_ids)
    jax.block_until_ready(logits)

    assert logits.shape == (B, T_DEC, VOCAB), logits.shape
    assert bool(jnp.all(jnp.isfinite(logits)))
    print("KERNEL_OK")
</pallas_src>

<mosaic_0001>
module attributes {stable_mosaic.version = 11 : i64} {
  func.func @_fused_kernel(%arg0: memref<8x192xf32, #tpu.memory_space<vmem>>, %arg1: memref<192x32xf32, #tpu.memory_space<vmem>>, %arg2: memref<1x32xf32, #tpu.memory_space<vmem>>, %arg3: memref<1x32xf32, #tpu.memory_space<vmem>>, %arg4: memref<5x32xf32, #tpu.memory_space<vmem>>, %arg5: memref<2x1x32xf32, #tpu.memory_space<vmem>>, %arg6: memref<2x1x32xf32, #tpu.memory_space<vmem>>, %arg7: memref<2x32x96xf32, #tpu.memory_space<vmem>>, %arg8: memref<2x1x96xf32, #tpu.memory_space<vmem>>, %arg9: memref<2x32x32xf32, #tpu.memory_space<vmem>>, %arg10: memref<2x1x32xf32, #tpu.memory_space<vmem>>, %arg11: memref<2x1x32xf32, #tpu.memory_space<vmem>>, %arg12: memref<2x1x32xf32, #tpu.memory_space<vmem>>, %arg13: memref<2x32x128xf32, #tpu.memory_space<vmem>>, %arg14: memref<2x1x128xf32, #tpu.memory_space<vmem>>, %arg15: memref<2x128x32xf32, #tpu.memory_space<vmem>>, %arg16: memref<2x1x32xf32, #tpu.memory_space<vmem>>, %arg17: memref<1x32xf32, #tpu.memory_space<vmem>>, %arg18: memref<1x32xf32, #tpu.memory_space<vmem>>, %arg19: memref<10x10xf32, #tpu.memory_space<vmem>>, %arg20: memref<2x10xf32, #tpu.memory_space<vmem>>, %arg21: memref<16x32xf32, #tpu.memory_space<vmem>>, %arg22: memref<32x128xf32, #tpu.memory_space<vmem>>, %arg23: memref<1x128xf32, #tpu.memory_space<vmem>>, %arg24: memref<32x128xf32, #tpu.memory_space<vmem>>, %arg25: memref<1x128xf32, #tpu.memory_space<vmem>>, %arg26: memref<32x128xf32, #tpu.memory_space<vmem>>, %arg27: memref<1x128xf32, #tpu.memory_space<vmem>>, %arg28: memref<16x128xf32, #tpu.memory_space<vmem>>) attributes {dimension_semantics = [], scalar_prefetch = 0 : i64, scratch_operands = 0 : i64, tpu.core_type = #tpu.core_type<tc>} {
    %c0 = arith.constant 0 : index
    %c0_0 = arith.constant 0 : index
    %0 = vector.load %arg0[%c0, %c0_0] : memref<8x192xf32, #tpu.memory_space<vmem>>, vector<8x192xf32>
    %c0_1 = arith.constant 0 : index
    %c0_2 = arith.constant 0 : index
    %1 = vector.load %arg1[%c0_1, %c0_2] : memref<192x32xf32, #tpu.memory_space<vmem>>, vector<192x32xf32>
    %cst = arith.constant dense<0.000000e+00> : vector<8x32xf32>
    %2 = tpu.matmul %0, %1, %cst {dimension_numbers = #tpu.dot_dimension_numbers<[1], [0], [0], [1], [0, 0, 1, 1], [], []>} : vector<8x192xf32>, vector<192x32xf32>, vector<8x32xf32> -> vector<8x32xf32>
    %c0_3 = arith.constant 0 : index
    %c0_4 = arith.constant 0 : index
    %3 = vector.load %arg2[%c0_3, %c0_4] : memref<1x32xf32, #tpu.memory_space<vmem>>, vector<1x32xf32>
    %4 = vector.broadcast %3 : vector<1x32xf32> to vector<8x32xf32>
    %5 = arith.addf %2, %4 : vector<8x32xf32>
    %c0_5 = arith.constant 0 : index
    %c0_6 = arith.constant 0 : index
    %6 = vector.load %arg3[%c0_5, %c0_6] : memref<1x32xf32, #tpu.memory_space<vmem>>, vector<1x32xf32>
    %c0_7 = arith.constant 0 : index
    %c0_8 = arith.constant 0 : index
    %7 = vector.load %arg4[%c0_7, %c0_8] : memref<5x32xf32, #tpu.memory_space<vmem>>, vector<1x32xf32>
    %8 = arith.addf %6, %7 : vector<1x32xf32>
    %9 = vector.extract_strided_slice %5 {offsets = [0, 0], sizes = [4, 32], strides = [1, 1]} : vector<8x32xf32> to vector<4x32xf32>
    %c1 = arith.constant 1 : index
    %c0_9 = arith.constant 0 : index
    %10 = vector.load %arg4[%c1, %c0_9] : memref<5x32xf32, #tpu.memory_space<vmem>>, vector<4x32xf32>
    %11 = arith.addf %9, %10 : vector<4x32xf32>
    %12 = vector.extract_strided_slice %5 {offsets = [4, 0], sizes = [4, 32], strides = [1, 1]} : vector<8x32xf32> to vector<4x32xf32>
    %c1_10 = arith.constant 1 : index
    %c0_11 = arith.constant 0 : index
    %13 = vector.load %arg4[%c1_10, %c0_11] : memref<5x32xf32, #tpu.memory_space<vmem>>, vector<4x32xf32>
    %14 = arith.addf %12, %13 : vector<4x32xf32>
    %15 = tpu.concatenate %8, %11, %8, %14 in 0 : vector<1x32xf32>, vector<4x32xf32>, vector<1x32xf32>, vector<4x32xf32> -> vector<10x32xf32>
    %c0_12 = arith.constant 0 : index
    %c0_13 = arith.constant 0 : index
    %16 = vector.load %arg19[%c0_12, %c0_13] : memref<10x10xf32, #tpu.memory_space<vmem>>, vector<10x10xf32>
    %c0_14 = arith.constant 0 : index
    %c0_15 = arith.constant 0 : index
    %c0_16 = arith.constant 0 : index
    %17 = vector.load %arg5[%c0_14, %c0_15, %c0_16] : memref<2x1x32xf32, #tpu.memory_space<vmem>>, vector<1x1x32xf32>
    %18 = vector.shape_cast %17 : vector<1x1x32xf32> to vector<1x32xf32>
    %c0_17 = arith.constant 0 : index
    %c0_18 = arith.constant 0 : index
    %c0_19 = arith.constant 0 : index
    %19 = vector.load %arg6[%c0_17, %c0_18, %c0_19] : memref<2x1x32xf32, #tpu.memory_space<vmem>>, vector<1x1x32xf32>
    %20 = vector.shape_cast %19 : vector<1x1x32xf32> to vector<1x32xf32>
    %cst_20 = arith.constant dense<0.000000e+00> : vector<10xf32>
    %21 = vector.multi_reduction <add>, %15, %cst_20 [1] : vector<10x32xf32> to vector<10xf32>
    %22 = vector.shape_cast %21 : vector<10xf32> to vector<10x1xf32>
    %cst_21 = arith.constant 3.200000e+01 : f32
    %23 = vector.broadcast %cst_21 : f32 to vector<10x1xf32>
    %24 = arith.divf %22, %23 : vector<10x1xf32>
    %25 = vector.broadcast %24 : vector<10x1xf32> to vector<10x32xf32>
    %26 = arith.subf %15, %25 : vector<10x32xf32>
    %27 = arith.mulf %26, %26 : vector<10x32xf32>
    %cst_22 = arith.constant dense<0.000000e+00> : vector<10xf32>
    %28 = vector.multi_reduction <add>, %27, %cst_22 [1] : vector<10x32xf32> to vector<10xf32>
    %29 = vector.shape_cast %28 : vector<10xf32> to vector<10x1xf32>
    %cst_23 = arith.constant 3.200000e+01 : f32
    %30 = vector.broadcast %cst_23 : f32 to vector<10x1xf32>
    %31 = arith.divf %29, %30 : vector<10x1xf32>
    %32 = vector.broadcast %24 : vector<10x1xf32> to vector<10x32xf32>
    %33 = arith.subf %15, %32 : vector<10x32xf32>
    %cst_24 = arith.constant 9.99999996E-13 : f32
    %34 = vector.broadcast %cst_24 : f32 to vector<10x1xf32>
    %35 = arith.addf %31, %34 : vector<10x1xf32>
    %36 = math.rsqrt %35 : vector<10x1xf32>
    %37 = vector.broadcast %36 : vector<10x1xf32> to vector<10x32xf32>
    %38 = arith.mulf %33, %37 : vector<10x32xf32>
    %39 = vector.broadcast %18 : vector<1x32xf32> to vector<10x32xf32>
    %40 = arith.mulf %38, %39 : vector<10x32xf32>
    %41 = vector.broadcast %20 : vector<1x32xf32> to vector<10x32xf32>
    %42 = arith.addf %40, %41 : vector<10x32xf32>
    %c0_25 = arith.constant 0 : index
    %c0_26 = arith.constant 0 : index
    %c0_27 = arith.constant 0 : index
    %43 = vector.load %arg7[%c0_25, %c0_26, %c0_27] : memref<2x32x96xf32, #tpu.memory_space<vmem>>, vector<1x32x96xf32>
    %44 = vector.shape_cast %43 : vector<1x32x96xf32> to vector<32x96xf32>
    %cst_28 = arith.constant dense<0.000000e+00> : vector<10x96xf32>
    %45 = tpu.matmul %42, %44, %cst_28 {dimension_numbers = #tpu.dot_dimension_numbers<[1], [0], [0], [1], [0, 0, 1, 1], [], []>} : vector<10x32xf32>, vector<32x96xf32>, vector<10x96xf32> -> vector<10x96xf32>
    %c0_29 = arith.constant 0 : index
    %c0_30 = arith.constant 0 : index
    %c0_31 = arith.constant 0 : index
    %46 = vector.load %arg8[%c0_29, %c0_30, %c0_31] : memref<2x1x96xf32, #tpu.memory_space<vmem>>, vector<1x1x96xf32>
    %47 = vector.shape_cast %46 : vector<1x1x96xf32> to vector<1x96xf32>
    %48 = vector.broadcast %47 : vector<1x96xf32> to vector<10x96xf32>
    %49 = arith.addf %45, %48 : vector<10x96xf32>
    %50 = vector.extract_strided_slice %49 {offsets = [0, 0], sizes = [10, 8], strides = [1, 1]} : vector<10x96xf32> to vector<10x8xf32>
    %51 = vector.extract_strided_slice %49 {offsets = [0, 32], sizes = [10, 8], strides = [1, 1]} : vector<10x96xf32> to vector<10x8xf32>
    %52 = vector.extract_strided_slice %49 {offsets = [0, 64], sizes = [10, 8], strides = [1, 1]} : vector<10x96xf32> to vector<10x8xf32>
    %cst_32 = arith.constant dense<0.000000e+00> : vector<10x10xf32>
    %53 = tpu.matmul %50, %51, %cst_32 {dimension_numbers = #tpu.dot_dimension_numbers<[1], [1], [0], [0], [0, 0, 1, 0], [], []>} : vector<10x8xf32>, vector<10x8xf32>, vector<10x10xf32> -> vector<10x10xf32>
    %cst_33 = arith.constant 0.353553385 : f32
    %54 = vector.broadcast %cst_33 : f32 to vector<10x10xf32>
    %55 = arith.mulf %53, %54 : vector<10x10xf32>
    %56 = arith.addf %55, %16 : vector<10x10xf32>
    %cst_34 = arith.constant dense<0xFF800000> : vector<10xf32>
    %57 = vector.multi_reduction <maximumf>, %56, %cst_34 [1] : vector<10x10xf32> to vector<10xf32>
    %58 = vector.shape_cast %57 : vector<10xf32> to vector<10x1xf32>
    %59 = vector.broadcast %58 : vector<10x1xf32> to vector<10x10xf32>
    %60 = arith.subf %56, %59 : vector<10x10xf32>
    %61 = math.exp %60 : vector<10x10xf32>
    %cst_35 = arith.constant dense<0.000000e+00> : vector<10xf32>
    %62 = vector.multi_reduction <add>, %61, %cst_35 [1] : vector<10x10xf32> to vector<10xf32>
    %63 = vector.shape_cast %62 : vector<10xf32> to vector<10x1xf32>
    %64 = vector.broadcast %63 : vector<10x1xf32> to vector<10x10xf32>
    %65 = arith.divf %61, %64 : vector<10x10xf32>
    %cst_36 = arith.constant dense<0.000000e+00> : vector<10x8xf32>
    %66 = tpu.matmul %65, %52, %cst_36 {dimension_numbers = #tpu.dot_dimension_numbers<[1], [0], [0], [1], [0, 0, 1, 1], [], []>} : vector<10x10xf32>, vector<10x8xf32>, vector<10x8xf32> -> vector<10x8xf32>
    %67 = vector.extract_strided_slice %49 {offsets = [0, 8], sizes = [10, 8], strides = [1, 1]} : vector<10x96xf32> to vector<10x8xf32>
    %68 = vector.extract_strided_slice %49 {offsets = [0, 40], sizes = [10, 8], strides = [1, 1]} : vector<10x96xf32> to vector<10x8xf32>
    %69 = vector.extract_strided_slice %49 {offsets = [0, 72], sizes = [10, 8], strides = [1, 1]} : vector<10x96xf32> to vector<10x8xf32>
    %cst_37 = arith.constant dense<0.000000e+00> : vector<10x10xf32>
    %70 = tpu.matmul %67, %68, %cst_37 {dimension_numbers = #tpu.dot_dimension_numbers<[1], [1], [0], [0], [0, 0, 1, 0], [], []>} : vector<10x8xf32>, vector<10x8xf32>, vector<10x10xf32> -> vector<10x10xf32>
    %cst_38 = arith.constant 0.353553385 : f32
    %71 = vector.broadcast %cst_38 : f32 to vector<10x10xf32>
    %72 = arith.mulf %70, %71 : vector<10x10xf32>
    %73 = arith.addf %72, %16 : vector<10x10xf32>
    %cst_39 = arith.constant dense<0xFF800000> : vector<10xf32>
    %74 = vector.multi_reduction <maximumf>, %73, %cst_39 [1] : vector<10x10xf32> to vector<10xf32>
    %75 = vector.shape_cast %74 : vector<10xf32> to vector<10x1xf32>
    %76 = vector.broadcast %75 : vector<10x1xf32> to vector<10x10xf32>
    %77 = arith.subf %73, %76 : vector<10x10xf32>
    %78 = math.exp %77 : vector<10x10xf32>
    %cst_40 = arith.constant dense<0.000000e+00> : vector<10xf32>
    %79 = vector.multi_reduction <add>, %78, %cst_40 [1] : vector<10x10xf32> to vector<10xf32>
    %80 = vector.shape_cast %79 : vector<10xf32> to vector<10x1xf32>
    %81 = vector.broadcast %80 : vector<10x1xf32> to vector<10x10xf32>
    %82 = arith.divf %78, %81 : vector<10x10xf32>
    %cst_41 = arith.constant dense<0.000000e+00> : vector<10x8xf32>
    %83 = tpu.matmul %82, %69, %cst_41 {dimension_numbers = #tpu.dot_dimension_numbers<[1], [0], [0], [1], [0, 0, 1, 1], [], []>} : vector<10x10xf32>, vector<10x8xf32>, vector<10x8xf32> -> vector<10x8xf32>
    %84 = vector.extract_strided_slice %49 {offsets = [0, 16], sizes = [10, 8], strides = [1, 1]} : vector<10x96xf32> to vector<10x8xf32>
    %85 = vector.extract_strided_slice %49 {offsets = [0, 48], sizes = [10, 8], strides = [1, 1]} : vector<10x96xf32> to vector<10x8xf32>
    %86 = vector.extract_strided_slice %49 {offsets = [0, 80], sizes = [10, 8], strides = [1, 1]} : vector<10x96xf32> to vector<10x8xf32>
    %cst_42 = arith.constant dense<0.000000e+00> : vector<10x10xf32>
    %87 = tpu.matmul %84, %85, %cst_42 {dimension_numbers = #tpu.dot_dimension_numbers<[1], [1], [0], [0], [0, 0, 1, 0], [], []>} : vector<10x8xf32>, vector<10x8xf32>, vector<10x10xf32> -> vector<10x10xf32>
    %cst_43 = arith.constant 0.353553385 : f32
    %88 = vector.broadcast %cst_43 : f32 to vector<10x10xf32>
    %89 = arith.mulf %87, %88 : vector<10x10xf32>
    %90 = arith.addf %89, %16 : vector<10x10xf32>
    %cst_44 = arith.constant dense<0xFF800000> : vector<10xf32>
    %91 = vector.multi_reduction <maximumf>, %90, %cst_44 [1] : vector<10x10xf32> to vector<10xf32>
    %92 = vector.shape_cast %91 : vector<10xf32> to vector<10x1xf32>
    %93 = vector.broadcast %92 : vector<10x1xf32> to vector<10x10xf32>
    %94 = arith.subf %90, %93 : vector<10x10xf32>
    %95 = math.exp %94 : vector<10x10xf32>
    %cst_45 = arith.constant dense<0.000000e+00> : vector<10xf32>
    %96 = vector.multi_reduction <add>, %95, %cst_45 [1] : vector<10x10xf32> to vector<10xf32>
    %97 = vector.shape_cast %96 : vector<10xf32> to vector<10x1xf32>
    %98 = vector.broadcast %97 : vector<10x1xf32> to vector<10x10xf32>
    %99 = arith.divf %95, %98 : vector<10x10xf32>
    %cst_46 = arith.constant dense<0.000000e+00> : vector<10x8xf32>
    %100 = tpu.matmul %99, %86, %cst_46 {dimension_numbers = #tpu.dot_dimension_numbers<[1], [0], [0], [1], [0, 0, 1, 1], [], []>} : vector<10x10xf32>, vector<10x8xf32>, vector<10x8xf32> -> vector<10x8xf32>
    %101 = vector.extract_strided_slice %49 {offsets = [0, 24], sizes = [10, 8], strides = [1, 1]} : vector<10x96xf32> to vector<10x8xf32>
    %102 = vector.extract_strided_slice %49 {offsets = [0, 56], sizes = [10, 8], strides = [1, 1]} : vector<10x96xf32> to vector<10x8xf32>
    %103 = vector.extract_strided_slice %49 {offsets = [0, 88], sizes = [10, 8], strides = [1, 1]} : vector<10x96xf32> to vector<10x8xf32>
    %cst_47 = arith.constant dense<0.000000e+00> : vector<10x10xf32>
    %104 = tpu.matmul %101, %102, %cst_47 {dimension_numbers = #tpu.dot_dimension_numbers<[1], [1], [0], [0], [0, 0, 1, 0], [], []>} : vector<10x8xf32>, vector<10x8xf32>, vector<10x10xf32> -> vector<10x10xf32>
    %cst_48 = arith.constant 0.353553385 : f32
    %105 = vector.broadcast %cst_48 : f32 to vector<10x10xf32>
    %106 = arith.mulf %104, %105 : vector<10x10xf32>
    %107 = arith.addf %106, %16 : vector<10x10xf32>
    %cst_49 = arith.constant dense<0xFF800000> : vector<10xf32>
    %108 = vector.multi_reduction <maximumf>, %107, %cst_49 [1] : vector<10x10xf32> to vector<10xf32>
    %109 = vector.shape_cast %108 : vector<10xf32> to vector<10x1xf32>
    %110 = vector.broadcast %109 : vector<10x1xf32> to vector<10x10xf32>
    %111 = arith.subf %107, %110 : vector<10x10xf32>
    %112 = math.exp %111 : vector<10x10xf32>
    %cst_50 = arith.constant dense<0.000000e+00> : vector<10xf32>
    %113 = vector.multi_reduction <add>, %112, %cst_50 [1] : vector<10x10xf32> to vector<10xf32>
    %114 = vector.shape_cast %113 : vector<10xf32> to vector<10x1xf32>
    %115 = vector.broadcast %114 : vector<10x1xf32> to vector<10x10xf32>
    %116 = arith.divf %112, %115 : vector<10x10xf32>
    %cst_51 = arith.constant dense<0.000000e+00> : vector<10x8xf32>
    %117 = tpu.matmul %116, %103, %cst_51 {dimension_numbers = #tpu.dot_dimension_numbers<[1], [0], [0], [1], [0, 0, 1, 1], [], []>} : vector<10x10xf32>, vector<10x8xf32>, vector<10x8xf32> -> vector<10x8xf32>
    %118 = tpu.concatenate %66, %83, %100, %117 in 1 : vector<10x8xf32>, vector<10x8xf32>, vector<10x8xf32>, vector<10x8xf32> -> vector<10x32xf32>
    %c0_52 = arith.constant 0 : index
    %c0_53 = arith.constant 0 : index
    %c0_54 = arith.constant 0 : index
    %119 = vector.load %arg9[%c0_52, %c0_53, %c0_54] : memref<2x32x32xf32, #tpu.memory_space<vmem>>, vector<1x32x32xf32>
    %120 = vector.shape_cast %119 : vector<1x32x32xf32> to vector<32x32xf32>
    %cst_55 = arith.constant dense<0.000000e+00> : vector<10x32xf32>
    %121 = tpu.matmul %118, %120, %cst_55 {dimension_numbers = #tpu.dot_dimension_numbers<[1], [0], [0], [1], [0, 0, 1, 1], [], []>} : vector<10x32xf32>, vector<32x32xf32>, vector<10x32xf32> -> vector<10x32xf32>
    %122 = arith.addf %15, %121 : vector<10x32xf32>
    %c0_56 = arith.constant 0 : index
    %c0_57 = arith.constant 0 : index
    %c0_58 = arith.constant 0 : index
    %123 = vector.load %arg10[%c0_56, %c0_57, %c0_58] : memref<2x1x32xf32, #tpu.memory_space<vmem>>, vector<1x1x32xf32>
    %124 = vector.shape_cast %123 : vector<1x1x32xf32> to vector<1x32xf32>
    %125 = vector.broadcast %124 : vector<1x32xf32> to vector<10x32xf32>
    %126 = arith.addf %122, %125 : vector<10x32xf32>
    %c0_59 = arith.constant 0 : index
    %c0_60 = arith.constant 0 : index
    %c0_61 = arith.constant 0 : index
    %127 = vector.load %arg11[%c0_59, %c0_60, %c0_61] : memref<2x1x32xf32, #tpu.memory_space<vmem>>, vector<1x1x32xf32>
    %128 = vector.shape_cast %127 : vector<1x1x32xf32> to vector<1x32xf32>
    %c0_62 = arith.constant 0 : index
    %c0_63 = arith.constant 0 : index
    %c0_64 = arith.constant 0 : index
    %129 = vector.load %arg12[%c0_62, %c0_63, %c0_64] : memref<2x1x32xf32, #tpu.memory_space<vmem>>, vector<1x1x32xf32>
    %130 = vector.shape_cast %129 : vector<1x1x32xf32> to vector<1x32xf32>
    %cst_65 = arith.constant dense<0.000000e+00> : vector<10xf32>
    %131 = vector.multi_reduction <add>, %126, %cst_65 [1] : vector<10x32xf32> to vector<10xf32>
    %132 = vector.shape_cast %131 : vector<10xf32> to vector<10x1xf32>
    %cst_66 = arith.constant 3.200000e+01 : f32
    %133 = vector.broadcast %cst_66 : f32 to vector<10x1xf32>
    %134 = arith.divf %132, %133 : vector<10x1xf32>
    %135 = vector.broadcast %134 : vector<10x1xf32> to vector<10x32xf32>
    %136 = arith.subf %126, %135 : vector<10x32xf32>
    %137 = arith.mulf %136, %136 : vector<10x32xf32>
    %cst_67 = arith.constant dense<0.000000e+00> : vector<10xf32>
    %138 = vector.multi_reduction <add>, %137, %cst_67 [1] : vector<10x32xf32> to vector<10xf32>
    %139 = vector.shape_cast %138 : vector<10xf32> to vector<10x1xf32>
    %cst_68 = arith.constant 3.200000e+01 : f32
    %140 = vector.broadcast %cst_68 : f32 to vector<10x1xf32>
    %141 = arith.divf %139, %140 : vector<10x1xf32>
    %142 = vector.broadcast %134 : vector<10x1xf32> to vector<10x32xf32>
    %143 = arith.subf %126, %142 : vector<10x32xf32>
    %cst_69 = arith.constant 9.99999996E-13 : f32
    %144 = vector.broadcast %cst_69 : f32 to vector<10x1xf32>
    %145 = arith.addf %141, %144 : vector<10x1xf32>
    %146 = math.rsqrt %145 : vector<10x1xf32>
    %147 = vector.broadcast %146 : vector<10x1xf32> to vector<10x32xf32>
    %148 = arith.mulf %143, %147 : vector<10x32xf32>
    %149 = vector.broadcast %128 : vector<1x32xf32> to vector<10x32xf32>
    %150 = arith.mulf %148, %149 : vector<10x32xf32>
    %151 = vector.broadcast %130 : vector<1x32xf32> to vector<10x32xf32>
    %152 = arith.addf %150, %151 : vector<10x32xf32>
    %c0_70 = arith.constant 0 : index
    %c0_71 = arith.constant 0 : index
    %c0_72 = arith.constant 0 : index
    %153 = vector.load %arg13[%c0_70, %c0_71, %c0_72] : memref<2x32x128xf32, #tpu.memory_space<vmem>>, vector<1x32x128xf32>
    %154 = vector.shape_cast %153 : vector<1x32x128xf32> to vector<32x128xf32>
    %cst_73 = arith.constant dense<0.000000e+00> : vector<10x128xf32>
    %155 = tpu.matmul %152, %154, %cst_73 {dimension_numbers = #tpu.dot_dimension_numbers<[1], [0], [0], [1], [0, 0, 1, 1], [], []>} : vector<10x32xf32>, vector<32x128xf32>, vector<10x128xf32> -> vector<10x128xf32>
    %c0_74 = arith.constant 0 : index
    %c0_75 = arith.constant 0 : index
    %c0_76 = arith.constant 0 : index
    %156 = vector.load %arg14[%c0_74, %c0_75, %c0_76] : memref<2x1x128xf32, #tpu.memory_space<vmem>>, vector<1x1x128xf32>
    %157 = vector.shape_cast %156 : vector<1x1x128xf32> to vector<1x128xf32>
    %158 = vector.broadcast %157 : vector<1x128xf32> to vector<10x128xf32>
    %159 = arith.addf %155, %158 : vector<10x128xf32>
    %160 = arith.mulf %159, %159 : vector<10x128xf32>
    %161 = arith.mulf %159, %160 : vector<10x128xf32>
    %cst_77 = arith.constant 4.471500e-02 : f32
    %162 = vector.broadcast %cst_77 : f32 to vector<10x128xf32>
    %163 = arith.mulf %162, %161 : vector<10x128xf32>
    %164 = arith.addf %159, %163 : vector<10x128xf32>
    %cst_78 = arith.constant 0.797884583 : f32
    %165 = vector.broadcast %cst_78 : f32 to vector<10x128xf32>
    %166 = arith.mulf %165, %164 : vector<10x128xf32>
    %167 = math.tanh %166 : vector<10x128xf32>
    %cst_79 = arith.constant 1.000000e+00 : f32
    %168 = vector.broadcast %cst_79 : f32 to vector<10x128xf32>
    %169 = arith.addf %168, %167 : vector<10x128xf32>
    %cst_80 = arith.constant 5.000000e-01 : f32
    %170 = vector.broadcast %cst_80 : f32 to vector<10x128xf32>
    %171 = arith.mulf %170, %169 : vector<10x128xf32>
    %172 = arith.mulf %159, %171 : vector<10x128xf32>
    %c0_81 = arith.constant 0 : index
    %c0_82 = arith.constant 0 : index
    %c0_83 = arith.constant 0 : index
    %173 = vector.load %arg15[%c0_81, %c0_82, %c0_83] : memref<2x128x32xf32, #tpu.memory_space<vmem>>, vector<1x128x32xf32>
    %174 = vector.shape_cast %173 : vector<1x128x32xf32> to vector<128x32xf32>
    %cst_84 = arith.constant dense<0.000000e+00> : vector<10x32xf32>
    %175 = tpu.matmul %172, %174, %cst_84 {dimension_numbers = #tpu.dot_dimension_numbers<[1], [0], [0], [1], [0, 0, 1, 1], [], []>} : vector<10x128xf32>, vector<128x32xf32>, vector<10x32xf32> -> vector<10x32xf32>
    %176 = arith.addf %126, %175 : vector<10x32xf32>
    %c0_85 = arith.constant 0 : index
    %c0_86 = arith.constant 0 : index
    %c0_87 = arith.constant 0 : index
    %177 = vector.load %arg16[%c0_85, %c0_86, %c0_87] : memref<2x1x32xf32, #tpu.memory_space<vmem>>, vector<1x1x32xf32>
    %178 = vector.shape_cast %177 : vector<1x1x32xf32> to vector<1x32xf32>
    %179 = vector.broadcast %178 : vector<1x32xf32> to vector<10x32xf32>
    %180 = arith.addf %176, %179 : vector<10x32xf32>
    %c1_88 = arith.constant 1 : index
    %c0_89 = arith.constant 0 : index
    %c0_90 = arith.constant 0 : index
    %181 = vector.load %arg5[%c1_88, %c0_89, %c0_90] : memref<2x1x32xf32, #tpu.memory_space<vmem>>, vector<1x1x32xf32>
    %182 = vector.shape_cast %181 : vector<1x1x32xf32> to vector<1x32xf32>
    %c1_91 = arith.constant 1 : index
    %c0_92 = arith.constant 0 : index
    %c0_93 = arith.constant 0 : index
    %183 = vector.load %arg6[%c1_91, %c0_92, %c0_93] : memref<2x1x32xf32, #tpu.memory_space<vmem>>, vector<1x1x32xf32>
    %184 = vector.shape_cast %183 : vector<1x1x32xf32> to vector<1x32xf32>
    %cst_94 = arith.constant dense<0.000000e+00> : vector<10xf32>
    %185 = vector.multi_reduction <add>, %180, %cst_94 [1] : vector<10x32xf32> to vector<10xf32>
    %186 = vector.shape_cast %185 : vector<10xf32> to vector<10x1xf32>
    %cst_95 = arith.constant 3.200000e+01 : f32
    %187 = vector.broadcast %cst_95 : f32 to vector<10x1xf32>
    %188 = arith.divf %186, %187 : vector<10x1xf32>
    %189 = vector.broadcast %188 : vector<10x1xf32> to vector<10x32xf32>
    %190 = arith.subf %180, %189 : vector<10x32xf32>
    %191 = arith.mulf %190, %190 : vector<10x32xf32>
    %cst_96 = arith.constant dense<0.000000e+00> : vector<10xf32>
    %192 = vector.multi_reduction <add>, %191, %cst_96 [1] : vector<10x32xf32> to vector<10xf32>
    %193 = vector.shape_cast %192 : vector<10xf32> to vector<10x1xf32>
    %cst_97 = arith.constant 3.200000e+01 : f32
    %194 = vector.broadcast %cst_97 : f32 to vector<10x1xf32>
    %195 = arith.divf %193, %194 : vector<10x1xf32>
    %196 = vector.broadcast %188 : vector<10x1xf32> to vector<10x32xf32>
    %197 = arith.subf %180, %196 : vector<10x32xf32>
    %cst_98 = arith.constant 9.99999996E-13 : f32
    %198 = vector.broadcast %cst_98 : f32 to vector<10x1xf32>
    %199 = arith.addf %195, %198 : vector<10x1xf32>
    %200 = math.rsqrt %199 : vector<10x1xf32>
    %201 = vector.broadcast %200 : vector<10x1xf32> to vector<10x32xf32>
    %202 = arith.mulf %197, %201 : vector<10x32xf32>
    %203 = vector.broadcast %182 : vector<1x32xf32> to vector<10x32xf32>
    %204 = arith.mulf %202, %203 : vector<10x32xf32>
    %205 = vector.broadcast %184 : vector<1x32xf32> to vector<10x32xf32>
    %206 = arith.addf %204, %205 : vector<10x32xf32>
    %c1_99 = arith.constant 1 : index
    %c0_100 = arith.constant 0 : index
    %c0_101 = arith.constant 0 : index
    %207 = vector.load %arg7[%c1_99, %c0_100, %c0_101] : memref<2x32x96xf32, #tpu.memory_space<vmem>>, vector<1x32x96xf32>
    %208 = vector.shape_cast %207 : vector<1x32x96xf32> to vector<32x96xf32>
    %cst_102 = arith.constant dense<0.000000e+00> : vector<10x96xf32>
    %209 = tpu.matmul %206, %208, %cst_102 {dimension_numbers = #tpu.dot_dimension_numbers<[1], [0], [0], [1], [0, 0, 1, 1], [], []>} : vector<10x32xf32>, vector<32x96xf32>, vector<10x96xf32> -> vector<10x96xf32>
    %c1_103 = arith.constant 1 : index
    %c0_104 = arith.constant 0 : index
    %c0_105 = arith.constant 0 : index
    %210 = vector.load %arg8[%c1_103, %c0_104, %c0_105] : memref<2x1x96xf32, #tpu.memory_space<vmem>>, vector<1x1x96xf32>
    %211 = vector.shape_cast %210 : vector<1x1x96xf32> to vector<1x96xf32>
    %212 = vector.broadcast %211 : vector<1x96xf32> to vector<10x96xf32>
    %213 = arith.addf %209, %212 : vector<10x96xf32>
    %214 = vector.extract_strided_slice %213 {offsets = [0, 0], sizes = [10, 8], strides = [1, 1]} : vector<10x96xf32> to vector<10x8xf32>
    %215 = vector.extract_strided_slice %213 {offsets = [0, 32], sizes = [10, 8], strides = [1, 1]} : vector<10x96xf32> to vector<10x8xf32>
    %216 = vector.extract_strided_slice %213 {offsets = [0, 64], sizes = [10, 8], strides = [1, 1]} : vector<10x96xf32> to vector<10x8xf32>
    %cst_106 = arith.constant dense<0.000000e+00> : vector<10x10xf32>
    %217 = tpu.matmul %214, %215, %cst_106 {dimension_numbers = #tpu.dot_dimension_numbers<[1], [1], [0], [0], [0, 0, 1, 0], [], []>} : vector<10x8xf32>, vector<10x8xf32>, vector<10x10xf32> -> vector<10x10xf32>
    %cst_107 = arith.constant 0.353553385 : f32
    %218 = vector.broadcast %cst_107 : f32 to vector<10x10xf32>
    %219 = arith.mulf %217, %218 : vector<10x10xf32>
    %220 = arith.addf %219, %16 : vector<10x10xf32>
    %cst_108 = arith.constant dense<0xFF800000> : vector<10xf32>
    %221 = vector.multi_reduction <maximumf>, %220, %cst_108 [1] : vector<10x10xf32> to vector<10xf32>
    %222 = vector.shape_cast %221 : vector<10xf32> to vector<10x1xf32>
    %223 = vector.broadcast %222 : vector<10x1xf32> to vector<10x10xf32>
    %224 = arith.subf %220, %223 : vector<10x10xf32>
    %225 = math.exp %224 : vector<10x10xf32>
    %cst_109 = arith.constant dense<0.000000e+00> : vector<10xf32>
    %226 = vector.multi_reduction <add>, %225, %cst_109 [1] : vector<10x10xf32> to vector<10xf32>
    %227 = vector.shape_cast %226 : vector<10xf32> to vector<10x1xf32>
    %228 = vector.broadcast %227 : vector<10x1xf32> to vector<10x10xf32>
    %229 = arith.divf %225, %228 : vector<10x10xf32>
    %cst_110 = arith.constant dense<0.000000e+00> : vector<10x8xf32>
    %230 = tpu.matmul %229, %216, %cst_110 {dimension_numbers = #tpu.dot_dimension_numbers<[1], [0], [0], [1], [0, 0, 1, 1], [], []>} : vector<10x10xf32>, vector<10x8xf32>, vector<10x8xf32> -> vector<10x8xf32>
    %231 = vector.extract_strided_slice %213 {offsets = [0, 8], sizes = [10, 8], strides = [1, 1]} : vector<10x96xf32> to vector<10x8xf32>
    %232 = vector.extract_strided_slice %213 {offsets = [0, 40], sizes = [10, 8], strides = [1, 1]} : vector<10x96xf32> to vector<10x8xf32>
    %233 = vector.extract_strided_slice %213 {offsets = [0, 72], sizes = [10, 8], strides = [1, 1]} : vector<10x96xf32> to vector<10x8xf32>
    %cst_111 = arith.constant dense<0.000000e+00> : vector<10x10xf32>
    %234 = tpu.matmul %231, %232, %cst_111 {dimension_numbers = #tpu.dot_dimension_numbers<[1], [1], [0], [0], [0, 0, 1, 0], [], []>} : vector<10x8xf32>, vector<10x8xf32>, vector<10x10xf32> -> vector<10x10xf32>
    %cst_112 = arith.constant 0.353553385 : f32
    %235 = vector.broadcast %cst_112 : f32 to vector<10x10xf32>
    %236 = arith.mulf %234, %235 : vector<10x10xf32>
    %237 = arith.addf %236, %16 : vector<10x10xf32>
    %cst_113 = arith.constant dense<0xFF800000> : vector<10xf32>
    %238 = vector.multi_reduction <maximumf>, %237, %cst_113 [1] : vector<10x10xf32> to vector<10xf32>
    %239 = vector.shape_cast %238 : vector<10xf32> to vector<10x1xf32>
    %240 = vector.broadcast %239 : vector<10x1xf32> to vector<10x10xf32>
    %241 = arith.subf %237, %240 : vector<10x10xf32>
    %242 = math.exp %241 : vector<10x10xf32>
    %cst_114 = arith.constant dense<0.000000e+00> : vector<10xf32>
    %243 = vector.multi_reduction <add>, %242, %cst_114 [1] : vector<10x10xf32> to vector<10xf32>
    %244 = vector.shape_cast %243 : vector<10xf32> to vector<10x1xf32>
    %245 = vector.broadcast %244 : vector<10x1xf32> to vector<10x10xf32>
    %246 = arith.divf %242, %245 : vector<10x10xf32>
    %cst_115 = arith.constant dense<0.000000e+00> : vector<10x8xf32>
    %247 = tpu.matmul %246, %233, %cst_115 {dimension_numbers = #tpu.dot_dimension_numbers<[1], [0], [0], [1], [0, 0, 1, 1], [], []>} : vector<10x10xf32>, vector<10x8xf32>, vector<10x8xf32> -> vector<10x8xf32>
    %248 = vector.extract_strided_slice %213 {offsets = [0, 16], sizes = [10, 8], strides = [1, 1]} : vector<10x96xf32> to vector<10x8xf32>
    %249 = vector.extract_strided_slice %213 {offsets = [0, 48], sizes = [10, 8], strides = [1, 1]} : vector<10x96xf32> to vector<10x8xf32>
    %250 = vector.extract_strided_slice %213 {offsets = [0, 80], sizes = [10, 8], strides = [1, 1]} : vector<10x96xf32> to vector<10x8xf32>
    %cst_116 = arith.constant dense<0.000000e+00> : vector<10x10xf32>
    %251 = tpu.matmul %248, %249, %cst_116 {dimension_numbers = #tpu.dot_dimension_numbers<[1], [1], [0], [0], [0, 0, 1, 0], [], []>} : vector<10x8xf32>, vector<10x8xf32>, vector<10x10xf32> -> vector<10x10xf32>
    %cst_117 = arith.constant 0.353553385 : f32
    %252 = vector.broadcast %cst_117 : f32 to vector<10x10xf32>
    %253 = arith.mulf %251, %252 : vector<10x10xf32>
    %254 = arith.addf %253, %16 : vector<10x10xf32>
    %cst_118 = arith.constant dense<0xFF800000> : vector<10xf32>
    %255 = vector.multi_reduction <maximumf>, %254, %cst_118 [1] : vector<10x10xf32> to vector<10xf32>
    %256 = vector.shape_cast %255 : vector<10xf32> to vector<10x1xf32>
    %257 = vector.broadcast %256 : vector<10x1xf32> to vector<10x10xf32>
    %258 = arith.subf %254, %257 : vector<10x10xf32>
    %259 = math.exp %258 : vector<10x10xf32>
    %cst_119 = arith.constant dense<0.000000e+00> : vector<10xf32>
    %260 = vector.multi_reduction <add>, %259, %cst_119 [1] : vector<10x10xf32> to vector<10xf32>
    %261 = vector.shape_cast %260 : vector<10xf32> to vector<10x1xf32>
    %262 = vector.broadcast %261 : vector<10x1xf32> to vector<10x10xf32>
    %263 = arith.divf %259, %262 : vector<10x10xf32>
    %cst_120 = arith.constant dense<0.000000e+00> : vector<10x8xf32>
    %264 = tpu.matmul %263, %250, %cst_120 {dimension_numbers = #tpu.dot_dimension_numbers<[1], [0], [0], [1], [0, 0, 1, 1], [], []>} : vector<10x10xf32>, vector<10x8xf32>, vector<10x8xf32> -> vector<10x8xf32>
    %265 = vector.extract_strided_slice %213 {offsets = [0, 24], sizes = [10, 8], strides = [1, 1]} : vector<10x96xf32> to vector<10x8xf32>
    %266 = vector.extract_strided_slice %213 {offsets = [0, 56], sizes = [10, 8], strides = [1, 1]} : vector<10x96xf32> to vector<10x8xf32>
    %267 = vector.extract_strided_slice %213 {offsets = [0, 88], sizes = [10, 8], strides = [1, 1]} : vector<10x96xf32> to vector<10x8xf32>
    %cst_121 = arith.constant dense<0.000000e+00> : vector<10x10xf32>
    %268 = tpu.matmul %265, %266, %cst_121 {dimension_numbers = #tpu.dot_dimension_numbers<[1], [1], [0], [0], [0, 0, 1, 0], [], []>} : vector<10x8xf32>, vector<10x8xf32>, vector<10x10xf32> -> vector<10x10xf32>
    %cst_122 = arith.constant 0.353553385 : f32
    %269 = vector.broadcast %cst_122 : f32 to vector<10x10xf32>
    %270 = arith.mulf %268, %269 : vector<10x10xf32>
    %271 = arith.addf %270, %16 : vector<10x10xf32>
    %cst_123 = arith.constant dense<0xFF800000> : vector<10xf32>
    %272 = vector.multi_reduction <maximumf>, %271, %cst_123 [1] : vector<10x10xf32> to vector<10xf32>
    %273 = vector.shape_cast %272 : vector<10xf32> to vector<10x1xf32>
    %274 = vector.broadcast %273 : vector<10x1xf32> to vector<10x10xf32>
    %275 = arith.subf %271, %274 : vector<10x10xf32>
    %276 = math.exp %275 : vector<10x10xf32>
    %cst_124 = arith.constant dense<0.000000e+00> : vector<10xf32>
    %277 = vector.multi_reduction <add>, %276, %cst_124 [1] : vector<10x10xf32> to vector<10xf32>
    %278 = vector.shape_cast %277 : vector<10xf32> to vector<10x1xf32>
    %279 = vector.broadcast %278 : vector<10x1xf32> to vector<10x10xf32>
    %280 = arith.divf %276, %279 : vector<10x10xf32>
    %cst_125 = arith.constant dense<0.000000e+00> : vector<10x8xf32>
    %281 = tpu.matmul %280, %267, %cst_125 {dimension_numbers = #tpu.dot_dimension_numbers<[1], [0], [0], [1], [0, 0, 1, 1], [], []>} : vector<10x10xf32>, vector<10x8xf32>, vector<10x8xf32> -> vector<10x8xf32>
    %282 = tpu.concatenate %230, %247, %264, %281 in 1 : vector<10x8xf32>, vector<10x8xf32>, vector<10x8xf32>, vector<10x8xf32> -> vector<10x32xf32>
    %c1_126 = arith.constant 1 : index
    %c0_127 = arith.constant 0 : index
    %c0_128 = arith.constant 0 : index
    %283 = vector.load %arg9[%c1_126, %c0_127, %c0_128] : memref<2x32x32xf32, #tpu.memory_space<vmem>>, vector<1x32x32xf32>
    %284 = vector.shape_cast %283 : vector<1x32x32xf32> to vector<32x32xf32>
    %cst_129 = arith.constant dense<0.000000e+00> : vector<10x32xf32>
    %285 = tpu.matmul %282, %284, %cst_129 {dimension_numbers = #tpu.dot_dimension_numbers<[1], [0], [0], [1], [0, 0, 1, 1], [], []>} : vector<10x32xf32>, vector<32x32xf32>, vector<10x32xf32> -> vector<10x32xf32>
    %286 = arith.addf %180, %285 : vector<10x32xf32>
    %c1_130 = arith.constant 1 : index
    %c0_131 = arith.constant 0 : index
    %c0_132 = arith.constant 0 : index
    %287 = vector.load %arg10[%c1_130, %c0_131, %c0_132] : memref<2x1x32xf32, #tpu.memory_space<vmem>>, vector<1x1x32xf32>
    %288 = vector.shape_cast %287 : vector<1x1x32xf32> to vector<1x32xf32>
    %289 = vector.broadcast %288 : vector<1x32xf32> to vector<10x32xf32>
    %290 = arith.addf %286, %289 : vector<10x32xf32>
    %c1_133 = arith.constant 1 : index
    %c0_134 = arith.constant 0 : index
    %c0_135 = arith.constant 0 : index
    %291 = vector.load %arg11[%c1_133, %c0_134, %c0_135] : memref<2x1x32xf32, #tpu.memory_space<vmem>>, vector<1x1x32xf32>
    %292 = vector.shape_cast %291 : vector<1x1x32xf32> to vector<1x32xf32>
    %c1_136 = arith.constant 1 : index
    %c0_137 = arith.constant 0 : index
    %c0_138 = arith.constant 0 : index
    %293 = vector.load %arg12[%c1_136, %c0_137, %c0_138] : memref<2x1x32xf32, #tpu.memory_space<vmem>>, vector<1x1x32xf32>
    %294 = vector.shape_cast %293 : vector<1x1x32xf32> to vector<1x32xf32>
    %cst_139 = arith.constant dense<0.000000e+00> : vector<10xf32>
    %295 = vector.multi_reduction <add>, %290, %cst_139 [1] : vector<10x32xf32> to vector<10xf32>
    %296 = vector.shape_cast %295 : vector<10xf32> to vector<10x1xf32>
    %cst_140 = arith.constant 3.200000e+01 : f32
    %297 = vector.broadcast %cst_140 : f32 to vector<10x1xf32>
    %298 = arith.divf %296, %297 : vector<10x1xf32>
    %299 = vector.broadcast %298 : vector<10x1xf32> to vector<10x32xf32>
    %300 = arith.subf %290, %299 : vector<10x32xf32>
    %301 = arith.mulf %300, %300 : vector<10x32xf32>
    %cst_141 = arith.constant dense<0.000000e+00> : vector<10xf32>
    %302 = vector.multi_reduction <add>, %301, %cst_141 [1] : vector<10x32xf32> to vector<10xf32>
    %303 = vector.shape_cast %302 : vector<10xf32> to vector<10x1xf32>
    %cst_142 = arith.constant 3.200000e+01 : f32
    %304 = vector.broadcast %cst_142 : f32 to vector<10x1xf32>
    %305 = arith.divf %303, %304 : vector<10x1xf32>
    %306 = vector.broadcast %298 : vector<10x1xf32> to vector<10x32xf32>
    %307 = arith.subf %290, %306 : vector<10x32xf32>
    %cst_143 = arith.constant 9.99999996E-13 : f32
    %308 = vector.broadcast %cst_143 : f32 to vector<10x1xf32>
    %309 = arith.addf %305, %308 : vector<10x1xf32>
    %310 = math.rsqrt %309 : vector<10x1xf32>
    %311 = vector.broadcast %310 : vector<10x1xf32> to vector<10x32xf32>
    %312 = arith.mulf %307, %311 : vector<10x32xf32>
    %313 = vector.broadcast %292 : vector<1x32xf32> to vector<10x32xf32>
    %314 = arith.mulf %312, %313 : vector<10x32xf32>
    %315 = vector.broadcast %294 : vector<1x32xf32> to vector<10x32xf32>
    %316 = arith.addf %314, %315 : vector<10x32xf32>
    %c1_144 = arith.constant 1 : index
    %c0_145 = arith.constant 0 : index
    %c0_146 = arith.constant 0 : index
    %317 = vector.load %arg13[%c1_144, %c0_145, %c0_146] : memref<2x32x128xf32, #tpu.memory_space<vmem>>, vector<1x32x128xf32>
    %318 = vector.shape_cast %317 : vector<1x32x128xf32> to vector<32x128xf32>
    %cst_147 = arith.constant dense<0.000000e+00> : vector<10x128xf32>
    %319 = tpu.matmul %316, %318, %cst_147 {dimension_numbers = #tpu.dot_dimension_numbers<[1], [0], [0], [1], [0, 0, 1, 1], [], []>} : vector<10x32xf32>, vector<32x128xf32>, vector<10x128xf32> -> vector<10x128xf32>
    %c1_148 = arith.constant 1 : index
    %c0_149 = arith.constant 0 : index
    %c0_150 = arith.constant 0 : index
    %320 = vector.load %arg14[%c1_148, %c0_149, %c0_150] : memref<2x1x128xf32, #tpu.memory_space<vmem>>, vector<1x1x128xf32>
    %321 = vector.shape_cast %320 : vector<1x1x128xf32> to vector<1x128xf32>
    %322 = vector.broadcast %321 : vector<1x128xf32> to vector<10x128xf32>
    %323 = arith.addf %319, %322 : vector<10x128xf32>
    %324 = arith.mulf %323, %323 : vector<10x128xf32>
    %325 = arith.mulf %323, %324 : vector<10x128xf32>
    %cst_151 = arith.constant 4.471500e-02 : f32
    %326 = vector.broadcast %cst_151 : f32 to vector<10x128xf32>
    %327 = arith.mulf %326, %325 : vector<10x128xf32>
    %328 = arith.addf %323, %327 : vector<10x128xf32>
    %cst_152 = arith.constant 0.797884583 : f32
    %329 = vector.broadcast %cst_152 : f32 to vector<10x128xf32>
    %330 = arith.mulf %329, %328 : vector<10x128xf32>
    %331 = math.tanh %330 : vector<10x128xf32>
    %cst_153 = arith.constant 1.000000e+00 : f32
    %332 = vector.broadcast %cst_153 : f32 to vector<10x128xf32>
    %333 = arith.addf %332, %331 : vector<10x128xf32>
    %cst_154 = arith.constant 5.000000e-01 : f32
    %334 = vector.broadcast %cst_154 : f32 to vector<10x128xf32>
    %335 = arith.mulf %334, %333 : vector<10x128xf32>
    %336 = arith.mulf %323, %335 : vector<10x128xf32>
    %c1_155 = arith.constant 1 : index
    %c0_156 = arith.constant 0 : index
    %c0_157 = arith.constant 0 : index
    %337 = vector.load %arg15[%c1_155, %c0_156, %c0_157] : memref<2x128x32xf32, #tpu.memory_space<vmem>>, vector<1x128x32xf32>
    %338 = vector.shape_cast %337 : vector<1x128x32xf32> to vector<128x32xf32>
    %cst_158 = arith.constant dense<0.000000e+00> : vector<10x32xf32>
    %339 = tpu.matmul %336, %338, %cst_158 {dimension_numbers = #tpu.dot_dimension_numbers<[1], [0], [0], [1], [0, 0, 1, 1], [], []>} : vector<10x128xf32>, vector<128x32xf32>, vector<10x32xf32> -> vector<10x32xf32>
    %340 = arith.addf %290, %339 : vector<10x32xf32>
    %c1_159 = arith.constant 1 : index
    %c0_160 = arith.constant 0 : index
    %c0_161 = arith.constant 0 : index
    %341 = vector.load %arg16[%c1_159, %c0_160, %c0_161] : memref<2x1x32xf32, #tpu.memory_space<vmem>>, vector<1x1x32xf32>
    %342 = vector.shape_cast %341 : vector<1x1x32xf32> to vector<1x32xf32>
    %343 = vector.broadcast %342 : vector<1x32xf32> to vector<10x32xf32>
    %344 = arith.addf %340, %343 : vector<10x32xf32>
    %c0_162 = arith.constant 0 : index
    %c0_163 = arith.constant 0 : index
    %345 = vector.load %arg17[%c0_162, %c0_163] : memref<1x32xf32, #tpu.memory_space<vmem>>, vector<1x32xf32>
    %c0_164 = arith.constant 0 : index
    %c0_165 = arith.constant 0 : index
    %346 = vector.load %arg18[%c0_164, %c0_165] : memref<1x32xf32, #tpu.memory_space<vmem>>, vector<1x32xf32>
    %cst_166 = arith.constant dense<0.000000e+00> : vector<10xf32>
    %347 = vector.multi_reduction <add>, %344, %cst_166 [1] : vector<10x32xf32> to vector<10xf32>
    %348 = vector.shape_cast %347 : vector<10xf32> to vector<10x1xf32>
    %cst_167 = arith.constant 3.200000e+01 : f32
    %349 = vector.broadcast %cst_167 : f32 to vector<10x1xf32>
    %350 = arith.divf %348, %349 : vector<10x1xf32>
    %351 = vector.broadcast %350 : vector<10x1xf32> to vector<10x32xf32>
    %352 = arith.subf %344, %351 : vector<10x32xf32>
    %353 = arith.mulf %352, %352 : vector<10x32xf32>
    %cst_168 = arith.constant dense<0.000000e+00> : vector<10xf32>
    %354 = vector.multi_reduction <add>, %353, %cst_168 [1] : vector<10x32xf32> to vector<10xf32>
    %355 = vector.shape_cast %354 : vector<10xf32> to vector<10x1xf32>
    %cst_169 = arith.constant 3.200000e+01 : f32
    %356 = vector.broadcast %cst_169 : f32 to vector<10x1xf32>
    %357 = arith.divf %355, %356 : vector<10x1xf32>
    %358 = vector.broadcast %350 : vector<10x1xf32> to vector<10x32xf32>
    %359 = arith.subf %344, %358 : vector<10x32xf32>
    %cst_170 = arith.constant 9.99999996E-13 : f32
    %360 = vector.broadcast %cst_170 : f32 to vector<10x1xf32>
    %361 = arith.addf %357, %360 : vector<10x1xf32>
    %362 = math.rsqrt %361 : vector<10x1xf32>
    %363 = vector.broadcast %362 : vector<10x1xf32> to vector<10x32xf32>
    %364 = arith.mulf %359, %363 : vector<10x32xf32>
    %365 = vector.broadcast %345 : vector<1x32xf32> to vector<10x32xf32>
    %366 = arith.mulf %364, %365 : vector<10x32xf32>
    %367 = vector.broadcast %346 : vector<1x32xf32> to vector<10x32xf32>
    %368 = arith.addf %366, %367 : vector<10x32xf32>
    %c0_171 = arith.constant 0 : index
    %c0_172 = arith.constant 0 : index
    %369 = vector.load %arg20[%c0_171, %c0_172] : memref<2x10xf32, #tpu.memory_space<vmem>>, vector<2x10xf32>
    %cst_173 = arith.constant dense<0.000000e+00> : vector<2x32xf32>
    %370 = tpu.matmul %369, %368, %cst_173 {dimension_numbers = #tpu.dot_dimension_numbers<[1], [0], [0], [1], [0, 0, 1, 1], [], []>} : vector<2x10xf32>, vector<10x32xf32>, vector<2x32xf32> -> vector<2x32xf32>
    %c0_174 = arith.constant 0 : index
    %c0_175 = arith.constant 0 : index
    %371 = vector.load %arg21[%c0_174, %c0_175] : memref<16x32xf32, #tpu.memory_space<vmem>>, vector<16x32xf32>
    %c0_176 = arith.constant 0 : index
    %c0_177 = arith.constant 0 : index
    %372 = vector.load %arg22[%c0_176, %c0_177] : memref<32x128xf32, #tpu.memory_space<vmem>>, vector<32x128xf32>
    %cst_178 = arith.constant dense<0.000000e+00> : vector<16x128xf32>
    %373 = tpu.matmul %371, %372, %cst_178 {dimension_numbers = #tpu.dot_dimension_numbers<[1], [0], [0], [1], [0, 0, 1, 1], [], []>} : vector<16x32xf32>, vector<32x128xf32>, vector<16x128xf32> -> vector<16x128xf32>
    %c0_179 = arith.constant 0 : index
    %c0_180 = arith.constant 0 : index
    %374 = vector.load %arg23[%c0_179, %c0_180] : memref<1x128xf32, #tpu.memory_space<vmem>>, vector<1x128xf32>
    %375 = vector.broadcast %374 : vector<1x128xf32> to vector<16x128xf32>
    %376 = arith.addf %373, %375 : vector<16x128xf32>
    %377 = vector.extract_strided_slice %376 {offsets = [0, 0], sizes = [2, 128], strides = [1, 1]} : vector<16x128xf32> to vector<2x128xf32>
    %c0_181 = arith.constant 0 : index
    %c0_182 = arith.constant 0 : index
    %378 = vector.load %arg24[%c0_181, %c0_182] : memref<32x128xf32, #tpu.memory_space<vmem>>, vector<32x128xf32>
    %cst_183 = arith.constant dense<0.000000e+00> : vector<2x128xf32>
    %379 = tpu.matmul %370, %378, %cst_183 {dimension_numbers = #tpu.dot_dimension_numbers<[1], [0], [0], [1], [0, 0, 1, 1], [], []>} : vector<2x32xf32>, vector<32x128xf32>, vector<2x128xf32> -> vector<2x128xf32>
    %c0_184 = arith.constant 0 : index
    %c0_185 = arith.constant 0 : index
    %380 = vector.load %arg25[%c0_184, %c0_185] : memref<1x128xf32, #tpu.memory_space<vmem>>, vector<1x128xf32>
    %381 = vector.broadcast %380 : vector<1x128xf32> to vector<2x128xf32>
    %382 = arith.addf %379, %381 : vector<2x128xf32>
    %383 = vector.extract_strided_slice %377 {offsets = [0, 0], sizes = [2, 32], strides = [1, 1]} : vector<2x128xf32> to vector<2x32xf32>
    %384 = vector.extract_strided_slice %382 {offsets = [0, 0], sizes = [2, 32], strides = [1, 1]} : vector<2x128xf32> to vector<2x32xf32>
    %385 = arith.addf %383, %384 : vector<2x32xf32>
    %386 = arith.negf %385 : vector<2x32xf32>
    %387 = math.exp %386 : vector<2x32xf32>
    %cst_186 = arith.constant 1.000000e+00 : f32
    %388 = vector.broadcast %cst_186 : f32 to vector<2x32xf32>
    %389 = arith.addf %388, %387 : vector<2x32xf32>
    %390 = arith.divf %388, %389 : vector<2x32xf32>
    %391 = vector.extract_strided_slice %377 {offsets = [0, 32], sizes = [2, 32], strides = [1, 1]} : vector<2x128xf32> to vector<2x32xf32>
    %392 = vector.extract_strided_slice %382 {offsets = [0, 32], sizes = [2, 32], strides = [1, 1]} : vector<2x128xf32> to vector<2x32xf32>
    %393 = arith.addf %391, %392 : vector<2x32xf32>
    %394 = arith.negf %393 : vector<2x32xf32>
    %395 = math.exp %394 : vector<2x32xf32>
    %cst_187 = arith.constant 1.000000e+00 : f32
    %396 = vector.broadcast %cst_187 : f32 to vector<2x32xf32>
    %397 = arith.addf %396, %395 : vector<2x32xf32>
    %398 = arith.divf %396, %397 : vector<2x32xf32>
    %399 = vector.extract_strided_slice %377 {offsets = [0, 64], sizes = [2, 32], strides = [1, 1]} : vector<2x128xf32> to vector<2x32xf32>
    %400 = vector.extract_strided_slice %382 {offsets = [0, 64], sizes = [2, 32], strides = [1, 1]} : vector<2x128xf32> to vector<2x32xf32>
    %401 = arith.mulf %390, %400 : vector<2x32xf32>
    %402 = arith.addf %399, %401 : vector<2x32xf32>
    %403 = math.tanh %402 : vector<2x32xf32>
    %cst_188 = arith.constant 1.000000e+00 : f32
    %404 = vector.broadcast %cst_188 : f32 to vector<2x32xf32>
    %405 = arith.subf %404, %398 : vector<2x32xf32>
    %406 = arith.mulf %405, %403 : vector<2x32xf32>
    %407 = arith.mulf %398, %370 : vector<2x32xf32>
    %408 = arith.addf %406, %407 : vector<2x32xf32>
    %409 = vector.extract_strided_slice %376 {offsets = [2, 0], sizes = [2, 128], strides = [1, 1]} : vector<16x128xf32> to vector<2x128xf32>
    %c0_189 = arith.constant 0 : index
    %c0_190 = arith.constant 0 : index
    %410 = vector.load %arg24[%c0_189, %c0_190] : memref<32x128xf32, #tpu.memory_space<vmem>>, vector<32x128xf32>
    %cst_191 = arith.constant dense<0.000000e+00> : vector<2x128xf32>
    %411 = tpu.matmul %408, %410, %cst_191 {dimension_numbers = #tpu.dot_dimension_numbers<[1], [0], [0], [1], [0, 0, 1, 1], [], []>} : vector<2x32xf32>, vector<32x128xf32>, vector<2x128xf32> -> vector<2x128xf32>
    %c0_192 = arith.constant 0 : index
    %c0_193 = arith.constant 0 : index
    %412 = vector.load %arg25[%c0_192, %c0_193] : memref<1x128xf32, #tpu.memory_space<vmem>>, vector<1x128xf32>
    %413 = vector.broadcast %412 : vector<1x128xf32> to vector<2x128xf32>
    %414 = arith.addf %411, %413 : vector<2x128xf32>
    %415 = vector.extract_strided_slice %409 {offsets = [0, 0], sizes = [2, 32], strides = [1, 1]} : vector<2x128xf32> to vector<2x32xf32>
    %416 = vector.extract_strided_slice %414 {offsets = [0, 0], sizes = [2, 32], strides = [1, 1]} : vector<2x128xf32> to vector<2x32xf32>
    %417 = arith.addf %415, %416 : vector<2x32xf32>
    %418 = arith.negf %417 : vector<2x32xf32>
    %419 = math.exp %418 : vector<2x32xf32>
    %cst_194 = arith.constant 1.000000e+00 : f32
    %420 = vector.broadcast %cst_194 : f32 to vector<2x32xf32>
    %421 = arith.addf %420, %419 : vector<2x32xf32>
    %422 = arith.divf %420, %421 : vector<2x32xf32>
    %423 = vector.extract_strided_slice %409 {offsets = [0, 32], sizes = [2, 32], strides = [1, 1]} : vector<2x128xf32> to vector<2x32xf32>
    %424 = vector.extract_strided_slice %414 {offsets = [0, 32], sizes = [2, 32], strides = [1, 1]} : vector<2x128xf32> to vector<2x32xf32>
    %425 = arith.addf %423, %424 : vector<2x32xf32>
    %426 = arith.negf %425 : vector<2x32xf32>
    %427 = math.exp %426 : vector<2x32xf32>
    %cst_195 = arith.constant 1.000000e+00 : f32
    %428 = vector.broadcast %cst_195 : f32 to vector<2x32xf32>
    %429 = arith.addf %428, %427 : vector<2x32xf32>
    %430 = arith.divf %428, %429 : vector<2x32xf32>
    %431 = vector.extract_strided_slice %409 {offsets = [0, 64], sizes = [2, 32], strides = [1, 1]} : vector<2x128xf32> to vector<2x32xf32>
    %432 = vector.extract_strided_slice %414 {offsets = [0, 64], sizes = [2, 32], strides = [1, 1]} : vector<2x128xf32> to vector<2x32xf32>
    %433 = arith.mulf %422, %432 : vector<2x32xf32>
    %434 = arith.addf %431, %433 : vector<2x32xf32>
    %435 = math.tanh %434 : vector<2x32xf32>
    %cst_196 = arith.constant 1.000000e+00 : f32
    %436 = vector.broadcast %cst_196 : f32 to vector<2x32xf32>
    %437 = arith.subf %436, %430 : vector<2x32xf32>
    %438 = arith.mulf %437, %435 : vector<2x32xf32>
    %439 = arith.mulf %430, %408 : vector<2x32xf32>
    %440 = arith.addf %438, %439 : vector<2x32xf32>
    %441 = vector.extract_strided_slice %376 {offsets = [4, 0], sizes = [2, 128], strides = [1, 1]} : vector<16x128xf32> to vector<2x128xf32>
    %c0_197 = arith.constant 0 : index
    %c0_198 = arith.constant 0 : index
    %442 = vector.load %arg24[%c0_197, %c0_198] : memref<32x128xf32, #tpu.memory_space<vmem>>, vector<32x128xf32>
    %cst_199 = arith.constant dense<0.000000e+00> : vector<2x128xf32>
    %443 = tpu.matmul %440, %442, %cst_199 {dimension_numbers = #tpu.dot_dimension_numbers<[1], [0], [0], [1], [0, 0, 1, 1], [], []>} : vector<2x32xf32>, vector<32x128xf32>, vector<2x128xf32> -> vector<2x128xf32>
    %c0_200 = arith.constant 0 : index
    %c0_201 = arith.constant 0 : index
    %444 = vector.load %arg25[%c0_200, %c0_201] : memref<1x128xf32, #tpu.memory_space<vmem>>, vector<1x128xf32>
    %445 = vector.broadcast %444 : vector<1x128xf32> to vector<2x128xf32>
    %446 = arith.addf %443, %445 : vector<2x128xf32>
    %447 = vector.extract_strided_slice %441 {offsets = [0, 0], sizes = [2, 32], strides = [1, 1]} : vector<2x128xf32> to vector<2x32xf32>
    %448 = vector.extract_strided_slice %446 {offsets = [0, 0], sizes = [2, 32], strides = [1, 1]} : vector<2x128xf32> to vector<2x32xf32>
    %449 = arith.addf %447, %448 : vector<2x32xf32>
    %450 = arith.negf %449 : vector<2x32xf32>
    %451 = math.exp %450 : vector<2x32xf32>
    %cst_202 = arith.constant 1.000000e+00 : f32
    %452 = vector.broadcast %cst_202 : f32 to vector<2x32xf32>
    %453 = arith.addf %452, %451 : vector<2x32xf32>
    %454 = arith.divf %452, %453 : vector<2x32xf32>
    %455 = vector.extract_strided_slice %441 {offsets = [0, 32], sizes = [2, 32], strides = [1, 1]} : vector<2x128xf32> to vector<2x32xf32>
    %456 = vector.extract_strided_slice %446 {offsets = [0, 32], sizes = [2, 32], strides = [1, 1]} : vector<2x128xf32> to vector<2x32xf32>
    %457 = arith.addf %455, %456 : vector<2x32xf32>
    %458 = arith.negf %457 : vector<2x32xf32>
    %459 = math.exp %458 : vector<2x32xf32>
    %cst_203 = arith.constant 1.000000e+00 : f32
    %460 = vector.broadcast %cst_203 : f32 to vector<2x32xf32>
    %461 = arith.addf %460, %459 : vector<2x32xf32>
    %462 = arith.divf %460, %461 : vector<2x32xf32>
    %463 = vector.extract_strided_slice %441 {offsets = [0, 64], sizes = [2, 32], strides = [1, 1]} : vector<2x128xf32> to vector<2x32xf32>
    %464 = vector.extract_strided_slice %446 {offsets = [0, 64], sizes = [2, 32], strides = [1, 1]} : vector<2x128xf32> to vector<2x32xf32>
    %465 = arith.mulf %454, %464 : vector<2x32xf32>
    %466 = arith.addf %463, %465 : vector<2x32xf32>
    %467 = math.tanh %466 : vector<2x32xf32>
    %cst_204 = arith.constant 1.000000e+00 : f32
    %468 = vector.broadcast %cst_204 : f32 to vector<2x32xf32>
    %469 = arith.subf %468, %462 : vector<2x32xf32>
    %470 = arith.mulf %469, %467 : vector<2x32xf32>
    %471 = arith.mulf %462, %440 : vector<2x32xf32>
    %472 = arith.addf %470, %471 : vector<2x32xf32>
    %473 = vector.extract_strided_slice %376 {offsets = [6, 0], sizes = [2, 128], strides = [1, 1]} : vector<16x128xf32> to vector<2x128xf32>
    %c0_205 = arith.constant 0 : index
    %c0_206 = arith.constant 0 : index
    %474 = vector.load %arg24[%c0_205, %c0_206] : memref<32x128xf32, #tpu.memory_space<vmem>>, vector<32x128xf32>
    %cst_207 = arith.constant dense<0.000000e+00> : vector<2x128xf32>
    %475 = tpu.matmul %472, %474, %cst_207 {dimension_numbers = #tpu.dot_dimension_numbers<[1], [0], [0], [1], [0, 0, 1, 1], [], []>} : vector<2x32xf32>, vector<32x128xf32>, vector<2x128xf32> -> vector<2x128xf32>
    %c0_208 = arith.constant 0 : index
    %c0_209 = arith.constant 0 : index
    %476 = vector.load %arg25[%c0_208, %c0_209] : memref<1x128xf32, #tpu.memory_space<vmem>>, vector<1x128xf32>
    %477 = vector.broadcast %476 : vector<1x128xf32> to vector<2x128xf32>
    %478 = arith.addf %475, %477 : vector<2x128xf32>
    %479 = vector.extract_strided_slice %473 {offsets = [0, 0], sizes = [2, 32], strides = [1, 1]} : vector<2x128xf32> to vector<2x32xf32>
    %480 = vector.extract_strided_slice %478 {offsets = [0, 0], sizes = [2, 32], strides = [1, 1]} : vector<2x128xf32> to vector<2x32xf32>
    %481 = arith.addf %479, %480 : vector<2x32xf32>
    %482 = arith.negf %481 : vector<2x32xf32>
    %483 = math.exp %482 : vector<2x32xf32>
    %cst_210 = arith.constant 1.000000e+00 : f32
    %484 = vector.broadcast %cst_210 : f32 to vector<2x32xf32>
    %485 = arith.addf %484, %483 : vector<2x32xf32>
    %486 = arith.divf %484, %485 : vector<2x32xf32>
    %487 = vector.extract_strided_slice %473 {offsets = [0, 32], sizes = [2, 32], strides = [1, 1]} : vector<2x128xf32> to vector<2x32xf32>
    %488 = vector.extract_strided_slice %478 {offsets = [0, 32], sizes = [2, 32], strides = [1, 1]} : vector<2x128xf32> to vector<2x32xf32>
    %489 = arith.addf %487, %488 : vector<2x32xf32>
    %490 = arith.negf %489 : vector<2x32xf32>
    %491 = math.exp %490 : vector<2x32xf32>
    %cst_211 = arith.constant 1.000000e+00 : f32
    %492 = vector.broadcast %cst_211 : f32 to vector<2x32xf32>
    %493 = arith.addf %492, %491 : vector<2x32xf32>
    %494 = arith.divf %492, %493 : vector<2x32xf32>
    %495 = vector.extract_strided_slice %473 {offsets = [0, 64], sizes = [2, 32], strides = [1, 1]} : vector<2x128xf32> to vector<2x32xf32>
    %496 = vector.extract_strided_slice %478 {offsets = [0, 64], sizes = [2, 32], strides = [1, 1]} : vector<2x128xf32> to vector<2x32xf32>
    %497 = arith.mulf %486, %496 : vector<2x32xf32>
    %498 = arith.addf %495, %497 : vector<2x32xf32>
    %499 = math.tanh %498 : vector<2x32xf32>
    %cst_212 = arith.constant 1.000000e+00 : f32
    %500 = vector.broadcast %cst_212 : f32 to vector<2x32xf32>
    %501 = arith.subf %500, %494 : vector<2x32xf32>
    %502 = arith.mulf %501, %499 : vector<2x32xf32>
    %503 = arith.mulf %494, %472 : vector<2x32xf32>
    %504 = arith.addf %502, %503 : vector<2x32xf32>
    %505 = vector.extract_strided_slice %376 {offsets = [8, 0], sizes = [2, 128], strides = [1, 1]} : vector<16x128xf32> to vector<2x128xf32>
    %c0_213 = arith.constant 0 : index
    %c0_214 = arith.constant 0 : index
    %506 = vector.load %arg24[%c0_213, %c0_214] : memref<32x128xf32, #tpu.memory_space<vmem>>, vector<32x128xf32>
    %cst_215 = arith.constant dense<0.000000e+00> : vector<2x128xf32>
    %507 = tpu.matmul %504, %506, %cst_215 {dimension_numbers = #tpu.dot_dimension_numbers<[1], [0], [0], [1], [0, 0, 1, 1], [], []>} : vector<2x32xf32>, vector<32x128xf32>, vector<2x128xf32> -> vector<2x128xf32>
    %c0_216 = arith.constant 0 : index
    %c0_217 = arith.constant 0 : index
    %508 = vector.load %arg25[%c0_216, %c0_217] : memref<1x128xf32, #tpu.memory_space<vmem>>, vector<1x128xf32>
    %509 = vector.broadcast %508 : vector<1x128xf32> to vector<2x128xf32>
    %510 = arith.addf %507, %509 : vector<2x128xf32>
    %511 = vector.extract_strided_slice %505 {offsets = [0, 0], sizes = [2, 32], strides = [1, 1]} : vector<2x128xf32> to vector<2x32xf32>
    %512 = vector.extract_strided_slice %510 {offsets = [0, 0], sizes = [2, 32], strides = [1, 1]} : vector<2x128xf32> to vector<2x32xf32>
    %513 = arith.addf %511, %512 : vector<2x32xf32>
    %514 = arith.negf %513 : vector<2x32xf32>
    %515 = math.exp %514 : vector<2x32xf32>
    %cst_218 = arith.constant 1.000000e+00 : f32
    %516 = vector.broadcast %cst_218 : f32 to vector<2x32xf32>
    %517 = arith.addf %516, %515 : vector<2x32xf32>
    %518 = arith.divf %516, %517 : vector<2x32xf32>
    %519 = vector.extract_strided_slice %505 {offsets = [0, 32], sizes = [2, 32], strides = [1, 1]} : vector<2x128xf32> to vector<2x32xf32>
    %520 = vector.extract_strided_slice %510 {offsets = [0, 32], sizes = [2, 32], strides = [1, 1]} : vector<2x128xf32> to vector<2x32xf32>
    %521 = arith.addf %519, %520 : vector<2x32xf32>
    %522 = arith.negf %521 : vector<2x32xf32>
    %523 = math.exp %522 : vector<2x32xf32>
    %cst_219 = arith.constant 1.000000e+00 : f32
    %524 = vector.broadcast %cst_219 : f32 to vector<2x32xf32>
    %525 = arith.addf %524, %523 : vector<2x32xf32>
    %526 = arith.divf %524, %525 : vector<2x32xf32>
    %527 = vector.extract_strided_slice %505 {offsets = [0, 64], sizes = [2, 32], strides = [1, 1]} : vector<2x128xf32> to vector<2x32xf32>
    %528 = vector.extract_strided_slice %510 {offsets = [0, 64], sizes = [2, 32], strides = [1, 1]} : vector<2x128xf32> to vector<2x32xf32>
    %529 = arith.mulf %518, %528 : vector<2x32xf32>
    %530 = arith.addf %527, %529 : vector<2x32xf32>
    %531 = math.tanh %530 : vector<2x32xf32>
    %cst_220 = arith.constant 1.000000e+00 : f32
    %532 = vector.broadcast %cst_220 : f32 to vector<2x32xf32>
    %533 = arith.subf %532, %526 : vector<2x32xf32>
    %534 = arith.mulf %533, %531 : vector<2x32xf32>
    %535 = arith.mulf %526, %504 : vector<2x32xf32>
    %536 = arith.addf %534, %535 : vector<2x32xf32>
    %537 = vector.extract_strided_slice %376 {offsets = [10, 0], sizes = [2, 128], strides = [1, 1]} : vector<16x128xf32> to vector<2x128xf32>
    %c0_221 = arith.constant 0 : index
    %c0_222 = arith.constant 0 : index
    %538 = vector.load %arg24[%c0_221, %c0_222] : memref<32x128xf32, #tpu.memory_space<vmem>>, vector<32x128xf32>
    %cst_223 = arith.constant dense<0.000000e+00> : vector<2x128xf32>
    %539 = tpu.matmul %536, %538, %cst_223 {dimension_numbers = #tpu.dot_dimension_numbers<[1], [0], [0], [1], [0, 0, 1, 1], [], []>} : vector<2x32xf32>, vector<32x128xf32>, vector<2x128xf32> -> vector<2x128xf32>
    %c0_224 = arith.constant 0 : index
    %c0_225 = arith.constant 0 : index
    %540 = vector.load %arg25[%c0_224, %c0_225] : memref<1x128xf32, #tpu.memory_space<vmem>>, vector<1x128xf32>
    %541 = vector.broadcast %540 : vector<1x128xf32> to vector<2x128xf32>
    %542 = arith.addf %539, %541 : vector<2x128xf32>
    %543 = vector.extract_strided_slice %537 {offsets = [0, 0], sizes = [2, 32], strides = [1, 1]} : vector<2x128xf32> to vector<2x32xf32>
    %544 = vector.extract_strided_slice %542 {offsets = [0, 0], sizes = [2, 32], strides = [1, 1]} : vector<2x128xf32> to vector<2x32xf32>
    %545 = arith.addf %543, %544 : vector<2x32xf32>
    %546 = arith.negf %545 : vector<2x32xf32>
    %547 = math.exp %546 : vector<2x32xf32>
    %cst_226 = arith.constant 1.000000e+00 : f32
    %548 = vector.broadcast %cst_226 : f32 to vector<2x32xf32>
    %549 = arith.addf %548, %547 : vector<2x32xf32>
    %550 = arith.divf %548, %549 : vector<2x32xf32>
    %551 = vector.extract_strided_slice %537 {offsets = [0, 32], sizes = [2, 32], strides = [1, 1]} : vector<2x128xf32> to vector<2x32xf32>
    %552 = vector.extract_strided_slice %542 {offsets = [0, 32], sizes = [2, 32], strides = [1, 1]} : vector<2x128xf32> to vector<2x32xf32>
    %553 = arith.addf %551, %552 : vector<2x32xf32>
    %554 = arith.negf %553 : vector<2x32xf32>
    %555 = math.exp %554 : vector<2x32xf32>
    %cst_227 = arith.constant 1.000000e+00 : f32
    %556 = vector.broadcast %cst_227 : f32 to vector<2x32xf32>
    %557 = arith.addf %556, %555 : vector<2x32xf32>
    %558 = arith.divf %556, %557 : vector<2x32xf32>
    %559 = vector.extract_strided_slice %537 {offsets = [0, 64], sizes = [2, 32], strides = [1, 1]} : vector<2x128xf32> to vector<2x32xf32>
    %560 = vector.extract_strided_slice %542 {offsets = [0, 64], sizes = [2, 32], strides = [1, 1]} : vector<2x128xf32> to vector<2x32xf32>
    %561 = arith.mulf %550, %560 : vector<2x32xf32>
    %562 = arith.addf %559, %561 : vector<2x32xf32>
    %563 = math.tanh %562 : vector<2x32xf32>
    %cst_228 = arith.constant 1.000000e+00 : f32
    %564 = vector.broadcast %cst_228 : f32 to vector<2x32xf32>
    %565 = arith.subf %564, %558 : vector<2x32xf32>
    %566 = arith.mulf %565, %563 : vector<2x32xf32>
    %567 = arith.mulf %558, %536 : vector<2x32xf32>
    %568 = arith.addf %566, %567 : vector<2x32xf32>
    %569 = vector.extract_strided_slice %376 {offsets = [12, 0], sizes = [2, 128], strides = [1, 1]} : vector<16x128xf32> to vector<2x128xf32>
    %c0_229 = arith.constant 0 : index
    %c0_230 = arith.constant 0 : index
    %570 = vector.load %arg24[%c0_229, %c0_230] : memref<32x128xf32, #tpu.memory_space<vmem>>, vector<32x128xf32>
    %cst_231 = arith.constant dense<0.000000e+00> : vector<2x128xf32>
    %571 = tpu.matmul %568, %570, %cst_231 {dimension_numbers = #tpu.dot_dimension_numbers<[1], [0], [0], [1], [0, 0, 1, 1], [], []>} : vector<2x32xf32>, vector<32x128xf32>, vector<2x128xf32> -> vector<2x128xf32>
    %c0_232 = arith.constant 0 : index
    %c0_233 = arith.constant 0 : index
    %572 = vector.load %arg25[%c0_232, %c0_233] : memref<1x128xf32, #tpu.memory_space<vmem>>, vector<1x128xf32>
    %573 = vector.broadcast %572 : vector<1x128xf32> to vector<2x128xf32>
    %574 = arith.addf %571, %573 : vector<2x128xf32>
    %575 = vector.extract_strided_slice %569 {offsets = [0, 0], sizes = [2, 32], strides = [1, 1]} : vector<2x128xf32> to vector<2x32xf32>
    %576 = vector.extract_strided_slice %574 {offsets = [0, 0], sizes = [2, 32], strides = [1, 1]} : vector<2x128xf32> to vector<2x32xf32>
    %577 = arith.addf %575, %576 : vector<2x32xf32>
    %578 = arith.negf %577 : vector<2x32xf32>
    %579 = math.exp %578 : vector<2x32xf32>
    %cst_234 = arith.constant 1.000000e+00 : f32
    %580 = vector.broadcast %cst_234 : f32 to vector<2x32xf32>
    %581 = arith.addf %580, %579 : vector<2x32xf32>
    %582 = arith.divf %580, %581 : vector<2x32xf32>
    %583 = vector.extract_strided_slice %569 {offsets = [0, 32], sizes = [2, 32], strides = [1, 1]} : vector<2x128xf32> to vector<2x32xf32>
    %584 = vector.extract_strided_slice %574 {offsets = [0, 32], sizes = [2, 32], strides = [1, 1]} : vector<2x128xf32> to vector<2x32xf32>
    %585 = arith.addf %583, %584 : vector<2x32xf32>
    %586 = arith.negf %585 : vector<2x32xf32>
    %587 = math.exp %586 : vector<2x32xf32>
    %cst_235 = arith.constant 1.000000e+00 : f32
    %588 = vector.broadcast %cst_235 : f32 to vector<2x32xf32>
    %589 = arith.addf %588, %587 : vector<2x32xf32>
    %590 = arith.divf %588, %589 : vector<2x32xf32>
    %591 = vector.extract_strided_slice %569 {offsets = [0, 64], sizes = [2, 32], strides = [1, 1]} : vector<2x128xf32> to vector<2x32xf32>
    %592 = vector.extract_strided_slice %574 {offsets = [0, 64], sizes = [2, 32], strides = [1, 1]} : vector<2x128xf32> to vector<2x32xf32>
    %593 = arith.mulf %582, %592 : vector<2x32xf32>
    %594 = arith.addf %591, %593 : vector<2x32xf32>
    %595 = math.tanh %594 : vector<2x32xf32>
    %cst_236 = arith.constant 1.000000e+00 : f32
    %596 = vector.broadcast %cst_236 : f32 to vector<2x32xf32>
    %597 = arith.subf %596, %590 : vector<2x32xf32>
    %598 = arith.mulf %597, %595 : vector<2x32xf32>
    %599 = arith.mulf %590, %568 : vector<2x32xf32>
    %600 = arith.addf %598, %599 : vector<2x32xf32>
    %601 = vector.extract_strided_slice %376 {offsets = [14, 0], sizes = [2, 128], strides = [1, 1]} : vector<16x128xf32> to vector<2x128xf32>
    %c0_237 = arith.constant 0 : index
    %c0_238 = arith.constant 0 : index
    %602 = vector.load %arg24[%c0_237, %c0_238] : memref<32x128xf32, #tpu.memory_space<vmem>>, vector<32x128xf32>
    %cst_239 = arith.constant dense<0.000000e+00> : vector<2x128xf32>
    %603 = tpu.matmul %600, %602, %cst_239 {dimension_numbers = #tpu.dot_dimension_numbers<[1], [0], [0], [1], [0, 0, 1, 1], [], []>} : vector<2x32xf32>, vector<32x128xf32>, vector<2x128xf32> -> vector<2x128xf32>
    %c0_240 = arith.constant 0 : index
    %c0_241 = arith.constant 0 : index
    %604 = vector.load %arg25[%c0_240, %c0_241] : memref<1x128xf32, #tpu.memory_space<vmem>>, vector<1x128xf32>
    %605 = vector.broadcast %604 : vector<1x128xf32> to vector<2x128xf32>
    %606 = arith.addf %603, %605 : vector<2x128xf32>
    %607 = vector.extract_strided_slice %601 {offsets = [0, 0], sizes = [2, 32], strides = [1, 1]} : vector<2x128xf32> to vector<2x32xf32>
    %608 = vector.extract_strided_slice %606 {offsets = [0, 0], sizes = [2, 32], strides = [1, 1]} : vector<2x128xf32> to vector<2x32xf32>
    %609 = arith.addf %607, %608 : vector<2x32xf32>
    %610 = arith.negf %609 : vector<2x32xf32>
    %611 = math.exp %610 : vector<2x32xf32>
    %cst_242 = arith.constant 1.000000e+00 : f32
    %612 = vector.broadcast %cst_242 : f32 to vector<2x32xf32>
    %613 = arith.addf %612, %611 : vector<2x32xf32>
    %614 = arith.divf %612, %613 : vector<2x32xf32>
    %615 = vector.extract_strided_slice %601 {offsets = [0, 32], sizes = [2, 32], strides = [1, 1]} : vector<2x128xf32> to vector<2x32xf32>
    %616 = vector.extract_strided_slice %606 {offsets = [0, 32], sizes = [2, 32], strides = [1, 1]} : vector<2x128xf32> to vector<2x32xf32>
    %617 = arith.addf %615, %616 : vector<2x32xf32>
    %618 = arith.negf %617 : vector<2x32xf32>
    %619 = math.exp %618 : vector<2x32xf32>
    %cst_243 = arith.constant 1.000000e+00 : f32
    %620 = vector.broadcast %cst_243 : f32 to vector<2x32xf32>
    %621 = arith.addf %620, %619 : vector<2x32xf32>
    %622 = arith.divf %620, %621 : vector<2x32xf32>
    %623 = vector.extract_strided_slice %601 {offsets = [0, 64], sizes = [2, 32], strides = [1, 1]} : vector<2x128xf32> to vector<2x32xf32>
    %624 = vector.extract_strided_slice %606 {offsets = [0, 64], sizes = [2, 32], strides = [1, 1]} : vector<2x128xf32> to vector<2x32xf32>
    %625 = arith.mulf %614, %624 : vector<2x32xf32>
    %626 = arith.addf %623, %625 : vector<2x32xf32>
    %627 = math.tanh %626 : vector<2x32xf32>
    %cst_244 = arith.constant 1.000000e+00 : f32
    %628 = vector.broadcast %cst_244 : f32 to vector<2x32xf32>
    %629 = arith.subf %628, %622 : vector<2x32xf32>
    %630 = arith.mulf %629, %627 : vector<2x32xf32>
    %631 = arith.mulf %622, %600 : vector<2x32xf32>
    %632 = arith.addf %630, %631 : vector<2x32xf32>
    %633 = tpu.concatenate %408, %440, %472, %504, %536, %568, %600, %632 in 0 : vector<2x32xf32>, vector<2x32xf32>, vector<2x32xf32>, vector<2x32xf32>, vector<2x32xf32>, vector<2x32xf32>, vector<2x32xf32>, vector<2x32xf32> -> vector<16x32xf32>
    %c0_245 = arith.constant 0 : index
    %c0_246 = arith.constant 0 : index
    %634 = vector.load %arg26[%c0_245, %c0_246] : memref<32x128xf32, #tpu.memory_space<vmem>>, vector<32x128xf32>
    %cst_247 = arith.constant dense<0.000000e+00> : vector<16x128xf32>
    %635 = tpu.matmul %633, %634, %cst_247 {dimension_numbers = #tpu.dot_dimension_numbers<[1], [0], [0], [1], [0, 0, 1, 1], [], []>} : vector<16x32xf32>, vector<32x128xf32>, vector<16x128xf32> -> vector<16x128xf32>
    %c0_248 = arith.constant 0 : index
    %c0_249 = arith.constant 0 : index
    %636 = vector.load %arg27[%c0_248, %c0_249] : memref<1x128xf32, #tpu.memory_space<vmem>>, vector<1x128xf32>
    %637 = vector.broadcast %636 : vector<1x128xf32> to vector<16x128xf32>
    %638 = arith.addf %635, %637 : vector<16x128xf32>
    %c0_250 = arith.constant 0 : index
    %c0_251 = arith.constant 0 : index
    %639 = vector.load %arg28[%c0_250, %c0_251] : memref<16x128xf32, #tpu.memory_space<vmem>>, vector<16x128xf32>
    tpu.vector_store %arg28[%c0_250, %c0_251], %638 {strides = array<i32>} : memref<16x128xf32, #tpu.memory_space<vmem>>, vector<16x128xf32>,
    return
  }
}

</mosaic_0001>

<bundles_post_ra>
// kernel: vit_gru_seq2seq.1
= control target key start
LH: loop header
LB: loop body
LE: loop exit
PB: predicated region body
PF: predicated region fallthrough
CT: control target
= control target key end

     0   :  { %v5350_v0 = vmov 0.0|0.0   ;;  %vm122_vm0 = vcmask 523264   ;;  %v209_v39 = vlaneseq  ;;  %vm217_vm1 = vcmask 1040384   ;;  %s6465_s29 = smov 64   ;;  %s6471_s30 = smov 80   ;;  %s6417_s1 = inlined_call_operand.vmem [shape: f32[192,32], index: 1, kind: input, shape index: {}]   ;;  %s6418_s0 = inlined_call_operand.vmem [shape: f32[8,192], index: 0, kind: input, shape index: {}]   ;;  %s6419_s4 = inlined_call_operand.vmem [shape: f32[5,32], index: 4, kind: input, shape index: {}]   ;;  %s6420_s3 = inlined_call_operand.vmem [shape: f32[1,32], index: 3, kind: input, shape index: {}]   ;;  %s6421_s2 = inlined_call_operand.vmem [shape: f32[1,32], index: 2, kind: input, shape index: {}, may-alias: {2,18}]   ;;  %s6422_s7 = inlined_call_operand.vmem [shape: f32[2,32,96], index: 7, kind: input, shape index: {}]   ;;  %s6423_s5 = inlined_call_operand.vmem [shape: f32[2,1,32], index: 5, kind: input, shape index: {}, may-alias: {5,11}]   ;;  %s6424_s6 = inlined_call_operand.vmem [shape: f32[2,1,32], index: 6, kind: input, shape index: {}, may-alias: {6,10,12,16}]   ;;  %s6425_s8 = inlined_call_operand.vmem [shape: f32[2,1,96], index: 8, kind: input, shape index: {}]   ;;  %s6426_s19 = inlined_call_operand.vmem [shape: f32[10,10], index: 19, kind: input, shape index: {}]   ;;  %s6427_s9 = inlined_call_operand.vmem [shape: f32[2,32,32], index: 9, kind: input, shape index: {}]   ;;  %s6428_s10 = inlined_call_operand.vmem [shape: f32[2,1,32], index: 10, kind: input, shape index: {}, may-alias: {6,10,12,16}]   ;;  %s6429_s13 = inlined_call_operand.vmem [shape: f32[2,32,128], index: 13, kind: input, shape index: {}]   ;;  %s6430_s11 = inlined_call_operand.vmem [shape: f32[2,1,32], index: 11, kind: input, shape index: {}, may-alias: {5,11}]   ;;  %s6431_s12 = inlined_call_operand.vmem [shape: f32[2,1,32], index: 12, kind: input, shape index: {}, may-alias: {6,10,12,16}]   ;;  %s6432_s15 = inlined_call_operand.vmem [shape: f32[2,128,32], index: 15, kind: input, shape index: {}]   ;;  %s6433_s14 = inlined_call_operand.vmem [shape: f32[2,1,128], index: 14, kind: input, shape index: {}]   ;;  %s6434_s16 = inlined_call_operand.vmem [shape: f32[2,1,32], index: 16, kind: input, shape index: {}, may-alias: {6,10,12,16}]   ;;  %s6435_s24 = inlined_call_operand.vmem [shape: f32[32,128], index: 24, kind: input, shape index: {}]   ;;  %s6436_s17 = inlined_call_operand.vmem [shape: f32[1,32], index: 17, kind: input, shape index: {}]   ;;  %s6437_s18 = inlined_call_operand.vmem [shape: f32[1,32], index: 18, kind: input, shape index: {}, may-alias: {2,18}]   ;;  %s6438_s22 = inlined_call_operand.vmem [shape: f32[32,128], index: 22, kind: input, shape index: {}]   ;;  %s6439_s20 = inlined_call_operand.vmem [shape: f32[2,10], index: 20, kind: input, shape index: {}]   ;;  %s6440_s21 = inlined_call_operand.vmem [shape: f32[16,32], index: 21, kind: input, shape index: {}]   ;;  %s6441_s23 = inlined_call_operand.vmem [shape: f32[1,128], index: 23, kind: input, shape index: {}, may-alias: {23,25,27}]   ;;  %s6442_s25 = inlined_call_operand.vmem [shape: f32[1,128], index: 25, kind: input, shape index: {}, may-alias: {23,25,27}]   ;;  %s6443_s26 = inlined_call_operand.vmem [shape: f32[32,128], index: 26, kind: input, shape index: {}]   ;;  %s6444_s27 = inlined_call_operand.vmem [shape: f32[1,128], index: 27, kind: input, shape index: {}, may-alias: {23,25,27}]   ;;  %s6445_s28 = inlined_call_operand.vmem [shape: f32[16,128], index: 28, kind: output, shape index: {}]  }
   0x1   :  { %6481 = sst [smem:[#allocation2_spill]] %s6417_s1  ;;  %4797 = vmatprep.subr.bf16.mxu0 %v5350_v0  ;;  %vm219_vm2 = vcmask 1044480   ;;  %vm221_vm3 = vcmask 1045504   ;;  %vm227_vm4 = vcmask 261120   ;;  %vm231_vm5 = vcmask 254976  }
   0x2   :  { %6482 = sst [smem:[#allocation3_spill]] %s6418_s0  ;;  %v210_v41 = vshrl.u32 %v209_v39, 7  ;;  %vm370_vm6 = vcmask 64512   ;;  %vm458_vm8 = vcmask 80896   ;;  %vm462_vm9 = vcmask 74752  }
   0x3   :  { %6483 = sst [smem:[#allocation4_spill]] %s6419_s4  ;;  %s6477_s4 = smov 96   ;;  %vm5673_vm7 = vmpackc.low %vm370_vm6, %vm370_vm6  ;;  %vm493_vm10 = vcmask 1041408   ;;  %vm5355_vm11 = vmmov 1   ;;  %vm1212_vm13 = vcmask 130048   ;;  %vm1215_vm14 = vcmask 195584  }
   0x4   :  { %6484 = sst [smem:[#allocation5_spill]] %s6420_s3  ;;  %v211_v48 = vsub.s32 0, %v210_v41  ;;  %vm5702_vm12 = vmpackc.low %vm493_vm10, %vm5355_vm11  ;;  %s6464_s3 = smov 48   ;;  %vm5366_vm15 = vmmov 0  }
   0x5   :  { %6485 = sst [smem:[#allocation6_spill]] %s6421_s2 }
   0x6   :  { %6486 = sst [smem:[#allocation7_spill]] %s6422_s7  ;;  %s6499_s7 = sld [smem:[#allocation4_spill]] }
   0x7   :  { %6487 = sst [smem:[#allocation8_spill]] %s6423_s5  ;;  %s6498_s5 = sld [smem:[#allocation3_spill]] }
   0x8   :  { %6488 = sst [smem:[#allocation9_spill]] %s6424_s6  ;;  %s6501_s2 = sld [smem:[#allocation6_spill]] }
   0x9   :  { %6489 = sst [smem:[#allocation10_spill]] %s6425_s8  ;;  %s6503_s0 = sld [smem:[#allocation8_spill]] }
   0xa   :  { %6490 = sst [smem:[#allocation11_spill]] %s6426_s19  ;;  %s6497_s19 = sld [smem:[#allocation2_spill]] }
   0xb   :  { %6491 = sst [smem:[#allocation12_spill]] %s6427_s9  ;;  %s6500_s9 = sld [smem:[#allocation5_spill]] }
   0xc   :  { %6492 = sst [smem:[#allocation13_spill]] %s6428_s10  ;;  %v199_v40 = vld [vmem:[%s6499_s7 + $0x1] sm:$0xf]  ;;  %v197_v43 = vld [vmem:[%s6499_s7] sm:$0x1]  ;;  %s6505_s1 = sld [smem:[#allocation10_spill]] }
   0xd   :  { %6493 = sst [smem:[#allocation14_spill]] %s6429_s13  ;;  %v90_v12 = vld [vmem:[%s6498_s5 + $0x8] sm:$0xff]  ;;  %v89_v38 = vld [vmem:[%s6498_s5] sm:$0xff]  ;;  %v202_v45 = vrot.slane %v199_v40, 4  ;;  %s6502_s13 = sld [smem:[#allocation7_spill]] }
   0xe   :  { %6494 = sst [smem:[#allocation15_spill]] %s6443_s26  ;;  %4093 = vmatprep.mubr.msk.f32.mxu0 %vm122_vm0, %v90_v12  ;;  %v4092_v44 = vld [vmem:[%s6501_s2] ss:$0 sm:$0xff]  ;;  %s6504_s2 = sld [smem:[#allocation9_spill]]  ;;  %vm3984_vm0 = vcmask 1043456  }
   0xf   :  { %6495 = sst [smem:[#allocation16_spill]] %s6444_s27  ;;  %s6474_s8 = smov 88  }
  0x10   :  { %6496 = sst [smem:[#allocation17_spill]] %s6445_s28  ;;  %v91_v1 = vld [vmem:[%s6497_s19] sm:$0xff]  ;;  %v92_v2 = vld [vmem:[%s6497_s19 + $0x8] sm:$0xff]  ;;  %v93_v3 = vld [vmem:[%s6497_s19 + $0x10] sm:$0xff]  ;;  %s6472_s7 = smov 120  }
  0x11   :  { %v4798_v4 = vpack.c.bf16 %v92_v2, %v91_v1  ;;  %v94_v5 = vld [vmem:[%s6497_s19 + $0x18] sm:$0xff]  ;;  %v95_v7 = vld [vmem:[%s6497_s19 + $0x20] sm:$0xff]  ;;  %v96_v8 = vld [vmem:[%s6497_s19 + $0x28] sm:$0xff]  ;;  %s6460_s5 = smov 56   ;;  %s6467_s6 = smov 112  }
  0x12   :  { %v4801_v6 = vpack.c.bf16 %v94_v5, %v93_v3  ;;  %v4804_v9 = vpack.c.bf16 %v96_v8, %v95_v7  ;;  %v97_v10 = vld [vmem:[%s6497_s19 + $0x30] sm:$0xff]  ;;  %v98_v11 = vld [vmem:[%s6497_s19 + $0x38] sm:$0xff]  ;;  %v99_v14 = vld [vmem:[%s6497_s19 + $0x40] sm:$0xff]  ;;  %s6459_s10 = smov 72   ;;  %s6517_s27 = smov 80  }
  0x13   :  { %4799 = vmatpush1.bf16.msra.mxu0 %v4798_v4  ;;  %v4807_v13 = vpack.c.bf16 %v98_v11, %v97_v10  ;;  %v100_v15 = vld [vmem:[%s6497_s19 + $0x48] sm:$0xff]  ;;  %v101_v17 = vld [vmem:[%s6497_s19 + $0x50] sm:$0xff]  ;;  %v102_v18 = vld [vmem:[%s6497_s19 + $0x58] sm:$0xff]  ;;  %s6524_s26 = smov 40  }
  0x14   :  { %4800 = vmatprep.subr.bf16.mxu0 %v5350_v0  ;;  %v4810_v16 = vpack.c.bf16 %v100_v15, %v99_v14  ;;  %v4813_v19 = vpack.c.bf16 %v102_v18, %v101_v17  ;;  %v103_v20 = vld [vmem:[%s6497_s19 + $0x60] sm:$0xff]  ;;  %v104_v21 = vld [vmem:[%s6497_s19 + $0x68] sm:$0xff]  ;;  %v105_v23 = vld [vmem:[%s6497_s19 + $0x70] sm:$0xff] }
  0x15   :  { %v4816_v22 = vpack.c.bf16 %v104_v21, %v103_v20  ;;  %v106_v24 = vld [vmem:[%s6497_s19 + $0x78] sm:$0xff]  ;;  %v107_v26 = vld [vmem:[%s6497_s19 + $0x80] sm:$0xff]  ;;  %v108_v27 = vld [vmem:[%s6497_s19 + $0x88] sm:$0xff] }
  0x16   :  { %v4819_v25 = vpack.c.bf16 %v106_v24, %v105_v23  ;;  %v4822_v28 = vpack.c.bf16 %v108_v27, %v107_v26  ;;  %v109_v29 = vld [vmem:[%s6497_s19 + $0x90] sm:$0xff]  ;;  %v110_v30 = vld [vmem:[%s6497_s19 + $0x98] sm:$0xff]  ;;  %v111_v32 = vld [vmem:[%s6497_s19 + $0xa0] sm:$0xff] }
  0x17   :  { %4802 = vmatpush1.bf16.msra.mxu0 %v4801_v6  ;;  %v4825_v31 = vpack.c.bf16 %v110_v30, %v109_v29  ;;  %v112_v33 = vld [vmem:[%s6497_s19 + $0xa8] sm:$0xff]  ;;  %v113_v35 = vld [vmem:[%s6497_s19 + $0xb0] sm:$0xff]  ;;  %v114_v36 = vld [vmem:[%s6497_s19 + $0xb8] sm:$0xff]  ;;  %s6457_s19 = smov 104  }
  0x18   :  { %4803 = vmatprep.subr.bf16.mxu0 %v5350_v0  ;;  %v4828_v34 = vpack.c.bf16 %v112_v33, %v111_v32  ;;  %v4831_v37 = vpack.c.bf16 %v114_v36, %v113_v35  ;;  %v196_v42 = vld [vmem:[%s6500_s9] sm:$0x1]  ;;  %v274_v10 = vld [vmem:[%s6502_s13 + $0x10] sm:$0xff]  ;;  %v275_v12 = vld [vmem:[%s6502_s13 + $0x18] sm:$0xff]  ;;  %s6508_s9 = sld [smem:[#allocation11_spill]] }
  0x19   :  { %v198_v47 = vadd.f32 %v197_v43, %v196_v42  ;;  %v272_v8 = vld [vmem:[%s6502_s13] sm:$0xff] }
  0x1a   :  { %v4094_v21 = vld [vmem:[%s6503_s0] ss:$0 sm:$0xff] }
  0x1b   :  { %4805 = vmatpush1.bf16.msra.mxu0 %v4804_v9  ;;  %v212_v53 = vrot.slane %v198_v47, %v211_v48  ;;  %v273_v9 = vld [vmem:[%s6502_s13 + $0x8] sm:$0xff]  ;;  %v4095_v23 = vld [vmem:[%s6504_s2] ss:$0 sm:$0xff] }
  0x1c   :  { %4806 = vmatprep.subr.bf16.mxu0 %v5350_v0  ;;  %v4833_v11 = vpack.c.bf16 %v273_v9, %v272_v8  ;;  %v4096_v30 = vld [vmem:[%s6505_s1] ss:$0 sm:$0xff]  ;;  %v3040_v8 = vld [vmem:[%s6440_s21 + $0x8] sm:$0xff] }
  0x1e   :  { %4834 = vmatprep.subr.bf16.mxu1 %v4833_v11  ;;  %v5686_v43 = vld [vmem:[%s6508_s9] sm:$0xff] }
  0x1f   :  { %4808 = vmatpush1.bf16.msra.mxu0 %v4807_v13  ;;  %v4837_v13 = vpack.c.bf16 %v275_v12, %v274_v10  ;;  %4836 = vmatpush3.bf16.msra.mxu1 %v4833_v11 }
  0x20   :  { %4809 = vmatprep.subr.bf16.mxu0 %v5350_v0 }
  0x21   :  { %4838 = vmatprep.subr.bf16.mxu1 %v4837_v13 }
  0x23   :  { %4811 = vmatpush1.bf16.msra.mxu0 %v4810_v16  ;;  %4840 = vmatpush3.bf16.msra.mxu1 %v4837_v13 }
  0x24   :  { %4812 = vmatprep.subr.bf16.mxu0 %v5350_v0 }
  0x27   :  { %4814 = vmatpush1.bf16.msra.mxu0 %v4813_v19 }
  0x28   :  { %4815 = vmatprep.subr.bf16.mxu0 %v5350_v0 }
  0x2b   :  { %4817 = vmatpush1.bf16.msra.mxu0 %v4816_v22 }
  0x2c   :  { %4818 = vmatprep.subr.bf16.mxu0 %v5350_v0 }
  0x2f   :  { %4820 = vmatpush1.bf16.msra.mxu0 %v4819_v25 }
  0x30   :  { %4821 = vmatprep.subr.bf16.mxu0 %v5350_v0 }
  0x33   :  { %4823 = vmatpush1.bf16.msra.mxu0 %v4822_v28 }
  0x34   :  { %4824 = vmatprep.subr.bf16.mxu0 %v5350_v0 }
  0x37   :  { %4826 = vmatpush1.bf16.msra.mxu0 %v4825_v31 }
  0x38   :  { %4827 = vmatprep.subr.bf16.mxu0 %v5350_v0 }
  0x3b   :  { %4829 = vmatpush1.bf16.msra.mxu0 %v4828_v34 }
  0x3c   :  { %4830 = vmatprep.subr.bf16.mxu0 %v5350_v0 }
  0x3f   :  { %4832 = vmatpush1.bf16.msra.mxu0 %v4831_v37 }
  0x42   :  { %191 = vmatmul.mubr.f32.vlgmr.msra.gmra.mrb[0].mxu0 %v89_v38 }
 0x115   :  { %v192_v46 = vpop.f32.mrb[0].mxu0 }
 0x116   :  { %v193_v49 = vadd.f32 %v4092_v44, %v192_v46  ;;  %v194_v50 = vpop.f32.mrb[1].mxu0  ;;  %v5691_v46 = vld [vmem:[%s6508_s9 + $0x8] sm:$0x3] }
 0x118   :  { %v200_v51 = vadd.f32 %v199_v40, %v193_v49  ;;  %v204_v52 = vadd.f32 %v202_v45, %v193_v49 }
 0x11a   :  { %v206_v54 = vrot.slane %v200_v51, 7  ;;  %v5616_v55 = vrot.slane %v204_v52, 6 }
 0x11c   :  { %v218_v56 = vsel %vm217_vm1, %v198_v47, %v206_v54  ;;  %v232_v60 = vsel %vm231_vm5, %v5616_v55, 0.0 }
 0x11d   :  { %v220_v57 = vsel %vm219_vm2, %v218_v56, %v212_v53 }
 0x11e   :  { %v5620_v58 = vsel %vm221_vm3, %v220_v57, %v5616_v55 }
 0x11f   :  { %v228_v59 = vsel %vm227_vm4, %v5620_v58, 0.0 }
 0x120   :  { %229 = vadd.xlane.f32.xlu0 %v228_v59 }
 0x124   :  { %233 = vadd.xlane.f32.xlu0 %v232_v60 }
 0x1ad   :  { %v230_v61 = vpop.xlane.xlu0 %229 }
 0x1ae   :  { %v236_v62 = vmul.f32 0.03125, %v230_v61 }
 0x1b0   :  { %v238_v63 = vsub.f32 %v5620_v58, %v236_v62 }
 0x1b1   :  { %v234_v1 = vpop.xlane.xlu0 %233 }
 0x1b2   :  { %v237_v2 = vmul.f32 0.03125, %v234_v1  ;;  %v240_v3 = vmul.f32 %v238_v63, %v238_v63 }
 0x1b4   :  { %v239_v4 = vsub.f32 %v5616_v55, %v237_v2  ;;  %v242_v5 = vsel %vm227_vm4, %v240_v3, 0.0 }
 0x1b5   :  { %243 = vadd.xlane.f32.xlu1 %v242_v5 }
 0x1b6   :  { %v241_v6 = vmul.f32 %v239_v4, %v239_v4 }
 0x1b8   :  { %v245_v7 = vsel %vm231_vm5, %v241_v6, 0.0 }
 0x1b9   :  { %246 = vadd.xlane.f32.xlu1 %v245_v7 }
 0x242   :  { %v244_v14 = vpop.xlane.xlu1 %243 }
 0x243   :  { %v248_v15 = vmul.f32 0.03125, %v244_v14 }
 0x245   :  { %v250_v16 = vadd.f32 1e-12, %v248_v15 }
 0x246   :  { %v247_v17 = vpop.xlane.xlu1 %246 }
 0x247   :  { %5208 = vrsqrt.f32 %v250_v16  ;;  %v249_v18 = vmul.f32 0.03125, %v247_v17 }
 0x249   :  { %v251_v19 = vadd.f32 1e-12, %v249_v18 }
 0x24b   :  { %5210 = vrsqrt.f32 %v251_v19 }
 0x251   :  { %v5209_v20 = vpop.eup %5208 }
 0x252   :  { %v254_v22 = vmul.f32 %v5209_v20, %v238_v63 }
 0x254   :  { %v262_v24 = vmul.f32 %v4094_v21, %v254_v22 }
 0x255   :  { %v5211_v25 = vpop.eup %5210 }
 0x256   :  { %v255_v26 = vmul.f32 %v5211_v25, %v239_v4  ;;  %v270_v27 = vadd.f32 %v4095_v23, %v262_v24 }
 0x258   :  { %v263_v28 = vmul.f32 %v4094_v21, %v255_v26  ;;  %4440 = vmatprep.mubr.msk.f32.mxu1 %vm227_vm4, %v270_v27 }
 0x25a   :  { %v271_v29 = vadd.f32 %v4095_v23, %v263_v28 }
 0x25c   :  { %4441 = vmatmul.mubr.msk.f32.vlgmr.msra.gmra.mrb[0].mxu1 %vm227_vm4, %v271_v29 }
 0x32f   :  { %v4442_v31 = vpop.f32.mrb[0].mxu1 }
 0x330   :  { %v5653_v32 = vadd.f32 %v4442_v31, %v4096_v30  ;;  %v355_v33 = vpop.f32.mrb[1].mxu1 }
 0x331   :  { %v5655_v34 = vadd.f32 %v4096_v30, %v355_v33 }
 0x333   :  { %4447 = vmatprep.mubr.msk.f32.mxu1 %vm370_vm6, %v5655_v34  ;;  %v5661_v35 = vpack.i.bf16 %v5653_v32, %v5655_v34 }
 0x335   :  { %5129 = vrot.lane.b32.xlu0 %v5661_v35, %s6477_s4  ;;  %s6522_s4 = smov 72  }
 0x339   :  { %5139 = vrot.lane.b32.xlu0 %v5661_v35, %s6474_s8  ;;  %s6518_s8 = smov 112  }
 0x33d   :  { %571 = vrot.lane.b32.xlu0 %v5655_v34, %s6472_s7 }
 0x341   :  { %573 = vrot.lane.b32.xlu0 %v5653_v32, %s6472_s7  ;;  %s6519_s7 = smov 64  }
 0x3a7   :  { %v5130_v36 = vpop.permute.xlu0 %5129 }
 0x3a8   :  { %v5132_v37 = vunpack.i.h.bf16 %v5130_v36  ;;  %v5131_v38 = vunpack.i.l.bf16 %v5130_v36 }
 0x3aa   :  { %v4841_v40 = vpack.c.bf16 %v5132_v37, %v5131_v38 }
 0x3ab   :  { %v5140_v2 = vpop.permute.xlu0 %5139 }
 0x3ac   :  { %4843 = vmatprep.subr.msk.bf16.mxu1 %vm5673_vm7, %v4841_v40  ;;  %v5142_v4 = vunpack.i.h.bf16 %v5140_v2  ;;  %v5141_v5 = vunpack.i.l.bf16 %v5140_v2 }
 0x3ad   :  { %4846 = vmatpush3.bf16.xpose.msk.msra.mxu1 %vm5673_vm7, %v4841_v40 }
 0x3ae   :  { %v4853_v10 = vpack.c.bf16 %v5142_v4, %v5141_v5 }
 0x3af   :  { %v572_v15 = vpop.permute.xlu0 %571 }
 0x3b3   :  { %v574_v16 = vpop.permute.xlu0 %573 }
 0x3b4   :  { %4448 = vmatmul.mubr.msk.f32.vlgmr.msra.gmra.mrb[2].mxu1 %vm370_vm6, %v5653_v32 }
 0x487   :  { %v4449_v41 = vpop.f32.mrb[2].mxu1 }
 0x488   :  { %v445_v42 = vpop.f32.mrb[3].mxu1  ;;  %v455_v44 = vmul.f32 0.35355338, %v4449_v41 }
 0x489   :  { %v454_v45 = vmul.f32 0.35355338, %v445_v42 }
 0x48a   :  { %v457_v49 = vadd.f32 %v455_v44, %v5691_v46 }
 0x48b   :  { %v456_v47 = vadd.f32 %v454_v45, %v5686_v43 }
 0x48c   :  { %v463_v50 = vsel %vm462_vm9, %v457_v49, -inf }
 0x48d   :  { %v459_v48 = vsel %vm458_vm8, %v456_v47, -inf }
 0x48e   :  { %460 = vmax.xlane.f32.xlu1 %v459_v48 }
 0x492   :  { %464 = vmax.xlane.f32.xlu1 %v463_v50 }
 0x51b   :  { %v461_v51 = vpop.xlane.xlu1 %460 }
 0x51c   :  { %v466_v52 = vsub.f32 %v456_v47, %v461_v51 }
 0x51e   :  { %v468_v56 = vmul.f32 1.442695, %v466_v52 }
 0x51f   :  { %v465_v53 = vpop.xlane.xlu1 %464 }
 0x520   :  { %v467_v54 = vsub.f32 %v457_v49, %v465_v53 }
 0x522   :  { %v470_v57 = vmul.f32 1.442695, %v467_v54 }
 0x524   :  { %5212 = vpow2.f32 %v470_v57 }
 0x525   :  { %5214 = vpow2.f32 %v468_v56 }
 0x52e   :  { %v5213_v59 = vpop.eup %5212 }
 0x52f   :  { %v475_v60 = vsel %vm462_vm9, %v5213_v59, 0.0  ;;  %v5215_v61 = vpop.eup %5214 }
 0x530   :  { %476 = vadd.xlane.f32.xlu1 %v475_v60  ;;  %v472_v62 = vsel %vm458_vm8, %v5215_v61, 0.0 }
 0x534   :  { %473 = vadd.xlane.f32.xlu1 %v472_v62 }
 0x545   :  { %5134 = vrot.lane.b32.xlu1 %v5661_v35, %s6465_s29  ;;  %s6512_s29 = sld [smem:[#allocation13_spill]] }
 0x5bd   :  { %v477_v63 = vpop.xlane.xlu1 %476 }
 0x5be   :  { %5216 = vrcp.f32 %v477_v63 }
 0x5c1   :  { %v474_v1 = vpop.xlane.xlu1 %473 }
 0x5c2   :  { %5218 = vrcp.f32 %v474_v1 }
 0x5c5   :  { %v5135_v3 = vpop.permute.xlu1 %5134 }
 0x5c6   :  { %v5137_v6 = vunpack.i.h.bf16 %v5135_v3  ;;  %v5136_v7 = vunpack.i.l.bf16 %v5135_v3 }
 0x5c8   :  { %v4847_v9 = vpack.c.bf16 %v5137_v6, %v5136_v7  ;;  %v5217_v11 = vpop.eup %5216 }
 0x5c9   :  { %v481_v14 = vmul.f32 %v5217_v11, %v5213_v59 }
 0x5ca   :  { %4849 = vmatprep.subr.msk.bf16.mxu1 %vm5702_vm12, %v4847_v9 }
 0x5cb   :  { %4852 = vmatpush3.bf16.msk.msra.mxu1 %vm5702_vm12, %v4847_v9 }
 0x5cc   :  { %v5219_v12 = vpop.eup %5218  ;;  %4855 = vmatprep.subr.msk.bf16.mxu1 %vm5673_vm7, %v4853_v10 }
 0x5cd   :  { %v479_v13 = vmul.f32 %v5219_v12, %v5215_v61 }
 0x5cf   :  { %4454 = vmatprep.mubr.msk.f32.mxu1 %vm458_vm8, %v479_v13 }
 0x5d0   :  { %4455 = vmatmul.mubr.msk.f32.vlgmr.msra.gmra.mrb[4].mxu1 %vm458_vm8, %v481_v14 }
 0x5d1   :  { %4461 = vmatprep.mubr.msk.f32.mxu1 %vm370_vm6, %v572_v15 }
 0x5d4   :  { %4858 = vmatpush3.bf16.xpose.msk.msra.mxu1 %vm5673_vm7, %v4853_v10 }
 0x5db   :  { %4462 = vmatmul.mubr.msk.f32.vlgmr.msra.gmra.mrb[6].mxu1 %vm370_vm6, %v574_v16 }
 0x6a3   :  { %v5718_v17 = vpop.f32.mrb[4].mxu1 }
 0x6a4   :  { %v5720_v18 = vpop.f32.mrb[5].mxu1 }
 0x6ae   :  { %v4463_v19 = vpop.f32.mrb[6].mxu1 }
 0x6af   :  { %v663_v20 = vmul.f32 0.35355338, %v4463_v19  ;;  %v653_v21 = vpop.f32.mrb[7].mxu1 }
 0x6b0   :  { %v662_v22 = vmul.f32 0.35355338, %v653_v21 }
 0x6b1   :  { %v665_v23 = vadd.f32 %v663_v20, %v5691_v46 }
 0x6b2   :  { %v664_v24 = vadd.f32 %v662_v22, %v5686_v43 }
 0x6b3   :  { %v669_v25 = vsel %vm462_vm9, %v665_v23, -inf }
 0x6b4   :  { %670 = vmax.xlane.f32.xlu0 %v669_v25  ;;  %v666_v26 = vsel %vm458_vm8, %v664_v24, -inf }
 0x6b5   :  { %667 = vmax.xlane.f32.xlu1 %v666_v26 }
 0x6c6   :  { %5144 = vrot.lane.b32.xlu1 %v5661_v35, %s6460_s5  ;;  %s6461_s5 = smov 16  }
 0x6ca   :  { %776 = vrot.lane.b32.xlu1 %v5655_v34, %s6467_s6 }
 0x6ce   :  { %778 = vrot.lane.b32.xlu1 %v5653_v32, %s6467_s6 }
 0x741   :  { %v671_v27 = vpop.xlane.xlu0 %670 }
 0x742   :  { %v673_v28 = vsub.f32 %v665_v23, %v671_v27  ;;  %v668_v29 = vpop.xlane.xlu1 %667 }
 0x743   :  { %v672_v30 = vsub.f32 %v664_v24, %v668_v29 }
 0x744   :  { %v676_v31 = vmul.f32 1.442695, %v673_v28 }
 0x745   :  { %v674_v33 = vmul.f32 1.442695, %v672_v30 }
 0x746   :  { %5220 = vpow2.f32 %v676_v31  ;;  %v5145_v36 = vpop.permute.xlu1 %5144 }
 0x747   :  { %v5147_v37 = vunpack.i.h.bf16 %v5145_v36  ;;  %v5146_v38 = vunpack.i.l.bf16 %v5145_v36  ;;  %5222 = vpow2.f32 %v674_v33 }
 0x749   :  { %v4859_v40 = vpack.c.bf16 %v5147_v37, %v5146_v38 }
 0x74a   :  { %v777_v59 = vpop.permute.xlu1 %776 }
 0x74b   :  { %4861 = vmatprep.subr.msk.bf16.mxu1 %vm5702_vm12, %v4859_v40 }
 0x74c   :  { %4864 = vmatpush3.bf16.msk.msra.mxu1 %vm5702_vm12, %v4859_v40 }
 0x74e   :  { %v779_v60 = vpop.permute.xlu1 %778 }
 0x750   :  { %v5221_v41 = vpop.eup %5220 }
 0x751   :  { %v681_v42 = vsel %vm462_vm9, %v5221_v41, 0.0  ;;  %v5223_v44 = vpop.eup %5222 }
 0x752   :  { %682 = vadd.xlane.f32.xlu0 %v681_v42  ;;  %v678_v45 = vsel %vm458_vm8, %v5223_v44, 0.0 }
 0x756   :  { %679 = vadd.xlane.f32.xlu0 %v678_v45 }
 0x76c   :  { %5149 = vrot.lane.b32.xlu0 %v5661_v35, %s6471_s30 }
 0x7df   :  { %v683_v47 = vpop.xlane.xlu0 %682 }
 0x7e0   :  { %5224 = vrcp.f32 %v683_v47 }
 0x7e3   :  { %v680_v48 = vpop.xlane.xlu0 %679 }
 0x7e4   :  { %5226 = vrcp.f32 %v680_v48 }
 0x7e7   :  { %v5150_v49 = vpop.permute.xlu0 %5149 }
 0x7e8   :  { %v5152_v50 = vunpack.i.h.bf16 %v5150_v49  ;;  %v5151_v51 = vunpack.i.l.bf16 %v5150_v49 }
 0x7ea   :  { %v4865_v52 = vpack.c.bf16 %v5152_v50, %v5151_v51  ;;  %v5225_v53 = vpop.eup %5224 }
 0x7eb   :  { %v687_v57 = vmul.f32 %v5225_v53, %v5221_v41 }
 0x7ec   :  { %4867 = vmatprep.subr.msk.bf16.mxu1 %vm5673_vm7, %v4865_v52 }
 0x7ee   :  { %v5227_v54 = vpop.eup %5226 }
 0x7ef   :  { %v685_v56 = vmul.f32 %v5227_v54, %v5223_v44 }
 0x7f1   :  { %4468 = vmatprep.mubr.msk.f32.mxu1 %vm458_vm8, %v685_v56 }
 0x7f2   :  { %4469 = vmatmul.mubr.msk.f32.vlgmr.msra.gmra.mrb[8].mxu1 %vm458_vm8, %v687_v57 }
 0x7f3   :  { %4870 = vmatpush3.bf16.xpose.msk.msra.mxu1 %vm5673_vm7, %v4865_v52  ;;  %4475 = vmatprep.mubr.msk.f32.mxu1 %vm370_vm6, %v777_v59 }
 0x7fa   :  { %4476 = vmatmul.mubr.msk.f32.vlgmr.msra.gmra.mrb[10].mxu1 %vm370_vm6, %v779_v60 }
 0x8c5   :  { %v5748_v61 = vpop.f32.mrb[8].mxu1 }
 0x8c6   :  { %v5750_v62 = vpop.f32.mrb[9].mxu1 }
 0x8cd   :  { %v4477_v63 = vpop.f32.mrb[10].mxu1 }
 0x8ce   :  { %v868_v1 = vmul.f32 0.35355338, %v4477_v63  ;;  %v858_v2 = vpop.f32.mrb[11].mxu1 }
 0x8cf   :  { %v867_v3 = vmul.f32 0.35355338, %v858_v2 }
 0x8d0   :  { %v870_v4 = vadd.f32 %v868_v1, %v5691_v46 }
 0x8d1   :  { %v869_v5 = vadd.f32 %v867_v3, %v5686_v43 }
 0x8d2   :  { %v874_v6 = vsel %vm462_vm9, %v870_v4, -inf }
 0x8d3   :  { %875 = vmax.xlane.f32.xlu0 %v874_v6  ;;  %v871_v7 = vsel %vm458_vm8, %v869_v5, -inf }
 0x8d4   :  { %872 = vmax.xlane.f32.xlu1 %v871_v7 }
 0x8e5   :  { %5154 = vrot.lane.b32.xlu1 %v5661_v35, %s6464_s3  ;;  %s6511_s3 = sld [smem:[#allocation12_spill]] }
 0x8e9   :  { %981 = vrot.lane.b32.xlu1 %v5655_v34, %s6457_s19 }
 0x8ed   :  { %983 = vrot.lane.b32.xlu1 %v5653_v32, %s6457_s19  ;;  %s6463_s19 = smov 40  }
 0x960   :  { %v876_v9 = vpop.xlane.xlu0 %875 }
 0x961   :  { %v878_v10 = vsub.f32 %v870_v4, %v876_v9  ;;  %v873_v11 = vpop.xlane.xlu1 %872 }
 0x962   :  { %v877_v12 = vsub.f32 %v869_v5, %v873_v11  ;;  %v1218_v11 = vld [vmem:[%s6511_s3] sm:$0xff] }
 0x963   :  { %v881_v13 = vmul.f32 1.442695, %v878_v10 }
 0x964   :  { %v879_v14 = vmul.f32 1.442695, %v877_v12  ;;  %v1220_v12 = vld [vmem:[%s6511_s3 + $0x10] sm:$0xff] }
 0x965   :  { %5228 = vpow2.f32 %v881_v13  ;;  %v5155_v15 = vpop.permute.xlu1 %5154 }
 0x966   :  { %v5157_v16 = vunpack.i.h.bf16 %v5155_v15  ;;  %v5156_v19 = vunpack.i.l.bf16 %v5155_v15  ;;  %5230 = vpow2.f32 %v879_v14  ;;  %v1221_v14 = vld [vmem:[%s6511_s3 + $0x18] sm:$0xff] }
 0x967   :  { %v4893_v15 = vpack.c.bf16 %v1221_v14, %v1220_v12  ;;  %v1468_v12 = vld [vmem:[%s6432_s15] sm:$0xff] }
 0x968   :  { %v4871_v20 = vpack.c.bf16 %v5157_v16, %v5156_v19 }
 0x969   :  { %v982_v36 = vpop.permute.xlu1 %981 }
 0x96a   :  { %4873 = vmatprep.subr.msk.bf16.mxu1 %vm5702_vm12, %v4871_v20 }
 0x96b   :  { %4876 = vmatpush3.bf16.msk.msra.mxu1 %vm5702_vm12, %v4871_v20 }
 0x96d   :  { %v984_v37 = vpop.permute.xlu1 %983 }
 0x96f   :  { %v5229_v34 = vpop.eup %5228 }
 0x970   :  { %v886_v32 = vsel %vm462_vm9, %v5229_v34, 0.0  ;;  %v5231_v21 = vpop.eup %5230 }
 0x971   :  { %887 = vadd.xlane.f32.xlu0 %v886_v32  ;;  %v883_v22 = vsel %vm458_vm8, %v5231_v21, 0.0 }
 0x975   :  { %884 = vadd.xlane.f32.xlu0 %v883_v22 }
 0x98b   :  { %5159 = vrot.lane.b32.xlu0 %v5661_v35, %s6459_s10  ;;  %s6469_s10 = smov 8  }
 0x9fe   :  { %v888_v23 = vpop.xlane.xlu0 %887 }
 0x9ff   :  { %5232 = vrcp.f32 %v888_v23 }
 0xa02   :  { %v885_v24 = vpop.xlane.xlu0 %884 }
 0xa03   :  { %5234 = vrcp.f32 %v885_v24 }
 0xa06   :  { %v5160_v25 = vpop.permute.xlu0 %5159 }
 0xa07   :  { %v5162_v26 = vunpack.i.h.bf16 %v5160_v25  ;;  %v5161_v27 = vunpack.i.l.bf16 %v5160_v25 }
 0xa09   :  { %v4877_v28 = vpack.c.bf16 %v5162_v26, %v5161_v27  ;;  %v5233_v29 = vpop.eup %5232 }
 0xa0a   :  { %v892_v33 = vmul.f32 %v5233_v29, %v5229_v34 }
 0xa0b   :  { %4879 = vmatprep.subr.msk.bf16.mxu1 %vm5673_vm7, %v4877_v28 }
 0xa0d   :  { %v5235_v30 = vpop.eup %5234 }
 0xa0e   :  { %v890_v31 = vmul.f32 %v5235_v30, %v5231_v21  ;;  %v4129_v30 = vld [vmem:[%s6512_s29] ss:$0 sm:$0xff] }
 0xa10   :  { %4482 = vmatprep.mubr.msk.f32.mxu1 %vm458_vm8, %v890_v31 }
 0xa11   :  { %4483 = vmatmul.mubr.msk.f32.vlgmr.msra.gmra.mrb[12].mxu1 %vm458_vm8, %v892_v33 }
 0xa12   :  { %4882 = vmatpush3.bf16.xpose.msk.msra.mxu1 %vm5673_vm7, %v4877_v28  ;;  %4489 = vmatprep.mubr.msk.f32.mxu1 %vm370_vm6, %v982_v36 }
 0xa19   :  { %4490 = vmatmul.mubr.msk.f32.vlgmr.msra.gmra.mrb[14].mxu1 %vm370_vm6, %v984_v37 }
 0xae4   :  { %v4484_v38 = vpop.f32.mrb[12].mxu1 }
 0xae5   :  { %v972_v40 = vpop.f32.mrb[13].mxu1 }
 0xaec   :  { %v4491_v41 = vpop.f32.mrb[14].mxu1 }
 0xaed   :  { %v1073_v42 = vmul.f32 0.35355338, %v4491_v41  ;;  %v1063_v44 = vpop.f32.mrb[15].mxu1 }
 0xaee   :  { %v1072_v45 = vmul.f32 0.35355338, %v1063_v44 }
 0xaef   :  { %v1075_v47 = vadd.f32 %v1073_v42, %v5691_v46 }
 0xaf0   :  { %v1074_v48 = vadd.f32 %v1072_v45, %v5686_v43 }
 0xaf1   :  { %v1079_v49 = vsel %vm462_vm9, %v1075_v47, -inf }
 0xaf2   :  { %1080 = vmax.xlane.f32.xlu0 %v1079_v49  ;;  %v1076_v50 = vsel %vm458_vm8, %v1074_v48, -inf }
 0xaf3   :  { %1077 = vmax.xlane.f32.xlu1 %v1076_v50 }
 0xb04   :  { %5164 = vrot.lane.b32.xlu1 %v5661_v35, %s6463_s19  ;;  %s6513_s19 = sld [smem:[#allocation14_spill]] }
 0xb08   :  { %1190 = vrot.lane.b32.xlu1 %v5748_v61, %s6469_s10 }
 0xb0c   :  { %1196 = vrot.lane.b32.xlu1 %v972_v40, %s6461_s5 }
 0xb10   :  { %1198 = vrot.lane.b32.xlu1 %v4484_v38, %s6461_s5  ;;  %s6475_s5 = smov 24  }
 0xb7f   :  { %v1081_v51 = vpop.xlane.xlu0 %1080 }
 0xb80   :  { %v1083_v52 = vsub.f32 %v1075_v47, %v1081_v51  ;;  %v1078_v53 = vpop.xlane.xlu1 %1077  ;;  %v1358_v51 = vld [vmem:[%s6513_s19] sm:$0xff] }
 0xb81   :  { %v1082_v54 = vsub.f32 %v1074_v48, %v1078_v53 }
 0xb82   :  { %v1086_v56 = vmul.f32 1.442695, %v1083_v52  ;;  %v1359_v52 = vld [vmem:[%s6513_s19 + $0x8] sm:$0xff] }
 0xb83   :  { %v1084_v57 = vmul.f32 1.442695, %v1082_v54  ;;  %v4897_v53 = vpack.c.bf16 %v1359_v52, %v1358_v51  ;;  %v1360_v54 = vld [vmem:[%s6513_s19 + $0x10] sm:$0xff] }
 0xb84   :  { %v5165_v59 = vpop.permute.xlu1 %5164 }
 0xb85   :  { %5236 = vpow2.f32 %v1084_v57  ;;  %v5167_v60 = vunpack.i.h.bf16 %v5165_v59  ;;  %v5166_v63 = vunpack.i.l.bf16 %v5165_v59  ;;  %4898 = vmatprep.subr.bf16.mxu1 %v4897_v53 }
 0xb86   :  { %5238 = vpow2.f32 %v1086_v56  ;;  %4900 = vmatpush3.bf16.msra.mxu1 %v4897_v53  ;;  %v1361_v56 = vld [vmem:[%s6513_s19 + $0x18] sm:$0xff] }
 0xb87   :  { %v4883_v35 = vpack.c.bf16 %v5167_v60, %v5166_v63  ;;  %v4901_v57 = vpack.c.bf16 %v1361_v56, %v1360_v54 }
 0xb88   :  { %v1191_v20 = vpop.permute.xlu1 %1190 }
 0xb89   :  { %4885 = vmatprep.subr.msk.bf16.mxu0 %vm5702_vm12, %v4883_v35  ;;  %v1211_v24 = vsel %vm370_vm6, %v5718_v17, %v1191_v20  ;;  %4902 = vmatprep.subr.bf16.mxu1 %v4901_v57  ;;  %v1472_v20 = vld [vmem:[%s6432_s15 + $0x20] sm:$0xff] }
 0xb8a   :  { %4888 = vmatpush3.bf16.msk.msra.mxu0 %vm5702_vm12, %v4883_v35  ;;  %4904 = vmatpush3.bf16.msra.mxu1 %v4901_v57 }
 0xb8c   :  { %v1197_v34 = vpop.permute.xlu1 %1196 }
 0xb8f   :  { %v5237_v61 = vpop.eup %5236 }
 0xb90   :  { %v1088_v1 = vsel %vm458_vm8, %v5237_v61, 0.0  ;;  %v5239_v2 = vpop.eup %5238  ;;  %v1199_v21 = vpop.permute.xlu1 %1198 }
 0xb91   :  { %1089 = vadd.xlane.f32.xlu0 %v1088_v1  ;;  %v1091_v3 = vsel %vm462_vm9, %v5239_v2, 0.0  ;;  %v1214_v27 = vsel %vm1212_vm13, %v1211_v24, %v1199_v21  ;;  %v1474_v21 = vld [vmem:[%s6432_s15 + $0x30] sm:$0xff]  ;;  %v1476_v24 = vld [vmem:[%s6432_s15 + $0x40] sm:$0xff] }
 0xb95   :  { %1092 = vadd.xlane.f32.xlu0 %v1091_v3  ;;  %v4130_v3 = vld [vmem:[%s6430_s11] ss:$0 sm:$0xff] }
 0xbab   :  { %1188 = vrot.lane.b32.xlu0 %v5750_v62, %s6469_s10  ;;  %v1219_v62 = vld [vmem:[%s6511_s3 + $0x8] sm:$0xff]  ;;  %s6523_s10 = smov 104  }
 0xbac   :  { %v4889_v13 = vpack.c.bf16 %v1219_v62, %v1218_v11 }
 0xbae   :  { %4890 = vmatprep.subr.bf16.mxu0 %v4889_v13 }
 0xc1e   :  { %v1090_v4 = vpop.xlane.xlu0 %1089 }
 0xc1f   :  { %5240 = vrcp.f32 %v1090_v4 }
 0xc22   :  { %v1093_v5 = vpop.xlane.xlu0 %1092 }
 0xc23   :  { %5242 = vrcp.f32 %v1093_v5  ;;  %v4131_v5 = vld [vmem:[%s6431_s12] ss:$0 sm:$0xff] }
 0xc26   :  { %v1189_v32 = vpop.permute.xlu0 %1188 }
 0xc27   :  { %v1210_v22 = vsel %vm370_vm6, %v5720_v18, %v1189_v32 }
 0xc28   :  { %v1213_v25 = vsel %vm1212_vm13, %v1210_v22, %v1197_v34  ;;  %v1473_v34 = vld [vmem:[%s6432_s15 + $0x28] sm:$0xff]  ;;  %v1475_v22 = vld [vmem:[%s6432_s15 + $0x38] sm:$0xff] }
 0xc29   :  { %v5241_v6 = vpop.eup %5240  ;;  %v4913_v32 = vpack.c.bf16 %v1473_v34, %v1472_v20  ;;  %v4140_v34 = vld [vmem:[%s6502_s13 + $0x20] sm:$0xff] }
 0xc2a   :  { %v1095_v7 = vmul.f32 %v5241_v6, %v5237_v61 }
 0xc2c   :  { %4496 = vmatprep.mubr.msk.f32.mxu0 %vm458_vm8, %v1095_v7 }
 0xc2d   :  { %v5243_v9 = vpop.eup %5242 }
 0xc2e   :  { %v1097_v10 = vmul.f32 %v5243_v9, %v5239_v2 }
 0xc30   :  { %4497 = vmatmul.mubr.msk.f32.vlgmr.msra.gmra.mrb[2].mxu0 %vm458_vm8, %v1097_v10 }
 0xc31   :  { %4892 = vmatpush3.bf16.msra.mxu0 %v4889_v13  ;;  %v1469_v13 = vld [vmem:[%s6432_s15 + $0x8] sm:$0xff] }
 0xc32   :  { %4894 = vmatprep.subr.bf16.mxu0 %v4893_v15  ;;  %v4905_v14 = vpack.c.bf16 %v1469_v13, %v1468_v12 }
 0xc35   :  { %4896 = vmatpush3.bf16.msra.mxu0 %v4893_v15  ;;  %v1470_v15 = vld [vmem:[%s6432_s15 + $0x10] sm:$0xff] }
 0xc36   :  { %4906 = vmatprep.subr.bf16.mxu0 %v4905_v14 }
 0xd03   :  { %v4498_v16 = vpop.f32.mrb[2].mxu0 }
 0xd04   :  { %1206 = vrot.lane.b32.xlu1 %v4498_v16, %s6475_s5  ;;  %v1177_v19 = vpop.f32.mrb[3].mxu0  ;;  %v1471_v16 = vld [vmem:[%s6432_s15 + $0x18] sm:$0xff] }
 0xd05   :  { %1204 = vrot.lane.b32.xlu0 %v1177_v19, %s6475_s5  ;;  %v4909_v19 = vpack.c.bf16 %v1471_v16, %v1470_v15 }
 0xd76   :  { %v1207_v23 = vpop.permute.xlu1 %1206 }
 0xd77   :  { %v1205_v26 = vpop.permute.xlu0 %1204  ;;  %v1217_v29 = vsel %vm1215_vm14, %v1214_v27, %v1207_v23  ;;  %v4917_v23 = vpack.c.bf16 %v1475_v22, %v1474_v21  ;;  %v4142_v22 = vld [vmem:[%s6502_s13 + $0x30] sm:$0xff] }
 0xd78   :  { %v1216_v28 = vsel %vm1215_vm14, %v1213_v25, %v1205_v26  ;;  %v1477_v25 = vld [vmem:[%s6432_s15 + $0x48] sm:$0xff]  ;;  %v1478_v26 = vld [vmem:[%s6432_s15 + $0x50] sm:$0xff] }
 0xd79   :  { %4507 = vmatprep.mubr.msk.f32.mxu0 %vm227_vm4, %v1216_v28  ;;  %v4921_v27 = vpack.c.bf16 %v1477_v25, %v1476_v24  ;;  %v1479_v28 = vld [vmem:[%s6432_s15 + $0x58] sm:$0xff] }
 0xd7a   :  { %4508 = vmatmul.mubr.msk.f32.vlgmr.msra.gmra.mrb[4].mxu0 %vm227_vm4, %v1217_v29  ;;  %v4925_v29 = vpack.c.bf16 %v1479_v28, %v1478_v26 }
 0xd7b   :  { %4908 = vmatpush3.bf16.msra.mxu0 %v4905_v14 }
 0xd7c   :  { %4910 = vmatprep.subr.bf16.mxu0 %v4909_v19 }
 0xd7f   :  { %4912 = vmatpush3.bf16.msra.mxu0 %v4909_v19 }
 0xd80   :  { %4914 = vmatprep.subr.bf16.mxu0 %v4913_v32 }
 0xd83   :  { %4916 = vmatpush3.bf16.msra.mxu0 %v4913_v32  ;;  %v4141_v32 = vld [vmem:[%s6502_s13 + $0x28] sm:$0xff] }
 0xd84   :  { %4918 = vmatprep.subr.bf16.mxu0 %v4917_v23  ;;  %v4937_v21 = vpack.c.bf16 %v4141_v32, %v4140_v34 }
 0xd86   :  { %4938 = vmatprep.subr.bf16.mxu1 %v4937_v21 }
 0xd87   :  { %4920 = vmatpush3.bf16.msra.mxu0 %v4917_v23  ;;  %v4143_v23 = vld [vmem:[%s6502_s13 + $0x38] sm:$0xff]  ;;  %s6521_s13 = smov 56  }
 0xd88   :  { %4922 = vmatprep.subr.bf16.mxu0 %v4921_v27  ;;  %v4941_v24 = vpack.c.bf16 %v4143_v23, %v4142_v22 }
 0xd8b   :  { %4924 = vmatpush3.bf16.msra.mxu0 %v4921_v27 }
 0xd8c   :  { %4926 = vmatprep.subr.bf16.mxu0 %v4925_v29 }
 0xd8f   :  { %4928 = vmatpush3.bf16.msra.mxu0 %v4925_v29 }
 0xe4d   :  { %v4509_v18 = vpop.f32.mrb[4].mxu0 }
 0xe4e   :  { %v1304_v17 = vadd.f32 %v4509_v18, %v5616_v55  ;;  %v1294_v31 = vpop.f32.mrb[5].mxu0  ;;  %v1480_v18 = vld [vmem:[%s6432_s15 + $0x60] sm:$0xff] }
 0xe4f   :  { %v1303_v33 = vadd.f32 %v1294_v31, %v5620_v58  ;;  %v1482_v31 = vld [vmem:[%s6432_s15 + $0x70] sm:$0xff] }
 0xe50   :  { %v5827_v36 = vadd.f32 %v4129_v30, %v1304_v17 }
 0xe51   :  { %v5829_v37 = vadd.f32 %v4129_v30, %v1303_v33  ;;  %v1481_v30 = vld [vmem:[%s6432_s15 + $0x68] sm:$0xff]  ;;  %v1483_v33 = vld [vmem:[%s6432_s15 + $0x78] sm:$0xff] }
 0xe52   :  { %v1319_v38 = vsel %vm231_vm5, %v5827_v36, 0.0  ;;  %v4929_v17 = vpack.c.bf16 %v1481_v30, %v1480_v18 }
 0xe53   :  { %1320 = vadd.xlane.f32.xlu1 %v1319_v38  ;;  %v1316_v40 = vsel %vm227_vm4, %v5829_v37, 0.0  ;;  %v4933_v38 = vpack.c.bf16 %v1483_v33, %v1482_v31 }
 0xe54   :  { %1317 = vadd.xlane.f32.xlu0 %v1316_v40  ;;  %4930 = vmatprep.subr.bf16.mxu0 %v4929_v17  ;;  %v4132_v40 = vld [vmem:[%s6433_s14] ss:$0 sm:$0xff] }
 0xe55   :  { %4932 = vmatpush3.bf16.msra.mxu0 %v4929_v17  ;;  %v4138_v17 = vld [vmem:[%s6503_s0 + $0x1] ss:$0 sm:$0xff]  ;;  %s6514_s0 = smov 96  }
 0xe56   :  { %4934 = vmatprep.subr.bf16.mxu0 %v4933_v38 }
 0xe59   :  { %4936 = vmatpush3.bf16.msra.mxu0 %v4933_v38  ;;  %v4139_v38 = vld [vmem:[%s6504_s2 + $0x1] ss:$0 sm:$0xff]  ;;  %s6515_s2 = smov 88  }
 0xee0   :  { %v1321_v41 = vpop.xlane.xlu1 %1320 }
 0xee1   :  { %v1323_v42 = vmul.f32 0.03125, %v1321_v41  ;;  %v1318_v44 = vpop.xlane.xlu0 %1317 }
 0xee2   :  { %v1322_v45 = vmul.f32 0.03125, %v1318_v44 }
 0xee3   :  { %v1325_v55 = vsub.f32 %v5827_v36, %v1323_v42 }
 0xee4   :  { %v1324_v58 = vsub.f32 %v5829_v37, %v1322_v45 }
 0xee5   :  { %v1327_v49 = vmul.f32 %v1325_v55, %v1325_v55 }
 0xee6   :  { %v1326_v47 = vmul.f32 %v1324_v58, %v1324_v58 }
 0xee7   :  { %v1331_v50 = vsel %vm231_vm5, %v1327_v49, 0.0 }
 0xee8   :  { %v1328_v48 = vsel %vm227_vm4, %v1326_v47, 0.0 }
 0xee9   :  { %1329 = vadd.xlane.f32.xlu0 %v1328_v48 }
 0xeed   :  { %1332 = vadd.xlane.f32.xlu0 %v1331_v50 }
 0xf76   :  { %v1330_v59 = vpop.xlane.xlu0 %1329 }
 0xf77   :  { %v1334_v60 = vmul.f32 0.03125, %v1330_v59 }
 0xf79   :  { %v1336_v63 = vadd.f32 1e-12, %v1334_v60 }
 0xf7a   :  { %v1333_v35 = vpop.xlane.xlu0 %1332 }
 0xf7b   :  { %5244 = vrsqrt.f32 %v1336_v63  ;;  %v1335_v61 = vmul.f32 0.03125, %v1333_v35 }
 0xf7d   :  { %v1337_v1 = vadd.f32 1e-12, %v1335_v61 }
 0xf7f   :  { %5246 = vrsqrt.f32 %v1337_v1 }
 0xf85   :  { %v5245_v2 = vpop.eup %5244 }
 0xf86   :  { %v1340_v4 = vmul.f32 %v5245_v2, %v1324_v58 }
 0xf88   :  { %v1348_v6 = vmul.f32 %v4130_v3, %v1340_v4 }
 0xf89   :  { %v5247_v7 = vpop.eup %5246 }
 0xf8a   :  { %v1341_v9 = vmul.f32 %v5247_v7, %v1325_v55  ;;  %v1356_v10 = vadd.f32 %v4131_v5, %v1348_v6 }
 0xf8c   :  { %v1349_v11 = vmul.f32 %v4130_v3, %v1341_v9  ;;  %4518 = vmatprep.mubr.msk.f32.mxu1 %vm227_vm4, %v1356_v10  ;;  %v4135_v3 = vld [vmem:[%s6434_s16] ss:$0 sm:$0xff] }
 0xf8e   :  { %v1357_v62 = vadd.f32 %v4131_v5, %v1349_v11 }
 0xf90   :  { %4519 = vmatmul.mubr.msk.f32.vlgmr.msra.gmra.mrb[16].mxu1 %vm227_vm4, %v1357_v62 }
 0xf91   :  { %4940 = vmatpush3.bf16.msra.mxu1 %v4937_v21 }
 0xf92   :  { %4942 = vmatprep.subr.bf16.mxu1 %v4941_v24 }
 0xf95   :  { %4944 = vmatpush3.bf16.msra.mxu1 %v4941_v24 }
0x1063   :  { %v4520_v41 = vpop.f32.mrb[16].mxu1 }
0x1064   :  { %v1447_v42 = vadd.f32 %v4520_v41, %v4132_v40  ;;  %v1441_v44 = vpop.f32.mrb[17].mxu1 }
0x1065   :  { %v1442_v45 = vadd.f32 %v4132_v40, %v1441_v44 }
0x1066   :  { %v1451_v55 = vmul.f32 %v1447_v42, %v1447_v42 }
0x1067   :  { %v1450_v58 = vmul.f32 %v1442_v45, %v1442_v45 }
0x1068   :  { %v1453_v47 = vmul.f32 %v1451_v55, %v1447_v42  ;;  %v4145_v55 = vld [vmem:[%s6505_s1 + $0x1] ss:$0 sm:$0xff]  ;;  %s6516_s1 = smov 120  }
0x1069   :  { %v1452_v48 = vmul.f32 %v1450_v58, %v1442_v45 }
0x106a   :  { %v1455_v49 = vmul.f32 0.044715, %v1453_v47 }
0x106b   :  { %v1454_v50 = vmul.f32 0.044715, %v1452_v48 }
0x106c   :  { %v1457_v51 = vadd.f32 %v1455_v49, %v1447_v42 }
0x106d   :  { %v1456_v52 = vadd.f32 %v1454_v50, %v1442_v45 }
0x106e   :  { %v1459_v53 = vmul.f32 0.7978846, %v1457_v51 }
0x106f   :  { %v1458_v54 = vmul.f32 0.7978846, %v1456_v52 }
0x1070   :  { %5248 = vtanh.f32 %v1459_v53 }
0x1071   :  { %5250 = vtanh.f32 %v1458_v54 }
0x107a   :  { %v5249_v56 = vpop.eup %5248 }
0x107b   :  { %v5251_v57 = vpop.eup %5250  ;;  %v1463_v59 = vadd.f32 1.0, %v5249_v56 }
0x107c   :  { %v1462_v60 = vadd.f32 1.0, %v5251_v57 }
0x107d   :  { %v1465_v63 = vmul.f32 0.5, %v1463_v59 }
0x107e   :  { %v1464_v35 = vmul.f32 0.5, %v1462_v60 }
0x107f   :  { %v1467_v1 = vmul.f32 %v1465_v63, %v1447_v42 }
0x1080   :  { %v1466_v61 = vmul.f32 %v1464_v35, %v1442_v45 }
0x1082   :  { %4553 = vmatprep.mubr.f32.mxu0 %v1466_v61 }
0x1083   :  { %4554 = vmatmul.mubr.f32.vlgmr.msra.gmra.mrb[6].mxu0 %v1467_v1 }
0x1156   :  { %v4555_v2 = vpop.f32.mrb[6].mxu0 }
0x1157   :  { %v1560_v4 = vadd.f32 %v4555_v2, %v5827_v36  ;;  %v1550_v5 = vpop.f32.mrb[7].mxu0 }
0x1158   :  { %v1559_v6 = vadd.f32 %v1550_v5, %v5829_v37 }
0x1159   :  { %v5915_v7 = vadd.f32 %v4135_v3, %v1560_v4 }
0x115a   :  { %v5917_v9 = vadd.f32 %v4135_v3, %v1559_v6 }
0x115b   :  { %v1577_v10 = vsel %vm231_vm5, %v5915_v7, 0.0 }
0x115c   :  { %1578 = vadd.xlane.f32.xlu1 %v1577_v10  ;;  %v1574_v11 = vsel %vm227_vm4, %v5917_v9, 0.0 }
0x115d   :  { %1575 = vadd.xlane.f32.xlu0 %v1574_v11 }
0x11e9   :  { %v1579_v62 = vpop.xlane.xlu1 %1578 }
0x11ea   :  { %v1581_v12 = vmul.f32 0.03125, %v1579_v62  ;;  %v1576_v13 = vpop.xlane.xlu0 %1575 }
0x11eb   :  { %v1580_v14 = vmul.f32 0.03125, %v1576_v13 }
0x11ec   :  { %v1583_v36 = vsub.f32 %v5915_v7, %v1581_v12 }
0x11ed   :  { %v1582_v37 = vsub.f32 %v5917_v9, %v1580_v14 }
0x11ee   :  { %v1585_v15 = vmul.f32 %v1583_v36, %v1583_v36 }
0x11ef   :  { %v1584_v16 = vmul.f32 %v1582_v37, %v1582_v37 }
0x11f0   :  { %v1589_v19 = vsel %vm231_vm5, %v1585_v15, 0.0 }
0x11f1   :  { %1590 = vadd.xlane.f32.xlu1 %v1589_v19  ;;  %v1586_v20 = vsel %vm227_vm4, %v1584_v16, 0.0 }
0x11f2   :  { %1587 = vadd.xlane.f32.xlu0 %v1586_v20 }
0x127e   :  { %v1591_v25 = vpop.xlane.xlu1 %1590 }
0x127f   :  { %v1593_v26 = vmul.f32 0.03125, %v1591_v25  ;;  %v1588_v27 = vpop.xlane.xlu0 %1587 }
0x1280   :  { %v1592_v28 = vmul.f32 0.03125, %v1588_v27 }
0x1281   :  { %v1595_v29 = vadd.f32 1e-12, %v1593_v26 }
0x1282   :  { %v1594_v18 = vadd.f32 1e-12, %v1592_v28 }
0x1283   :  { %5252 = vrsqrt.f32 %v1595_v29 }
0x1284   :  { %5254 = vrsqrt.f32 %v1594_v18 }
0x128d   :  { %v5253_v30 = vpop.eup %5252 }
0x128e   :  { %v5255_v31 = vpop.eup %5254  ;;  %v1599_v33 = vmul.f32 %v5253_v30, %v1583_v36 }
0x128f   :  { %v1598_v40 = vmul.f32 %v5255_v31, %v1582_v37 }
0x1290   :  { %v1607_v41 = vmul.f32 %v4138_v17, %v1599_v33 }
0x1291   :  { %v1606_v42 = vmul.f32 %v4138_v17, %v1598_v40 }
0x1292   :  { %v1615_v44 = vadd.f32 %v4139_v38, %v1607_v41 }
0x1293   :  { %v1614_v45 = vadd.f32 %v4139_v38, %v1606_v42 }
0x1295   :  { %4564 = vmatprep.mubr.msk.f32.mxu1 %vm227_vm4, %v1614_v45 }
0x1296   :  { %4565 = vmatmul.mubr.msk.f32.vlgmr.msra.gmra.mrb[18].mxu1 %vm227_vm4, %v1615_v44 }
0x1369   :  { %v4566_v58 = vpop.f32.mrb[18].mxu1 }
0x136a   :  { %v5950_v47 = vadd.f32 %v4566_v58, %v4145_v55  ;;  %v1701_v48 = vpop.f32.mrb[19].mxu1 }
0x136b   :  { %v5952_v49 = vadd.f32 %v4145_v55, %v1701_v48  ;;  %v6013_v55 = vld [vmem:[%s6508_s9 + $0x8] sm:$0x3]  ;;  %v6019_v48 = vld [vmem:[%s6508_s9] sm:$0xff]  ;;  %s6520_s9 = smov 48  }
0x136d   :  { %4571 = vmatprep.mubr.msk.f32.mxu1 %vm370_vm6, %v5952_v49  ;;  %v5958_v50 = vpack.i.bf16 %v5950_v47, %v5952_v49 }
0x136f   :  { %5169 = vrot.lane.b32.xlu0 %v5958_v50, %s6514_s0 }
0x1373   :  { %5179 = vrot.lane.b32.xlu0 %v5958_v50, %s6515_s2  ;;  %s6525_s2 = smov 8  }
0x1377   :  { %1913 = vrot.lane.b32.xlu0 %v5952_v49, %s6516_s1 }
0x137b   :  { %5184 = vrot.lane.b32.xlu0 %v5958_v50, %s6517_s27 }
0x137f   :  { %2118 = vrot.lane.b32.xlu0 %v5952_v49, %s6518_s8 }
0x13e1   :  { %v5170_v51 = vpop.permute.xlu0 %5169 }
0x13e2   :  { %v5172_v52 = vunpack.i.h.bf16 %v5170_v51  ;;  %v5171_v53 = vunpack.i.l.bf16 %v5170_v51 }
0x13e4   :  { %v4945_v54 = vpack.c.bf16 %v5172_v52, %v5171_v53 }
0x13e5   :  { %v5180_v56 = vpop.permute.xlu0 %5179 }
0x13e6   :  { %4947 = vmatprep.subr.msk.bf16.mxu1 %vm5673_vm7, %v4945_v54  ;;  %v5182_v15 = vunpack.i.h.bf16 %v5180_v56 }
0x13e7   :  { %4950 = vmatpush3.bf16.xpose.msk.msra.mxu1 %vm5673_vm7, %v4945_v54 }
0x13e9   :  { %v1914_v57 = vpop.permute.xlu0 %1913 }
0x13ed   :  { %v5185_v59 = vpop.permute.xlu0 %5184 }
0x13ee   :  { %v5187_v60 = vunpack.i.h.bf16 %v5185_v59  ;;  %v5186_v63 = vunpack.i.l.bf16 %v5185_v59  ;;  %4572 = vmatmul.mubr.msk.f32.vlgmr.msra.gmra.mrb[20].mxu1 %vm370_vm6, %v5950_v47 }
0x13f0   :  { %v4969_v35 = vpack.c.bf16 %v5187_v60, %v5186_v63 }
0x13f1   :  { %v2119_v61 = vpop.permute.xlu0 %2118 }
0x13f2   :  { %4971 = vmatprep.subr.msk.bf16.mxu0 %vm5673_vm7, %v4969_v35  ;;  %4599 = vmatprep.mubr.msk.f32.mxu0 %vm370_vm6, %v2119_v61 }
0x13f3   :  { %4974 = vmatpush3.bf16.xpose.msk.msra.mxu0 %vm5673_vm7, %v4969_v35 }
0x14c1   :  { %v4573_v1 = vpop.f32.mrb[20].mxu1 }
0x14c2   :  { %v1790_v2 = vpop.f32.mrb[21].mxu1  ;;  %v1800_v3 = vmul.f32 0.35355338, %v4573_v1 }
0x14c3   :  { %v1799_v4 = vmul.f32 0.35355338, %v1790_v2 }
0x14c4   :  { %v1802_v10 = vadd.f32 %v1800_v3, %v5691_v46 }
0x14c5   :  { %v1801_v5 = vadd.f32 %v1799_v4, %v5686_v43  ;;  %v5181_v43 = vunpack.i.l.bf16 %v5180_v56 }
0x14c6   :  { %v1806_v11 = vsel %vm462_vm9, %v1802_v10, -inf }
0x14c7   :  { %v1803_v6 = vsel %vm458_vm8, %v1801_v5, -inf  ;;  %v4957_v34 = vpack.c.bf16 %v5182_v15, %v5181_v43 }
0x14c8   :  { %1804 = vmax.xlane.f32.xlu1 %v1803_v6 }
0x14cc   :  { %1807 = vmax.xlane.f32.xlu1 %v1806_v11 }
0x14dd   :  { %5174 = vrot.lane.b32.xlu1 %v5958_v50, %s6519_s7 }
0x1555   :  { %v1805_v62 = vpop.xlane.xlu1 %1804 }
0x1556   :  { %v1809_v12 = vsub.f32 %v1801_v5, %v1805_v62 }
0x1558   :  { %v1811_v36 = vmul.f32 1.442695, %v1809_v12 }
0x1559   :  { %v1808_v13 = vpop.xlane.xlu1 %1807 }
0x155a   :  { %v1810_v14 = vsub.f32 %v1802_v10, %v1808_v13 }
0x155c   :  { %v1813_v37 = vmul.f32 1.442695, %v1810_v14 }
0x155d   :  { %v5175_v16 = vpop.permute.xlu1 %5174 }
0x155e   :  { %5256 = vpow2.f32 %v1813_v37  ;;  %v5177_v19 = vunpack.i.h.bf16 %v5175_v16  ;;  %v5176_v20 = vunpack.i.l.bf16 %v5175_v16 }
0x155f   :  { %5258 = vpow2.f32 %v1811_v36 }
0x1560   :  { %v4951_v46 = vpack.c.bf16 %v5177_v19, %v5176_v20 }
0x1562   :  { %4953 = vmatprep.subr.msk.bf16.mxu1 %vm5702_vm12, %v4951_v46 }
0x1563   :  { %4956 = vmatpush3.bf16.msk.msra.mxu1 %vm5702_vm12, %v4951_v46 }
0x1564   :  { %4959 = vmatprep.subr.msk.bf16.mxu1 %vm5673_vm7, %v4957_v34 }
0x1568   :  { %v5257_v32 = vpop.eup %5256 }
0x1569   :  { %v1818_v21 = vsel %vm462_vm9, %v5257_v32, 0.0  ;;  %v5259_v22 = vpop.eup %5258 }
0x156a   :  { %1819 = vadd.xlane.f32.xlu1 %v1818_v21  ;;  %v1815_v23 = vsel %vm458_vm8, %v5259_v22, 0.0 }
0x156e   :  { %1816 = vadd.xlane.f32.xlu1 %v1815_v23 }
0x157f   :  { %1915 = vrot.lane.b32.xlu1 %v5950_v47, %s6516_s1  ;;  %s6526_s1 = smov 16  }
0x1583   :  { %2120 = vrot.lane.b32.xlu1 %v5950_v47, %s6518_s8  ;;  %s6530_s8 = sld [smem:[#allocation17_spill]] }
0x15f7   :  { %v1820_v24 = vpop.xlane.xlu1 %1819 }
0x15f8   :  { %5260 = vrcp.f32 %v1820_v24 }
0x15fb   :  { %v1817_v25 = vpop.xlane.xlu1 %1816 }
0x15fc   :  { %5262 = vrcp.f32 %v1817_v25 }
0x15ff   :  { %v1916_v26 = vpop.permute.xlu1 %1915 }
0x1602   :  { %v5261_v28 = vpop.eup %5260 }
0x1603   :  { %v2121_v27 = vpop.permute.xlu1 %2120  ;;  %v1824_v30 = vmul.f32 %v5261_v28, %v5257_v32 }
0x1604   :  { %4600 = vmatmul.mubr.msk.f32.vlgmr.msra.gmra.mrb[8].mxu0 %vm370_vm6, %v2121_v27 }
0x1606   :  { %v5263_v29 = vpop.eup %5262 }
0x1607   :  { %v1822_v18 = vmul.f32 %v5263_v29, %v5259_v22 }
0x1609   :  { %4578 = vmatprep.mubr.msk.f32.mxu1 %vm458_vm8, %v1822_v18 }
0x160a   :  { %4579 = vmatmul.mubr.msk.f32.vlgmr.msra.gmra.mrb[22].mxu1 %vm458_vm8, %v1824_v30 }
0x160b   :  { %4962 = vmatpush3.bf16.xpose.msk.msra.mxu1 %vm5673_vm7, %v4957_v34  ;;  %4585 = vmatprep.mubr.msk.f32.mxu1 %vm370_vm6, %v1914_v57 }
0x1612   :  { %4586 = vmatmul.mubr.msk.f32.vlgmr.msra.gmra.mrb[24].mxu1 %vm370_vm6, %v1916_v26 }
0x16d7   :  { %v4601_v17 = vpop.f32.mrb[8].mxu0 }
0x16d8   :  { %v2200_v31 = vpop.f32.mrb[9].mxu0  ;;  %v2210_v53 = vmul.f32 0.35355338, %v4601_v17 }
0x16d9   :  { %v2209_v44 = vmul.f32 0.35355338, %v2200_v31 }
0x16da   :  { %v2212_v59 = vadd.f32 %v6013_v55, %v2210_v53 }
0x16db   :  { %v2211_v56 = vadd.f32 %v6019_v48, %v2209_v44 }
0x16dc   :  { %v2216_v60 = vsel %vm462_vm9, %v2212_v59, -inf }
0x16dd   :  { %v6006_v33 = vpop.f32.mrb[22].mxu1  ;;  %v2213_v57 = vsel %vm458_vm8, %v2211_v56, -inf }
0x16de   :  { %v6008_v38 = vpop.f32.mrb[23].mxu1 }
0x16e5   :  { %v4587_v40 = vpop.f32.mrb[24].mxu1 }
0x16e6   :  { %v2005_v41 = vmul.f32 0.35355338, %v4587_v40  ;;  %v1995_v42 = vpop.f32.mrb[25].mxu1 }
0x16e7   :  { %v2004_v45 = vmul.f32 0.35355338, %v1995_v42 }
0x16e8   :  { %v2007_v58 = vadd.f32 %v6013_v55, %v2005_v41 }
0x16e9   :  { %v2006_v51 = vadd.f32 %v6019_v48, %v2004_v45 }
0x16ea   :  { %v2011_v52 = vsel %vm462_vm9, %v2007_v58, -inf }
0x16eb   :  { %2012 = vmax.xlane.f32.xlu1 %v2011_v52  ;;  %v2008_v54 = vsel %vm458_vm8, %v2006_v51, -inf }
0x16ec   :  { %2009 = vmax.xlane.f32.xlu0 %v2008_v54 }
0x16f0   :  { %2214 = vmax.xlane.f32.xlu0 %v2213_v57 }
0x16f4   :  { %2217 = vmax.xlane.f32.xlu0 %v2216_v60 }
0x1778   :  { %v2013_v61 = vpop.xlane.xlu1 %2012 }
0x1779   :  { %v2010_v63 = vpop.xlane.xlu0 %2009  ;;  %v2015_v3 = vsub.f32 %v2007_v58, %v2013_v61 }
0x177a   :  { %v2014_v35 = vsub.f32 %v2006_v51, %v2010_v63 }
0x177b   :  { %v2018_v11 = vmul.f32 1.442695, %v2015_v3 }
0x177c   :  { %v2016_v4 = vmul.f32 1.442695, %v2014_v35 }
0x177d   :  { %v2215_v1 = vpop.xlane.xlu0 %2214 }
0x177e   :  { %v2219_v2 = vsub.f32 %v2211_v56, %v2215_v1 }
0x1780   :  { %v2221_v5 = vmul.f32 1.442695, %v2219_v2 }
0x1781   :  { %v2218_v6 = vpop.xlane.xlu0 %2217 }
0x1782   :  { %5264 = vpow2.f32 %v2221_v5  ;;  %v2220_v10 = vsub.f32 %v2212_v59, %v2218_v6 }
0x1783   :  { %5266 = vpow2.f32 %v2016_v4 }
0x1784   :  { %v2223_v62 = vmul.f32 1.442695, %v2220_v10 }
0x1786   :  { %5268 = vpow2.f32 %v2223_v62 }
0x1787   :  { %5270 = vpow2.f32 %v2018_v11 }
0x178c   :  { %v5265_v12 = vpop.eup %5264 }
0x178d   :  { %v2225_v13 = vsel %vm458_vm8, %v5265_v12, 0.0  ;;  %v5267_v14 = vpop.eup %5266 }
0x178e   :  { %2226 = vadd.xlane.f32.xlu0 %v2225_v13  ;;  %v2020_v37 = vsel %vm458_vm8, %v5267_v14, 0.0 }
0x1790   :  { %v5269_v36 = vpop.eup %5268 }
0x1791   :  { %v2228_v15 = vsel %vm462_vm9, %v5269_v36, 0.0  ;;  %v5271_v16 = vpop.eup %5270 }
0x1792   :  { %2021 = vadd.xlane.f32.xlu0 %v2020_v37  ;;  %2229 = vadd.xlane.f32.xlu1 %v2228_v15  ;;  %v2023_v43 = vsel %vm462_vm9, %v5271_v16, 0.0 }
0x1796   :  { %2024 = vadd.xlane.f32.xlu1 %v2023_v43 }
0x17a7   :  { %5194 = vrot.lane.b32.xlu1 %v5958_v50, %s6520_s9 }
0x17a8   :  { %5189 = vrot.lane.b32.xlu0 %v5958_v50, %s6521_s13 }
0x17ab   :  { %5199 = vrot.lane.b32.xlu1 %v5958_v50, %s6522_s4  ;;  %s6527_s4 = smov 24  }
0x17ac   :  { %2325 = vrot.lane.b32.xlu0 %v5950_v47, %s6523_s10 }
0x17af   :  { %2323 = vrot.lane.b32.xlu1 %v5952_v49, %s6523_s10 }
0x181b   :  { %v2227_v19 = vpop.xlane.xlu0 %2226 }
0x181f   :  { %v2230_v20 = vpop.xlane.xlu1 %2229  ;;  %v2022_v46 = vpop.xlane.xlu0 %2021 }
0x1820   :  { %5272 = vrcp.f32 %v2022_v46  ;;  %v4178_v46 = vld [vmem:[%s6511_s3 + $0x30] sm:$0xff] }
0x1821   :  { %5274 = vrcp.f32 %v2227_v19  ;;  %v4176_v19 = vld [vmem:[%s6511_s3 + $0x20] sm:$0xff] }
0x1823   :  { %v2025_v34 = vpop.xlane.xlu1 %2024  ;;  %v5190_v32 = vpop.permute.xlu0 %5189 }
0x1824   :  { %5276 = vrcp.f32 %v2025_v34  ;;  %v5192_v21 = vunpack.i.h.bf16 %v5190_v32  ;;  %v5191_v22 = vunpack.i.l.bf16 %v5190_v32  ;;  %v4179_v32 = vld [vmem:[%s6511_s3 + $0x38] sm:$0xff] }
0x1825   :  { %5278 = vrcp.f32 %v2230_v20  ;;  %v4177_v20 = vld [vmem:[%s6511_s3 + $0x28] sm:$0xff] }
0x1826   :  { %v4963_v23 = vpack.c.bf16 %v5192_v21, %v5191_v22  ;;  %v4993_v34 = vpack.c.bf16 %v4177_v20, %v4176_v19  ;;  %v4997_v21 = vpack.c.bf16 %v4179_v32, %v4178_v46  ;;  %v4197_v19 = vld [vmem:[%s6432_s15 + $0x88] sm:$0xff]  ;;  %v4198_v46 = vld [vmem:[%s6432_s15 + $0x90] sm:$0xff] }
0x1827   :  { %v5195_v24 = vpop.permute.xlu1 %5194  ;;  %v2326_v58 = vpop.permute.xlu0 %2325 }
0x1828   :  { %v5197_v25 = vunpack.i.h.bf16 %v5195_v24  ;;  %v5196_v26 = vunpack.i.l.bf16 %v5195_v24  ;;  %4965 = vmatprep.subr.msk.bf16.mxu1 %vm5702_vm12, %v4963_v23 }
0x1829   :  { %4968 = vmatpush3.bf16.msk.msra.mxu1 %vm5702_vm12, %v4963_v23 }
0x182a   :  { %v4975_v47 = vpack.c.bf16 %v5197_v25, %v5196_v26  ;;  %v5273_v49 = vpop.eup %5272 }
0x182b   :  { %v5200_v27 = vpop.permute.xlu1 %5199  ;;  %v2027_v28 = vmul.f32 %v5273_v49, %v5267_v14  ;;  %v5275_v29 = vpop.eup %5274 }
0x182c   :  { %4977 = vmatprep.subr.msk.bf16.mxu1 %vm5702_vm12, %v4975_v47  ;;  %v5202_v18 = vunpack.i.h.bf16 %v5200_v27  ;;  %v5201_v30 = vunpack.i.l.bf16 %v5200_v27  ;;  %v2232_v41 = vmul.f32 %v5275_v29, %v5265_v12 }
0x182d   :  { %4592 = vmatprep.mubr.msk.f32.mxu1 %vm458_vm8, %v2027_v28 }
0x182e   :  { %v5277_v17 = vpop.eup %5276  ;;  %v4981_v42 = vpack.c.bf16 %v5202_v18, %v5201_v30 }
0x182f   :  { %v2029_v31 = vmul.f32 %v5277_v17, %v5271_v16  ;;  %v5279_v40 = vpop.eup %5278  ;;  %v2324_v45 = vpop.permute.xlu1 %2323 }
0x1830   :  { %v2234_v44 = vmul.f32 %v5279_v40, %v5269_v36 }
0x1831   :  { %4593 = vmatmul.mubr.msk.f32.vlgmr.msra.gmra.mrb[26].mxu1 %vm458_vm8, %v2029_v31 }
0x1832   :  { %4980 = vmatpush3.bf16.msk.msra.mxu1 %vm5702_vm12, %v4975_v47  ;;  %4606 = vmatprep.mubr.msk.f32.mxu1 %vm458_vm8, %v2232_v41 }
0x1833   :  { %4983 = vmatprep.subr.msk.bf16.mxu1 %vm5673_vm7, %v4981_v42 }
0x1835   :  { %4607 = vmatmul.mubr.msk.f32.vlgmr.msra.gmra.mrb[28].mxu1 %vm458_vm8, %v2234_v44 }
0x1836   :  { %4613 = vmatprep.mubr.msk.f32.mxu1 %vm370_vm6, %v2324_v45 }
0x183b   :  { %4986 = vmatpush3.bf16.xpose.msk.msra.mxu1 %vm5673_vm7, %v4981_v42 }
0x1842   :  { %4614 = vmatmul.mubr.msk.f32.vlgmr.msra.gmra.mrb[30].mxu1 %vm370_vm6, %v2326_v58 }
0x1904   :  { %v4594_v51 = vpop.f32.mrb[26].mxu1 }
0x1905   :  { %v2109_v52 = vpop.f32.mrb[27].mxu1 }
0x1908   :  { %v4608_v53 = vpop.f32.mrb[28].mxu1 }
0x1909   :  { %v2314_v54 = vpop.f32.mrb[29].mxu1 }
0x1915   :  { %v4615_v56 = vpop.f32.mrb[30].mxu1 }
0x1916   :  { %v2415_v57 = vmul.f32 0.35355338, %v4615_v56  ;;  %v2405_v59 = vpop.f32.mrb[31].mxu1 }
0x1917   :  { %v2414_v60 = vmul.f32 0.35355338, %v2405_v59 }
0x1918   :  { %v2417_v63 = vadd.f32 %v6013_v55, %v2415_v57 }
0x1919   :  { %v2416_v35 = vadd.f32 %v6019_v48, %v2414_v60 }
0x191a   :  { %v2421_v61 = vsel %vm462_vm9, %v2417_v63, -inf }
0x191b   :  { %2422 = vmax.xlane.f32.xlu0 %v2421_v61  ;;  %v2418_v39 = vsel %vm458_vm8, %v2416_v35, -inf  ;;  %v4189_v61 = vld [vmem:[%s6513_s19 + $0x28] sm:$0xff] }
0x191c   :  { %2419 = vmax.xlane.f32.xlu1 %v2418_v39 }
0x192d   :  { %5204 = vrot.lane.b32.xlu1 %v5958_v50, %s6524_s26 }
0x1931   :  { %2532 = vrot.lane.b32.xlu1 %v4594_v51, %s6525_s2 }
0x1935   :  { %2538 = vrot.lane.b32.xlu1 %v2314_v54, %s6526_s1 }
0x1939   :  { %2540 = vrot.lane.b32.xlu1 %v4608_v53, %s6526_s1 }
0x19a8   :  { %v2423_v1 = vpop.xlane.xlu0 %2422 }
0x19a9   :  { %v2425_v2 = vsub.f32 %v2417_v63, %v2423_v1  ;;  %v2420_v55 = vpop.xlane.xlu1 %2419  ;;  %v4190_v1 = vld [vmem:[%s6513_s19 + $0x30] sm:$0xff] }
0x19aa   :  { %v2424_v3 = vsub.f32 %v2416_v35, %v2420_v55  ;;  %v4188_v35 = vld [vmem:[%s6513_s19 + $0x20] sm:$0xff] }
0x19ab   :  { %v2428_v48 = vmul.f32 1.442695, %v2425_v2  ;;  %v5001_v39 = vpack.c.bf16 %v4189_v61, %v4188_v35  ;;  %v4191_v2 = vld [vmem:[%s6513_s19 + $0x38] sm:$0xff] }
0x19ac   :  { %v2426_v4 = vmul.f32 1.442695, %v2424_v3  ;;  %v5005_v55 = vpack.c.bf16 %v4191_v2, %v4190_v1 }
0x19ad   :  { %v5205_v5 = vpop.permute.xlu1 %5204  ;;  %5002 = vmatprep.subr.bf16.mxu1 %v5001_v39 }
0x19ae   :  { %5280 = vpow2.f32 %v2426_v4  ;;  %v5207_v6 = vunpack.i.h.bf16 %v5205_v5  ;;  %v5206_v10 = vunpack.i.l.bf16 %v5205_v5  ;;  %5004 = vmatpush3.bf16.msra.mxu1 %v5001_v39 }
0x19af   :  { %5282 = vpow2.f32 %v2428_v48  ;;  %5006 = vmatprep.subr.bf16.mxu1 %v5005_v55 }
0x19b0   :  { %v4987_v11 = vpack.c.bf16 %v5207_v6, %v5206_v10 }
0x19b1   :  { %v2533_v24 = vpop.permute.xlu1 %2532 }
0x19b2   :  { %4989 = vmatprep.subr.msk.bf16.mxu0 %vm5702_vm12, %v4987_v11  ;;  %v2553_v28 = vsel %vm370_vm6, %v6006_v33, %v2533_v24  ;;  %5008 = vmatpush3.bf16.msra.mxu1 %v5005_v55  ;;  %v4202_v24 = vld [vmem:[%s6432_s15 + $0xb0] sm:$0xff] }
0x19b3   :  { %4992 = vmatpush3.bf16.msk.msra.mxu0 %vm5702_vm12, %v4987_v11  ;;  %5041 = vmatprep.subr.bf16.mxu1 %v5350_v0 }
0x19b4   :  { %4994 = vmatprep.subr.bf16.mxu0 %v4993_v34 }
0x19b5   :  { %v2539_v25 = vpop.permute.xlu1 %2538 }
0x19b8   :  { %v5281_v50 = vpop.eup %5280 }
0x19b9   :  { %v2430_v62 = vsel %vm458_vm8, %v5281_v50, 0.0  ;;  %v5283_v12 = vpop.eup %5282  ;;  %v2541_v47 = vpop.permute.xlu1 %2540 }
0x19ba   :  { %2431 = vadd.xlane.f32.xlu0 %v2430_v62  ;;  %v2433_v13 = vsel %vm462_vm9, %v5283_v12, 0.0  ;;  %v2555_v30 = vsel %vm1212_vm13, %v2553_v28, %v2541_v47  ;;  %v4204_v47 = vld [vmem:[%s6432_s15 + $0xc0] sm:$0xff] }
0x19be   :  { %2434 = vadd.xlane.f32.xlu0 %v2433_v13 }
0x19d4   :  { %2530 = vrot.lane.b32.xlu0 %v2109_v52, %s6525_s2  ;;  %s6529_s2 = sld [smem:[#allocation16_spill]] }
0x1a47   :  { %v2432_v14 = vpop.xlane.xlu0 %2431 }
0x1a48   :  { %5284 = vrcp.f32 %v2432_v14 }
0x1a4b   :  { %v2435_v36 = vpop.xlane.xlu0 %2434 }
0x1a4c   :  { %5286 = vrcp.f32 %v2435_v36 }
0x1a4f   :  { %v2531_v26 = vpop.permute.xlu0 %2530 }
0x1a50   :  { %v2552_v49 = vsel %vm370_vm6, %v6008_v38, %v2531_v26  ;;  %v4183_v38 = vld [vmem:[%s6512_s29 + $0x1] ss:$0 sm:$0xff] }
0x1a51   :  { %v2554_v29 = vsel %vm1212_vm13, %v2552_v49, %v2539_v25  ;;  %v4203_v25 = vld [vmem:[%s6432_s15 + $0xb8] sm:$0xff]  ;;  %v4205_v49 = vld [vmem:[%s6432_s15 + $0xc8] sm:$0xff] }
0x1a52   :  { %v5285_v37 = vpop.eup %5284  ;;  %v5021_v26 = vpack.c.bf16 %v4203_v25, %v4202_v24  ;;  %v5025_v28 = vpack.c.bf16 %v4205_v49, %v4204_v47  ;;  %v3136_v24 = vld [vmem:[%s6435_s24 + $0x18] sm:$0xff] }
0x1a53   :  { %v2437_v15 = vmul.f32 %v5285_v37, %v5281_v50  ;;  %v4186_v50 = vld [vmem:[%s6430_s11 + $0x1] ss:$0 sm:$0xff] }
0x1a55   :  { %4620 = vmatprep.mubr.msk.f32.mxu0 %vm458_vm8, %v2437_v15 }
0x1a56   :  { %v5287_v16 = vpop.eup %5286 }
0x1a57   :  { %v2439_v43 = vmul.f32 %v5287_v16, %v5283_v12  ;;  %v4187_v12 = vld [vmem:[%s6431_s12 + $0x1] ss:$0 sm:$0xff] }
0x1a59   :  { %4621 = vmatmul.mubr.msk.f32.vlgmr.msra.gmra.mrb[10].mxu0 %vm458_vm8, %v2439_v43  ;;  %v4196_v43 = vld [vmem:[%s6432_s15 + $0x80] sm:$0xff] }
0x1a5a   :  { %4996 = vmatpush3.bf16.msra.mxu0 %v4993_v34  ;;  %v5009_v20 = vpack.c.bf16 %v4197_v19, %v4196_v43  ;;  %v4199_v34 = vld [vmem:[%s6432_s15 + $0x98] sm:$0xff] }
0x1a5b   :  { %4998 = vmatprep.subr.bf16.mxu0 %v4997_v21  ;;  %v5013_v32 = vpack.c.bf16 %v4199_v34, %v4198_v46  ;;  %v5367_v34 = vmov 0.0  }
0x1a5e   :  { %5000 = vmatpush3.bf16.msra.mxu0 %v4997_v21  ;;  %v4200_v21 = vld [vmem:[%s6432_s15 + $0xa0] sm:$0xff] }
0x1a5f   :  { %5010 = vmatprep.subr.bf16.mxu0 %v5009_v20 }
0x1b2c   :  { %v4622_v22 = vpop.f32.mrb[10].mxu0 }
0x1b2d   :  { %2548 = vrot.lane.b32.xlu1 %v4622_v22, %s6527_s4  ;;  %v2519_v23 = vpop.f32.mrb[11].mxu0  ;;  %v4201_v22 = vld [vmem:[%s6432_s15 + $0xa8] sm:$0xff] }
0x1b2e   :  { %2546 = vrot.lane.b32.xlu0 %v2519_v23, %s6527_s4  ;;  %v5017_v23 = vpack.c.bf16 %v4201_v22, %v4200_v21  ;;  %v3134_v21 = vld [vmem:[%s6435_s24 + $0x8] sm:$0xff]  ;;  %s6528_s4 = sld [smem:[#allocation15_spill]] }
0x1b9f   :  { %v2549_v27 = vpop.permute.xlu1 %2548 }
0x1ba0   :  { %v2547_v18 = vpop.permute.xlu0 %2546  ;;  %v2557_v31 = vsel %vm1215_vm14, %v2555_v30, %v2549_v27  ;;  %v4206_v27 = vld [vmem:[%s6432_s15 + $0xd0] sm:$0xff]  ;;  %v4208_v30 = vld [vmem:[%s6432_s15 + $0xe0] sm:$0xff] }
0x1ba1   :  { %v2556_v17 = vsel %vm1215_vm14, %v2554_v29, %v2547_v18  ;;  %v4207_v29 = vld [vmem:[%s6432_s15 + $0xd8] sm:$0xff] }
0x1ba2   :  { %4631 = vmatprep.mubr.msk.f32.mxu0 %vm227_vm4, %v2556_v17  ;;  %v5029_v18 = vpack.c.bf16 %v4207_v29, %v4206_v27  ;;  %v4209_v17 = vld [vmem:[%s6432_s15 + $0xe8] sm:$0xff] }
0x1ba3   :  { %4632 = vmatmul.mubr.msk.f32.vlgmr.msra.gmra.mrb[12].mxu0 %vm227_vm4, %v2557_v31  ;;  %v5033_v31 = vpack.c.bf16 %v4209_v17, %v4208_v30  ;;  %v4214_v30 = vld [vmem:[%s6436_s17] ss:$0 sm:$0xff] }
0x1ba4   :  { %5012 = vmatpush3.bf16.msra.mxu0 %v5009_v20 }
0x1ba5   :  { %5014 = vmatprep.subr.bf16.mxu0 %v5013_v32 }
0x1ba8   :  { %5016 = vmatpush3.bf16.msra.mxu0 %v5013_v32  ;;  %v3133_v32 = vld [vmem:[%s6435_s24] sm:$0xff] }
0x1ba9   :  { %5018 = vmatprep.subr.bf16.mxu0 %v5017_v23  ;;  %v6211_v22 = vpack.c.bf16 %v3134_v21, %v3133_v32 }
0x1bac   :  { %5020 = vmatpush3.bf16.msra.mxu0 %v5017_v23  ;;  %v3135_v23 = vld [vmem:[%s6435_s24 + $0x10] sm:$0xff] }
0x1bad   :  { %5022 = vmatprep.subr.bf16.mxu0 %v5021_v26  ;;  %v6221_v25 = vpack.c.bf16 %v3136_v24, %v3135_v23 }
0x1bb0   :  { %5024 = vmatpush3.bf16.msra.mxu0 %v5021_v26 }
0x1bb1   :  { %5026 = vmatprep.subr.bf16.mxu0 %v5025_v28 }
0x1bb4   :  { %5028 = vmatpush3.bf16.msra.mxu0 %v5025_v28 }
0x1bb5   :  { %5030 = vmatprep.subr.bf16.mxu0 %v5029_v18 }
0x1bb8   :  { %5032 = vmatpush3.bf16.msra.mxu0 %v5029_v18 }
0x1bb9   :  { %5034 = vmatprep.subr.bf16.mxu0 %v5033_v31 }
0x1bbc   :  { %5036 = vmatpush3.bf16.msra.mxu0 %v5033_v31 }
0x1c76   :  { %v4633_v40 = vpop.f32.mrb[12].mxu0 }
0x1c77   :  { %v2645_v33 = vadd.f32 %v4633_v40, %v5915_v7  ;;  %v2635_v41 = vpop.f32.mrb[13].mxu0  ;;  %v4210_v40 = vld [vmem:[%s6432_s15 + $0xf0] sm:$0xff] }
0x1c78   :  { %v2644_v42 = vadd.f32 %v2635_v41, %v5917_v9  ;;  %v4193_v41 = vld [vmem:[%s6433_s14 + $0x1] ss:$0 sm:$0xff] }
0x1c79   :  { %v6107_v44 = vadd.f32 %v4183_v38, %v2645_v33 }
0x1c7a   :  { %v6109_v45 = vadd.f32 %v4183_v38, %v2644_v42  ;;  %v4211_v38 = vld [vmem:[%s6432_s15 + $0xf8] sm:$0xff] }
0x1c7b   :  { %v2663_v58 = vsel %vm231_vm5, %v6107_v44, 0.0  ;;  %v5037_v33 = vpack.c.bf16 %v4211_v38, %v4210_v40  ;;  %v4215_v38 = vld [vmem:[%s6437_s18] ss:$0 sm:$0xff] }
0x1c7c   :  { %2664 = vadd.xlane.f32.xlu1 %v2663_v58  ;;  %v2660_v51 = vsel %vm227_vm4, %v6109_v45, 0.0 }
0x1c7d   :  { %2661 = vadd.xlane.f32.xlu0 %v2660_v51  ;;  %5038 = vmatprep.subr.bf16.mxu0 %v5037_v33 }
0x1c7e   :  { %5040 = vmatpush3.bf16.msra.mxu0 %v5037_v33 }
0x1c7f   :  { %5071 = vmatprep.subr.bf16.mxu0 %v5350_v0 }
0x1d09   :  { %v2665_v52 = vpop.xlane.xlu1 %2664 }
0x1d0a   :  { %v2667_v53 = vmul.f32 0.03125, %v2665_v52  ;;  %v2662_v54 = vpop.xlane.xlu0 %2661 }
0x1d0b   :  { %v2666_v56 = vmul.f32 0.03125, %v2662_v54 }
0x1d0c   :  { %v2669_v7 = vsub.f32 %v6107_v44, %v2667_v53 }
0x1d0d   :  { %v2668_v9 = vsub.f32 %v6109_v45, %v2666_v56 }
0x1d0e   :  { %v2671_v60 = vmul.f32 %v2669_v7, %v2669_v7 }
0x1d0f   :  { %v2670_v57 = vmul.f32 %v2668_v9, %v2668_v9 }
0x1d10   :  { %v2675_v63 = vsel %vm231_vm5, %v2671_v60, 0.0 }
0x1d11   :  { %v2672_v59 = vsel %vm227_vm4, %v2670_v57, 0.0 }
0x1d12   :  { %2673 = vadd.xlane.f32.xlu0 %v2672_v59 }
0x1d16   :  { %2676 = vadd.xlane.f32.xlu0 %v2675_v63 }
0x1d9f   :  { %v2674_v3 = vpop.xlane.xlu0 %2673 }
0x1da0   :  { %v2678_v48 = vmul.f32 0.03125, %v2674_v3 }
0x1da2   :  { %v2680_v4 = vadd.f32 1e-12, %v2678_v48 }
0x1da3   :  { %v2677_v5 = vpop.xlane.xlu0 %2676 }
0x1da4   :  { %5288 = vrsqrt.f32 %v2680_v4  ;;  %v2679_v6 = vmul.f32 0.03125, %v2677_v5 }
0x1da6   :  { %v2681_v10 = vadd.f32 1e-12, %v2679_v6  ;;  %v4213_v6 = vld [vmem:[%s6434_s16 + $0x1] ss:$0 sm:$0xff] }
0x1da8   :  { %5290 = vrsqrt.f32 %v2681_v10 }
0x1dae   :  { %v5289_v11 = vpop.eup %5288 }
0x1daf   :  { %v2684_v62 = vmul.f32 %v5289_v11, %v2668_v9 }
0x1db1   :  { %v2692_v13 = vmul.f32 %v4186_v50, %v2684_v62 }
0x1db2   :  { %v5291_v14 = vpop.eup %5290 }
0x1db3   :  { %v2685_v36 = vmul.f32 %v5291_v14, %v2669_v7  ;;  %v2700_v37 = vadd.f32 %v4187_v12, %v2692_v13 }
0x1db5   :  { %v2693_v15 = vmul.f32 %v4186_v50, %v2685_v36  ;;  %4642 = vmatprep.mubr.msk.f32.mxu1 %vm227_vm4, %v2700_v37 }
0x1db7   :  { %v2701_v16 = vadd.f32 %v4187_v12, %v2693_v15 }
0x1db9   :  { %4643 = vmatmul.mubr.msk.f32.vlgmr.msra.gmra.mrb[32].mxu1 %vm227_vm4, %v2701_v16 }
0x1dba   :  { %4684 = vmatprep.mubr.msk.f32.mxu1 %vm5366_vm15, %v5367_v34 }
0x1e8c   :  { %v4644_v42 = vpop.f32.mrb[32].mxu1 }
0x1e8d   :  { %v2793_v58 = vadd.f32 %v4644_v42, %v4193_v41  ;;  %v2787_v51 = vpop.f32.mrb[33].mxu1  ;;  %v3041_v42 = vld [vmem:[%s6438_s22] sm:$0xff] }
0x1e8e   :  { %v2788_v52 = vadd.f32 %v4193_v41, %v2787_v51 }
0x1e8f   :  { %v2797_v53 = vmul.f32 %v2793_v58, %v2793_v58 }
0x1e90   :  { %v2796_v54 = vmul.f32 %v2788_v52, %v2788_v52 }
0x1e91   :  { %v2799_v56 = vmul.f32 %v2797_v53, %v2793_v58 }
0x1e92   :  { %v2798_v7 = vmul.f32 %v2796_v54, %v2788_v52 }
0x1e93   :  { %v2801_v9 = vmul.f32 0.044715, %v2799_v56  ;;  %v3043_v56 = vld [vmem:[%s6438_s22 + $0x10] sm:$0xff] }
0x1e94   :  { %v2800_v57 = vmul.f32 0.044715, %v2798_v7  ;;  %v3044_v7 = vld [vmem:[%s6438_s22 + $0x18] sm:$0xff] }
0x1e95   :  { %v2803_v59 = vadd.f32 %v2801_v9, %v2793_v58  ;;  %v2962_v9 = vld [vmem:[%s6439_s20] sm:$0x3] }
0x1e96   :  { %v2802_v60 = vadd.f32 %v2800_v57, %v2788_v52  ;;  %v5049_v57 = vpack.c.bf16 %v3044_v7, %v3043_v56 }
0x1e97   :  { %v2805_v63 = vmul.f32 0.7978846, %v2803_v59  ;;  %v3039_v59 = vld [vmem:[%s6440_s21] sm:$0xff] }
0x1e98   :  { %v2804_v35 = vmul.f32 0.7978846, %v2802_v60 }
0x1e99   :  { %5292 = vtanh.f32 %v2805_v63 }
0x1e9a   :  { %5294 = vtanh.f32 %v2804_v35  ;;  %v4218_v35 = vld [vmem:[%s6441_s23] ss:$0 sm:$0xff]  ;;  %s5368_s23 = smov 32  }
0x1ea3   :  { %v5293_v61 = vpop.eup %5292 }
0x1ea4   :  { %v5295_v39 = vpop.eup %5294  ;;  %v2809_v1 = vadd.f32 1.0, %v5293_v61 }
0x1ea5   :  { %v2808_v2 = vadd.f32 1.0, %v5295_v39 }
0x1ea6   :  { %v2811_v55 = vmul.f32 0.5, %v2809_v1 }
0x1ea7   :  { %v2810_v3 = vmul.f32 0.5, %v2808_v2  ;;  %v6279_v2 = vld [vmem:[%s6442_s25] ss:$0 sm:$0xff] }
0x1ea8   :  { %v2813_v4 = vmul.f32 %v2811_v55, %v2793_v58  ;;  %v3042_v58 = vld [vmem:[%s6438_s22 + $0x8] sm:$0xff] }
0x1ea9   :  { %v2812_v48 = vmul.f32 %v2810_v3, %v2788_v52  ;;  %v5045_v53 = vpack.c.bf16 %v3042_v58, %v3041_v42 }
0x1eab   :  { %4677 = vmatprep.mubr.f32.mxu0 %v2812_v48 }
0x1eac   :  { %4678 = vmatmul.mubr.f32.vlgmr.msra.gmra.mrb[14].mxu0 %v2813_v4 }
0x1ead   :  { %4739 = vmatprep.mubr.msk.f32.mxu0 %vm5366_vm15, %v5367_v34  ;;  %5073 = vmatpush3.bf16.msra.mxu0 %v6211_v22 }
0x1eae   :  { %5074 = vmatprep.subr.bf16.mxu0 %v5350_v0 }
0x1eb1   :  { %5076 = vmatpush3.bf16.msra.mxu0 %v6221_v25 }
0x1eb2   :  { %5083 = vmatprep.subr.bf16.mxu0 %v5350_v0 }
0x1f7f   :  { %v4679_v5 = vpop.f32.mrb[14].mxu0 }
0x1f80   :  { %v2907_v10 = vadd.f32 %v4679_v5, %v6107_v44  ;;  %v2897_v11 = vpop.f32.mrb[15].mxu0 }
0x1f81   :  { %v2906_v50 = vadd.f32 %v2897_v11, %v6109_v45 }
0x1f82   :  { %v2917_v62 = vadd.f32 %v4213_v6, %v2907_v10 }
0x1f83   :  { %v2916_v12 = vadd.f32 %v4213_v6, %v2906_v50 }
0x1f84   :  { %v2923_v13 = vsel %vm231_vm5, %v2917_v62, 0.0 }
0x1f85   :  { %2924 = vadd.xlane.f32.xlu1 %v2923_v13  ;;  %v2920_v14 = vsel %vm227_vm4, %v2916_v12, 0.0 }
0x1f86   :  { %2921 = vadd.xlane.f32.xlu0 %v2920_v14 }
0x2012   :  { %v2925_v36 = vpop.xlane.xlu1 %2924 }
0x2013   :  { %v2927_v37 = vmul.f32 0.03125, %v2925_v36  ;;  %v2922_v15 = vpop.xlane.xlu0 %2921 }
0x2014   :  { %v2926_v16 = vmul.f32 0.03125, %v2922_v15 }
0x2015   :  { %v2929_v43 = vsub.f32 %v2917_v62, %v2927_v37 }
0x2016   :  { %v2928_v19 = vsub.f32 %v2916_v12, %v2926_v16 }
0x2017   :  { %v2931_v20 = vmul.f32 %v2929_v43, %v2929_v43 }
0x2018   :  { %v2930_v46 = vmul.f32 %v2928_v19, %v2928_v19 }
0x2019   :  { %v2935_v44 = vsel %vm231_vm5, %v2931_v20, 0.0 }
0x201a   :  { %2936 = vadd.xlane.f32.xlu1 %v2935_v44  ;;  %v2932_v45 = vsel %vm227_vm4, %v2930_v46, 0.0 }
0x201b   :  { %2933 = vadd.xlane.f32.xlu0 %v2932_v45 }
0x20a7   :  { %v2937_v26 = vpop.xlane.xlu1 %2936 }
0x20a8   :  { %v2939_v47 = vmul.f32 0.03125, %v2937_v26  ;;  %v2934_v49 = vpop.xlane.xlu0 %2933 }
0x20a9   :  { %v2938_v27 = vmul.f32 0.03125, %v2934_v49 }
0x20aa   :  { %v2941_v28 = vadd.f32 1e-12, %v2939_v47 }
0x20ab   :  { %v2940_v29 = vadd.f32 1e-12, %v2938_v27 }
0x20ac   :  { %5296 = vrsqrt.f32 %v2941_v28 }
0x20ad   :  { %5298 = vrsqrt.f32 %v2940_v29 }
0x20b6   :  { %v5297_v18 = vpop.eup %5296 }
0x20b7   :  { %v5299_v17 = vpop.eup %5298  ;;  %v2945_v31 = vmul.f32 %v5297_v18, %v2929_v43 }
0x20b8   :  { %v2944_v40 = vmul.f32 %v5299_v17, %v2928_v19 }
0x20b9   :  { %v2953_v33 = vmul.f32 %v4214_v30, %v2945_v31 }
0x20ba   :  { %v2952_v41 = vmul.f32 %v4214_v30, %v2944_v40 }
0x20bb   :  { %v2961_v51 = vadd.f32 %v4215_v38, %v2953_v33 }
0x20bc   :  { %v2960_v52 = vadd.f32 %v4215_v38, %v2952_v41 }
0x20be   :  { %v5042_v54 = vpack.c.bf16 %v2961_v51, %v2960_v52 }
0x20c0   :  { %5044 = vmatpush3.bf16.msk.msra.mxu1 %vm5702_vm12, %v5042_v54 }
0x20c1   :  { %5046 = vmatprep.subr.bf16.mxu1 %v5045_v53 }
0x20c3   :  { %4685 = vmatmul.mubr.msk.f32.vlgmr.msra.gmra.mrb[34].mxu1 %vm458_vm8, %v2962_v9 }
0x20c4   :  { %5048 = vmatpush3.bf16.msra.mxu1 %v5045_v53  ;;  %4695 = vmatprep.mubr.msk.f32.mxu1 %vm227_vm4, %v3039_v59 }
0x20c5   :  { %5050 = vmatprep.subr.bf16.mxu1 %v5049_v57 }
0x20c8   :  { %5052 = vmatpush3.bf16.msra.mxu1 %v5049_v57 }
0x20c9   :  { %5053 = vmatprep.subr.bf16.mxu1 %v5350_v0 }
0x20cb   :  { %4696 = vmatmul.mubr.msk.f32.vlgmr.msra.gmra.mrb[36].mxu1 %vm227_vm4, %v3040_v8 }
0x20cc   :  { %5055 = vmatpush3.bf16.msra.mxu1 %v6211_v22  ;;  %4706 = vmatprep.mubr.msk.f32.mxu1 %vm5366_vm15, %v5367_v34 }
0x20cd   :  { %5056 = vmatprep.subr.bf16.mxu1 %v5350_v0 }
0x20d0   :  { %5058 = vmatpush3.bf16.msra.mxu1 %v6221_v25 }
0x20d1   :  { %5059 = vmatprep.subr.bf16.mxu1 %v5350_v0 }
0x2196   :  { %v3035_v60 = vpop.f32.mrb[34].mxu1 }
0x2197   :  { %v4686_v63 = vpop.f32.mrb[35].mxu1  ;;  %4707 = vmatmul.mubr.msk.f32.vlgmr.msra.gmra.mrb[38].mxu1 %vm227_vm4, %v3035_v60 }
0x2198   :  { %5061 = vmatpush3.bf16.msra.mxu1 %v6211_v22  ;;  %4717 = vmatprep.mubr.msk.f32.mxu1 %vm5366_vm15, %v5367_v34 }
0x2199   :  { %5062 = vmatprep.subr.bf16.mxu1 %v5350_v0 }
0x219c   :  { %5064 = vmatpush3.bf16.msra.mxu1 %v6221_v25 }
0x219d   :  { %5065 = vmatprep.subr.bf16.mxu1 %v5350_v0 }
0x219e   :  { %v4697_v61 = vpop.f32.mrb[36].mxu1 }
0x219f   :  { %v6274_v39 = vadd.f32 %v4697_v61, %v4218_v35  ;;  %v3124_v1 = vpop.f32.mrb[37].mxu1 }
0x21a0   :  { %v6283_v4 = vadd.f32 %v4218_v35, %v3124_v1 }
0x226a   :  { %v3213_v55 = vpop.f32.mrb[38].mxu1 }
0x226b   :  { %v3214_v3 = vadd.f32 %v6279_v2, %v3213_v55  ;;  %v4708_v48 = vpop.f32.mrb[39].mxu1 }
0x226d   :  { %3225 = vrot.lane.b32.xlu0 %v3214_v3, %s6519_s7  ;;  %v3217_v5 = vadd.f32 %v3214_v3, %v6283_v4 }
0x226f   :  { %v4223_v6 = vmul.f32 -1.442695, %v3217_v5 }
0x2271   :  { %5300 = vpow2.f32 %v4223_v6 }
0x227b   :  { %v5301_v10 = vpop.eup %5300 }
0x227c   :  { %v3221_v11 = vadd.f32 1.0, %v5301_v10 }
0x227e   :  { %5302 = vrcp.f32 %v3221_v11 }
0x2288   :  { %v5303_v50 = vpop.eup %5302 }
0x2289   :  { %v3235_v15 = vsub.f32 1.0, %v5303_v50 }
0x22df   :  { %v3226_v62 = vpop.permute.xlu0 %3225 }
0x22e0   :  { %v3228_v12 = vmul.f32 %v5303_v50, %v3226_v62 }
0x22e2   :  { %3230 = vrot.lane.b32.xlu1 %v3228_v12, %s6519_s7 }
0x2354   :  { %v3231_v13 = vpop.permute.xlu1 %3230 }
0x2355   :  { %v3233_v14 = vadd.f32 %v3231_v13, %v6283_v4 }
0x2357   :  { %5304 = vtanh.f32 %v3233_v14 }
0x2361   :  { %v5305_v36 = vpop.eup %5304 }
0x2362   :  { %3237 = vrot.lane.b32.xlu1 %v5305_v36, %s6514_s0 }
0x2366   :  { %3241 = vrot.lane.b32.xlu1 %v3035_v60, %s5368_s23 }
0x23d4   :  { %v3238_v37 = vpop.permute.xlu1 %3237 }
0x23d5   :  { %v3240_v43 = vmul.f32 %v3238_v37, %v3235_v15 }
0x23d8   :  { %v3242_v16 = vpop.permute.xlu1 %3241 }
0x23d9   :  { %v3244_v19 = vmul.f32 %v5303_v50, %v3242_v16 }
0x23db   :  { %v6289_v20 = vadd.f32 %v3244_v19, %v3240_v43 }
0x23dd   :  { %3247 = vrot.lane.b32.xlu0 %v6289_v20, %s6514_s0  ;;  %v3347_v31 = vrot.slane %v6289_v20, 6 }
0x244f   :  { %v3248_v46 = vpop.permute.xlu0 %3247 }
0x2450   :  { %4718 = vmatmul.mubr.msk.f32.vlgmr.msra.gmra.mrb[40].mxu1 %vm227_vm4, %v3248_v46 }
0x2451   :  { %5067 = vmatpush3.bf16.msra.mxu1 %v6211_v22  ;;  %4728 = vmatprep.mubr.msk.f32.mxu1 %vm5366_vm15, %v5367_v34 }
0x2452   :  { %5068 = vmatprep.subr.bf16.mxu1 %v5350_v0 }
0x2455   :  { %5070 = vmatpush3.bf16.msra.mxu1 %v6221_v25 }
0x2456   :  { %5077 = vmatprep.subr.bf16.mxu1 %v5350_v0 }
0x2523   :  { %v3317_v44 = vpop.f32.mrb[40].mxu1 }
0x2524   :  { %v3318_v45 = vadd.f32 %v6279_v2, %v3317_v44  ;;  %v4719_v32 = vpop.f32.mrb[41].mxu1 }
0x2526   :  { %v3322_v21 = vrot.slane %v3318_v45, 6 }
0x2528   :  { %3331 = vrot.lane.b32.xlu1 %v3322_v21, %s6519_s7  ;;  %v3324_v23 = vadd.f32 %v3322_v21, %v6283_v4 }
0x252a   :  { %v4225_v24 = vmul.f32 -1.442695, %v3324_v23 }
0x252c   :  { %5306 = vpow2.f32 %v4225_v24 }
0x2536   :  { %v5307_v26 = vpop.eup %5306 }
0x2537   :  { %v3328_v47 = vadd.f32 1.0, %v5307_v26 }
0x2539   :  { %5308 = vrcp.f32 %v3328_v47 }
0x2543   :  { %v5309_v49 = vpop.eup %5308 }
0x2544   :  { %v3341_v17 = vsub.f32 1.0, %v5309_v49  ;;  %v3349_v33 = vmul.f32 %v5309_v49, %v3347_v31 }
0x259a   :  { %v3332_v27 = vpop.permute.xlu1 %3331 }
0x259b   :  { %v3334_v28 = vmul.f32 %v5309_v49, %v3332_v27 }
0x259d   :  { %3336 = vrot.lane.b32.xlu0 %v3334_v28, %s6519_s7 }
0x260f   :  { %v3337_v29 = vpop.permute.xlu0 %3336 }
0x2610   :  { %v3339_v18 = vadd.f32 %v3337_v29, %v6283_v4 }
0x2612   :  { %5310 = vtanh.f32 %v3339_v18 }
0x261c   :  { %v5311_v30 = vpop.eup %5310 }
0x261d   :  { %3343 = vrot.lane.b32.xlu1 %v5311_v30, %s6514_s0 }
0x268f   :  { %v3344_v40 = vpop.permute.xlu1 %3343 }
0x2690   :  { %v3346_v38 = vmul.f32 %v3344_v40, %v3341_v17 }
0x2692   :  { %v3350_v41 = vadd.f32 %v3349_v33, %v3346_v38 }
0x2694   :  { %v3352_v42 = vrot.slane %v3350_v41, 2  ;;  %v3453_v55 = vrot.slane %v3350_v41, 6  ;;  %v3983_v10 = vsel %vm493_vm10, %v6289_v20, %v3350_v41 }
0x2696   :  { %3353 = vrot.lane.b32.xlu0 %v3352_v42, %s6514_s0 }
0x2708   :  { %v3354_v58 = vpop.permute.xlu0 %3353 }
0x2709   :  { %4729 = vmatmul.mubr.msk.f32.vlgmr.msra.gmra.mrb[42].mxu1 %vm227_vm4, %v3354_v58 }
0x270a   :  { %5079 = vmatpush3.bf16.msra.mxu1 %v6211_v22  ;;  %4750 = vmatprep.mubr.msk.f32.mxu1 %vm5366_vm15, %v5367_v34 }
0x270b   :  { %5080 = vmatprep.subr.bf16.mxu1 %v5350_v0 }
0x270e   :  { %5082 = vmatpush3.bf16.msra.mxu1 %v6221_v25 }
0x270f   :  { %5089 = vmatprep.subr.bf16.mxu1 %v5350_v0 }
0x27dc   :  { %v3423_v51 = vpop.f32.mrb[42].mxu1 }
0x27dd   :  { %v3424_v52 = vadd.f32 %v6279_v2, %v3423_v51  ;;  %v4730_v53 = vpop.f32.mrb[43].mxu1 }
0x27df   :  { %v3428_v54 = vrot.slane %v3424_v52, 4 }
0x27e1   :  { %3437 = vrot.lane.b32.xlu1 %v3428_v54, %s6519_s7  ;;  %v3430_v56 = vadd.f32 %v3428_v54, %v6283_v4 }
0x27e3   :  { %v4227_v7 = vmul.f32 -1.442695, %v3430_v56 }
0x27e5   :  { %5312 = vpow2.f32 %v4227_v7 }
0x27ef   :  { %v5313_v9 = vpop.eup %5312 }
0x27f0   :  { %v3434_v57 = vadd.f32 1.0, %v5313_v9 }
0x27f2   :  { %5314 = vrcp.f32 %v3434_v57 }
0x27fc   :  { %v5315_v59 = vpop.eup %5314 }
0x27fd   :  { %v3447_v1 = vsub.f32 1.0, %v5315_v59  ;;  %v3455_v48 = vmul.f32 %v5315_v59, %v3453_v55 }
0x2853   :  { %v3438_v8 = vpop.permute.xlu1 %3437 }
0x2854   :  { %v3440_v60 = vmul.f32 %v5315_v59, %v3438_v8 }
0x2856   :  { %3442 = vrot.lane.b32.xlu0 %v3440_v60, %s6519_s7 }
0x28c8   :  { %v3443_v63 = vpop.permute.xlu0 %3442 }
0x28c9   :  { %v3445_v35 = vadd.f32 %v3443_v63, %v6283_v4 }
0x28cb   :  { %5316 = vtanh.f32 %v3445_v35 }
0x28d5   :  { %v5317_v61 = vpop.eup %5316 }
0x28d6   :  { %3449 = vrot.lane.b32.xlu1 %v5317_v61, %s6514_s0 }
0x2948   :  { %v3450_v3 = vpop.permute.xlu1 %3449 }
0x2949   :  { %v3452_v5 = vmul.f32 %v3450_v3, %v3447_v1 }
0x294b   :  { %v3456_v6 = vadd.f32 %v3455_v48, %v3452_v5 }
0x294d   :  { %v3458_v11 = vrot.slane %v3456_v6, 4  ;;  %v3985_v50 = vsel %vm3984_vm0, %v3983_v10, %v3456_v6  ;;  %v3559_v23 = vrot.slane %v3456_v6, 6 }
0x294f   :  { %3459 = vrot.lane.b32.xlu0 %v3458_v11, %s6514_s0 }
0x29c1   :  { %v3460_v62 = vpop.permute.xlu0 %3459 }
0x29c2   :  { %4740 = vmatmul.mubr.msk.f32.vlgmr.msra.gmra.mrb[16].mxu0 %vm227_vm4, %v3460_v62 }
0x29c3   :  { %5085 = vmatpush3.bf16.msra.mxu0 %v6211_v22  ;;  %4761 = vmatprep.mubr.msk.f32.mxu0 %vm5366_vm15, %v5367_v34 }
0x29c4   :  { %5086 = vmatprep.subr.bf16.mxu0 %v5350_v0 }
0x29c7   :  { %5088 = vmatpush3.bf16.msra.mxu0 %v6221_v25 }
0x29c8   :  { %5095 = vmatprep.subr.bf16.mxu0 %v5350_v0 }
0x2a95   :  { %v3529_v12 = vpop.f32.mrb[16].mxu0 }
0x2a96   :  { %v3530_v13 = vadd.f32 %v6279_v2, %v3529_v12  ;;  %v4741_v14 = vpop.f32.mrb[17].mxu0 }
0x2a98   :  { %v3534_v36 = vrot.slane %v3530_v13, 2 }
0x2a9a   :  { %3543 = vrot.lane.b32.xlu1 %v3534_v36, %s6519_s7  ;;  %v3536_v37 = vadd.f32 %v3534_v36, %v6283_v4 }
0x2a9c   :  { %v4229_v15 = vmul.f32 -1.442695, %v3536_v37 }
0x2a9e   :  { %5318 = vpow2.f32 %v4229_v15 }
0x2aa8   :  { %v5319_v16 = vpop.eup %5318 }
0x2aa9   :  { %v3540_v43 = vadd.f32 1.0, %v5319_v16 }
0x2aab   :  { %5320 = vrcp.f32 %v3540_v43 }
0x2ab5   :  { %v5321_v19 = vpop.eup %5320 }
0x2ab6   :  { %v3553_v21 = vsub.f32 1.0, %v5321_v19  ;;  %v3561_v26 = vmul.f32 %v5321_v19, %v3559_v23 }
0x2b0c   :  { %v3544_v20 = vpop.permute.xlu1 %3543 }
0x2b0d   :  { %v3546_v46 = vmul.f32 %v5321_v19, %v3544_v20 }
0x2b0f   :  { %3548 = vrot.lane.b32.xlu0 %v3546_v46, %s6519_s7 }
0x2b81   :  { %v3549_v44 = vpop.permute.xlu0 %3548 }
0x2b82   :  { %v3551_v45 = vadd.f32 %v3549_v44, %v6283_v4 }
0x2b84   :  { %5322 = vtanh.f32 %v3551_v45 }
0x2b8e   :  { %v5323_v32 = vpop.eup %5322 }
0x2b8f   :  { %3555 = vrot.lane.b32.xlu1 %v5323_v32, %s6514_s0 }
0x2c01   :  { %v3556_v24 = vpop.permute.xlu1 %3555 }
0x2c02   :  { %v3558_v47 = vmul.f32 %v3556_v24, %v3553_v21 }
0x2c04   :  { %v3562_v49 = vadd.f32 %v3561_v26, %v3558_v47 }
0x2c06   :  { %v3564_v27 = vrot.slane %v3562_v49, 6  ;;  %v6339_v28 = vsel %vm221_vm3, %v3985_v50, %v3562_v49 }
0x2c08   :  { %3565 = vrot.lane.b32.xlu0 %v3564_v27, %s6514_s0 }
0x2c7a   :  { %v3566_v29 = vpop.permute.xlu0 %3565 }
0x2c7b   :  { %4751 = vmatmul.mubr.msk.f32.vlgmr.msra.gmra.mrb[44].mxu1 %vm227_vm4, %v3566_v29 }
0x2c7c   :  { %5091 = vmatpush3.bf16.msra.mxu1 %v6211_v22  ;;  %4772 = vmatprep.mubr.msk.f32.mxu1 %vm5366_vm15, %v5367_v34 }
0x2c7d   :  { %5092 = vmatprep.subr.bf16.mxu1 %v5350_v0 }
0x2c80   :  { %5094 = vmatpush3.bf16.msra.mxu1 %v6221_v25 }
0x2d4e   :  { %v3635_v4 = vpop.f32.mrb[44].mxu1 }
0x2d4f   :  { %v3636_v18 = vadd.f32 %v6279_v2, %v3635_v4  ;;  %v4752_v30 = vpop.f32.mrb[45].mxu1 }
0x2d51   :  { %3647 = vrot.lane.b32.xlu1 %v3636_v18, %s6519_s7  ;;  %v3639_v17 = vadd.f32 %v3636_v18, %v6274_v39 }
0x2d53   :  { %v4231_v31 = vmul.f32 -1.442695, %v3639_v17 }
0x2d55   :  { %5324 = vpow2.f32 %v4231_v31 }
0x2d5f   :  { %v5325_v40 = vpop.eup %5324 }
0x2d60   :  { %v3643_v38 = vadd.f32 1.0, %v5325_v40 }
0x2d62   :  { %5326 = vrcp.f32 %v3643_v38 }
0x2d6c   :  { %v5327_v33 = vpop.eup %5326 }
0x2d6d   :  { %v3657_v53 = vsub.f32 1.0, %v5327_v33  ;;  %v3664_v56 = vmul.f32 %v5327_v33, %v3564_v27 }
0x2dc3   :  { %v3648_v41 = vpop.permute.xlu1 %3647 }
0x2dc4   :  { %v3650_v42 = vmul.f32 %v5327_v33, %v3648_v41 }
0x2dc6   :  { %3652 = vrot.lane.b32.xlu0 %v3650_v42, %s6519_s7 }
0x2e38   :  { %v3653_v58 = vpop.permute.xlu0 %3652 }
0x2e39   :  { %v3655_v51 = vadd.f32 %v3653_v58, %v6274_v39 }
0x2e3b   :  { %5328 = vtanh.f32 %v3655_v51 }
0x2e45   :  { %v5329_v52 = vpop.eup %5328 }
0x2e46   :  { %3659 = vrot.lane.b32.xlu1 %v5329_v52, %s6514_s0 }
0x2eb8   :  { %v3660_v54 = vpop.permute.xlu1 %3659 }
0x2eb9   :  { %v3662_v7 = vmul.f32 %v3660_v54, %v3657_v53 }
0x2ebb   :  { %v6354_v9 = vadd.f32 %v3664_v56, %v3662_v7 }
0x2ebd   :  { %3667 = vrot.lane.b32.xlu0 %v6354_v9, %s6514_s0  ;;  %v3767_v6 = vrot.slane %v6354_v9, 6 }
0x2f2f   :  { %v3668_v57 = vpop.permute.xlu0 %3667 }
0x2f30   :  { %4762 = vmatmul.mubr.msk.f32.vlgmr.msra.gmra.mrb[18].mxu0 %vm227_vm4, %v3668_v57  ;;  %v3991_v57 = vld [vmem:[%s6528_s4 + $0x8] sm:$0xff] }
0x2f31   :  { %5097 = vmatpush3.bf16.msra.mxu0 %v6211_v22  ;;  %4783 = vmatprep.mubr.msk.f32.mxu0 %vm5366_vm15, %v5367_v34 }
0x2f32   :  { %5098 = vmatprep.subr.bf16.mxu0 %v5350_v0 }
0x2f35   :  { %5100 = vmatpush3.bf16.msra.mxu0 %v6221_v25 }
0x3003   :  { %v3737_v59 = vpop.f32.mrb[18].mxu0 }
0x3004   :  { %v3738_v8 = vadd.f32 %v6279_v2, %v3737_v59  ;;  %v4763_v60 = vpop.f32.mrb[19].mxu0  ;;  %v3992_v59 = vld [vmem:[%s6528_s4 + $0x10] sm:$0xff] }
0x3006   :  { %v3742_v63 = vrot.slane %v3738_v8, 6 }
0x3008   :  { %3751 = vrot.lane.b32.xlu1 %v3742_v63, %s6519_s7  ;;  %v3744_v35 = vadd.f32 %v3742_v63, %v6274_v39 }
0x300a   :  { %v4233_v61 = vmul.f32 -1.442695, %v3744_v35 }
0x300c   :  { %5330 = vpow2.f32 %v4233_v61 }
0x3016   :  { %v5331_v1 = vpop.eup %5330 }
0x3017   :  { %v3748_v22 = vadd.f32 1.0, %v5331_v1 }
0x3019   :  { %5332 = vrcp.f32 %v3748_v22 }
0x3023   :  { %v5333_v55 = vpop.eup %5332 }
0x3024   :  { %v3761_v5 = vsub.f32 1.0, %v5333_v55  ;;  %v3769_v50 = vmul.f32 %v5333_v55, %v3767_v6 }
0x307a   :  { %v3752_v34 = vpop.permute.xlu1 %3751 }
0x307b   :  { %v3754_v3 = vmul.f32 %v5333_v55, %v3752_v34 }
0x307d   :  { %3756 = vrot.lane.b32.xlu0 %v3754_v3, %s6519_s7 }
0x30ef   :  { %v3757_v0 = vpop.permute.xlu0 %3756 }
0x30f0   :  { %v3759_v25 = vadd.f32 %v3757_v0, %v6274_v39  ;;  %v4238_v0 = vld [vmem:[%s6529_s2] ss:$0 sm:$0xff] }
0x30f2   :  { %5334 = vtanh.f32 %v3759_v25 }
0x30fc   :  { %v5335_v48 = vpop.eup %5334 }
0x30fd   :  { %3763 = vrot.lane.b32.xlu1 %v5335_v48, %s6514_s0 }
0x316f   :  { %v3764_v10 = vpop.permute.xlu1 %3763 }
0x3170   :  { %v3766_v11 = vmul.f32 %v3764_v10, %v3761_v5 }
0x3172   :  { %v3770_v62 = vadd.f32 %v3769_v50, %v3766_v11 }
0x3174   :  { %v3772_v12 = vrot.slane %v3770_v62, 2  ;;  %v3873_v26 = vrot.slane %v3770_v62, 6  ;;  %v3987_v4 = vsel %vm493_vm10, %v6354_v9, %v3770_v62  ;;  %v3990_v9 = vld [vmem:[%s6528_s4] sm:$0xff] }
0x3176   :  { %3773 = vrot.lane.b32.xlu0 %v3772_v12, %s6514_s0 }
0x31e8   :  { %v3774_v13 = vpop.permute.xlu0 %3773 }
0x31e9   :  { %4773 = vmatmul.mubr.msk.f32.vlgmr.msra.gmra.mrb[46].mxu1 %vm227_vm4, %v3774_v13 }
0x32bc   :  { %v3843_v14 = vpop.f32.mrb[46].mxu1 }
0x32bd   :  { %v3844_v36 = vadd.f32 %v6279_v2, %v3843_v14  ;;  %v4774_v37 = vpop.f32.mrb[47].mxu1 }
0x32bf   :  { %v3848_v15 = vrot.slane %v3844_v36, 4 }
0x32c1   :  { %3857 = vrot.lane.b32.xlu1 %v3848_v15, %s6519_s7  ;;  %v3850_v16 = vadd.f32 %v3848_v15, %v6274_v39 }
0x32c3   :  { %v4235_v43 = vmul.f32 -1.442695, %v3850_v16 }
0x32c5   :  { %5336 = vpow2.f32 %v4235_v43 }
0x32cf   :  { %v5337_v19 = vpop.eup %5336 }
0x32d0   :  { %v3854_v20 = vadd.f32 1.0, %v5337_v19 }
0x32d2   :  { %5338 = vrcp.f32 %v3854_v20 }
0x32dc   :  { %v5339_v46 = vpop.eup %5338 }
0x32dd   :  { %v3867_v24 = vsub.f32 1.0, %v5339_v46  ;;  %v3875_v49 = vmul.f32 %v5339_v46, %v3873_v26 }
0x3333   :  { %v3858_v44 = vpop.permute.xlu1 %3857 }
0x3334   :  { %v3860_v45 = vmul.f32 %v5339_v46, %v3858_v44 }
0x3336   :  { %3862 = vrot.lane.b32.xlu0 %v3860_v45, %s6519_s7 }
0x33a8   :  { %v3863_v32 = vpop.permute.xlu0 %3862 }
0x33a9   :  { %v3865_v21 = vadd.f32 %v3863_v32, %v6274_v39 }
0x33ab   :  { %5340 = vtanh.f32 %v3865_v21 }
0x33b5   :  { %v5341_v23 = vpop.eup %5340 }
0x33b6   :  { %3869 = vrot.lane.b32.xlu1 %v5341_v23, %s6514_s0 }
0x3428   :  { %v3870_v47 = vpop.permute.xlu1 %3869 }
0x3429   :  { %v3872_v27 = vmul.f32 %v3870_v47, %v3867_v24 }
0x342b   :  { %v3876_v29 = vadd.f32 %v3875_v49, %v3872_v27 }
0x342d   :  { %v3878_v18 = vrot.slane %v3876_v29, 4  ;;  %v3988_v30 = vsel %vm3984_vm0, %v3987_v4, %v3876_v29  ;;  %v3979_v35 = vrot.slane %v3876_v29, 6 }
0x342f   :  { %3879 = vrot.lane.b32.xlu0 %v3878_v18, %s6514_s0 }
0x34a1   :  { %v3880_v17 = vpop.permute.xlu0 %3879 }
0x34a2   :  { %4784 = vmatmul.mubr.msk.f32.vlgmr.msra.gmra.mrb[20].mxu0 %vm227_vm4, %v3880_v17 }
0x3575   :  { %v3949_v31 = vpop.f32.mrb[20].mxu0 }
0x3576   :  { %v3950_v40 = vadd.f32 %v6279_v2, %v3949_v31  ;;  %v4785_v38 = vpop.f32.mrb[21].mxu0 }
0x3578   :  { %v3954_v33 = vrot.slane %v3950_v40, 2 }
0x357a   :  { %3963 = vrot.lane.b32.xlu1 %v3954_v33, %s6519_s7  ;;  %v3956_v41 = vadd.f32 %v3954_v33, %v6274_v39 }
0x357c   :  { %v4237_v42 = vmul.f32 -1.442695, %v3956_v41 }
0x357e   :  { %5342 = vpow2.f32 %v4237_v42 }
0x3588   :  { %v5343_v58 = vpop.eup %5342 }
0x3589   :  { %v3960_v51 = vadd.f32 1.0, %v5343_v58 }
0x358b   :  { %5344 = vrcp.f32 %v3960_v51 }
0x3595   :  { %v5345_v52 = vpop.eup %5344 }
0x3596   :  { %v3973_v63 = vsub.f32 1.0, %v5345_v52  ;;  %v3981_v1 = vmul.f32 %v5345_v52, %v3979_v35 }
0x35ec   :  { %v3964_v53 = vpop.permute.xlu1 %3963 }
0x35ed   :  { %v3966_v54 = vmul.f32 %v5345_v52, %v3964_v53 }
0x35ef   :  { %3968 = vrot.lane.b32.xlu0 %v3966_v54, %s6519_s7 }
0x35f3   :  { %4003 = vrot.lane.b32.xlu0 %v6339_v28, %s6514_s0  ;;  %v5101_v28 = vpack.c.bf16 %v3991_v57, %v3990_v9 }
0x35f5   :  { %5102 = vmatprep.subr.bf16.mxu1 %v5101_v28 }
0x35f6   :  { %5104 = vmatpush3.bf16.msra.mxu1 %v5101_v28 }
0x3661   :  { %v3969_v2 = vpop.permute.xlu0 %3968 }
0x3662   :  { %v3971_v56 = vadd.f32 %v3969_v2, %v6274_v39  ;;  %v3993_v39 = vld [vmem:[%s6528_s4 + $0x18] sm:$0xff] }
0x3663   :  { %v5105_v8 = vpack.c.bf16 %v3993_v39, %v3992_v59 }
0x3664   :  { %5346 = vtanh.f32 %v3971_v56 }
0x3665   :  { %v4004_v7 = vpop.permute.xlu0 %4003  ;;  %5106 = vmatprep.subr.bf16.mxu1 %v5105_v8 }
0x3666   :  { %4794 = vmatprep.mubr.msk.f32.mxu1 %vm227_vm4, %v4004_v7  ;;  %5108 = vmatpush3.bf16.msra.mxu1 %v5105_v8 }
0x366e   :  { %v5347_v60 = vpop.eup %5346 }
0x366f   :  { %3975 = vrot.lane.b32.xlu1 %v5347_v60, %s6514_s0 }
0x36e1   :  { %v3976_v61 = vpop.permute.xlu1 %3975 }
0x36e2   :  { %v3978_v22 = vmul.f32 %v3976_v61, %v3973_v63 }
0x36e4   :  { %v3982_v55 = vadd.f32 %v3981_v1, %v3978_v22 }
0x36e6   :  { %v3989_v34 = vsel %vm221_vm3, %v3988_v30, %v3982_v55 }
0x36e7   :  { %4005 = vrot.lane.b32.xlu1 %v3989_v34, %s6514_s0 }
0x3759   :  { %v4006_v3 = vpop.permute.xlu1 %4005 }
0x375a   :  { %4795 = vmatmul.mubr.msk.f32.vlgmr.msra.gmra.mrb[48].mxu1 %vm227_vm4, %v4006_v3 }
0x382d   :  { %v4796_v25 = vpop.f32.mrb[48].mxu1 }
0x382e   :  { %v4083_v48 = vadd.f32 %v4796_v25, %v4238_v0  ;;  %v4077_v5 = vpop.f32.mrb[49].mxu1 }
0x382f   :  { %v4078_v6 = vadd.f32 %v4238_v0, %v4077_v5 }
0x3830   :  { %4087 = vst [vmem:[%s6530_s8 + $0x8] sm:$0xff] %v4083_v48 }
0x3831   :  { %4086 = vst [vmem:[%s6530_s8] sm:$0xff] %v4078_v6 }

</bundles_post_ra>
